<compile_context>
chip_gen: v6e
topology: v6e:2x2x1
jax: 0.10.0
libtpu: 0.0.40
codegen_flags: <defaults>
</compile_context>

<pallas_src>
import math

import numpy as np
import jax
import jax.numpy as jnp
from jax.experimental import pallas as pl
from jax.experimental.pallas import tpu as pltpu

# ----------------------------------------------------------------------------
# Search-space / net configuration (small, deterministic)
# ----------------------------------------------------------------------------
NUM_INIT_NODES = 1
NUM_NODES = 3                      # search_space._num_nodes
NUM_STEPS = NUM_NODES - NUM_INIT_NODES
NUM_LAYERS = 2
CELL_LAYOUT = [0, 1]               # layer -> cell group
REDUCE_CELL_GROUPS = []            # no reduce cells -> all strides == 1
PRIMITIVES = ["none", "skip_connect", "sep_conv_3x3", "res_sep_conv"]

NUM_CLASSES = 10
INIT_CHANNELS = 8
STEM_MULTIPLIER = 1
C_STEM = STEM_MULTIPLIER * INIT_CHANNELS
CIN_PAD = 8                        # image channels (3) zero-padded to 8 sublanes
BN_EPS = 1e-5


# ----------------------------------------------------------------------------
# Static tap tables for 3x3 "same" convolution on a flattened (C, H*W) image
# ----------------------------------------------------------------------------
def _tap_tables(H, W):
    """Per-tap circular shift amounts and border-validity masks."""
    HW = H * W
    pp = np.arange(HW)
    shifts, needs_mask = [], []
    masks = np.ones((9, HW), np.float32)
    t = 0
    for dy in (-1, 0, 1):
        for dx in (-1, 0, 1):
            off = dy * W + dx
            shifts.append((-off) % HW)             # out[p] reads in[p + off]
            yy = pp // W + dy
            xx = pp % W + dx
            valid = (yy >= 0) & (yy < H) & (xx >= 0) & (xx < W)
            needs_mask.append(not bool(valid.all()))
            masks[t] = valid.astype(np.float32)
            t += 1
    return tuple(shifts), tuple(needs_mask), masks


# ----------------------------------------------------------------------------
# The single fused kernel (everything unrolled at trace time)
# ----------------------------------------------------------------------------
def _make_kernel(treedef, n_leaves, genotypes, H, W, tap_shift, needs_mask):
    HW = H * W

    def kernel(x_ref, masks_ref, *refs):
        param_refs = refs[:n_leaves]
        o_ref = refs[n_leaves]
        params = jax.tree_util.tree_unflatten(treedef, list(param_refs))

        # Border masks loaded once from VMEM input (not captured constants).
        mask_rows = [masks_ref[t:t + 1, :] if needs_mask[t] else None
                     for t in range(9)]

        def roll_lanes(x, s):
            # circular lane shift: out[:, p] = x[:, (p - s) % HW]
            if s == 0:
                return x
            return jnp.concatenate([x[:, HW - s:], x[:, :HW - s]], axis=1)

        def shifted_tap(x, t):
            # x: (C, HW) f32 -> x shifted so out[p] = x[p + tap_offset], 0-padded
            sh = roll_lanes(x, tap_shift[t])
            m = mask_rows[t]
            return sh if m is None else sh * m

        def depthwise3x3(x, dw):
            # x: (C, HW) f32, dw: (9, C, 1) f32
            acc = None
            for t in range(9):
                contrib = shifted_tap(x, t) * dw[t]
                acc = contrib if acc is None else acc + contrib
            return acc

        def matmul(w, x):
            # bf16 MXU operands, f32 accumulation; w: (Cout, Cin), x: (Cin, HW)
            return jnp.dot(w, x.astype(w.dtype),
                           preferred_element_type=jnp.float32)

        def stem_conv(x, sp):
            # im2col: one (C_STEM, 9*CIN_PAD) x (9*CIN_PAD, HW) matmul.
            patches = jnp.concatenate([shifted_tap(x, t) for t in range(9)],
                                      axis=0)
            z = matmul(sp["w"][...], patches)
            return z * sp["scale"][...] + sp["bias"][...]

        def conv1x1_bn(x, p, relu_in):
            if relu_in:
                x = jnp.maximum(x, 0.0)
            z = matmul(p["w"][...], x)
            return z * p["scale"][...] + p["bias"][...]

        def sep_conv(x, sp):
            # DARTS SepConv: (ReLU -> dw3x3 -> pw1x1 -> BN) x 2, stride 1.
            h = jnp.maximum(x, 0.0)
            h = depthwise3x3(h, sp["dw1"][...])
            h = matmul(sp["pw1"][...], h)
            h = h * sp["bn1_scale"][...] + sp["bn1_bias"][...]
            h = jnp.maximum(h, 0.0)
            h = depthwise3x3(h, sp["dw2"][...])
            h = matmul(sp["pw2"][...], h)
            return h * sp["bn2_scale"][...] + sp["bn2_bias"][...]

        def apply_primitive(x, op_idx, edgep):
            name = PRIMITIVES[op_idx]
            if name == "skip_connect":                     # Identity (stride 1)
                return x
            if name == "sep_conv_3x3":
                return sep_conv(x, edgep["sep"])
            if name == "res_sep_conv":                     # SepConv + residual
                return sep_conv(x, edgep["sep"]) + x
            raise ValueError(name)

        def cell_forward(cellp, inputs, genotype):
            # preprocess (skip_connect_2): Identity when shapes match, else
            # ReLU -> 1x1 -> BN channel adapter.
            states = []
            for inp, pre in zip(inputs, cellp["preprocess"]):
                states.append(inp if pre is None
                              else conv1x1_bn(inp, pre, relu_in=True))
            for to_ in range(NUM_INIT_NODES, NUM_NODES):
                acc = None
                for from_ in range(to_):
                    op_idx = int(genotype[to_][from_])
                    if PRIMITIVES[op_idx] == "none":       # Zero: pruned at trace
                        continue
                    out = apply_primitive(states[from_], op_idx,
                                          cellp["edges"][(from_, to_)])
                    acc = out if acc is None else acc + out
                states.append(acc if acc is not None
                              else jnp.zeros_like(states[0]))
            # torch.cat(states[num_init:], dim=1) -> channel (sublane) concat
            return jnp.concatenate(states[NUM_INIT_NODES:], axis=0)

        # ---- network body (one batch element per grid step) ----
        x = x_ref[0]                                       # (CIN_PAD, HW) f32
        stem_out = stem_conv(x, params["stem"])
        states = [stem_out] * NUM_INIT_NODES
        for i_layer, cg in enumerate(CELL_LAYOUT):
            o = cell_forward(params["cells"][i_layer], states, genotypes[cg])
            states.append(o)
            states = states[1:]
        act = states[-1]                                   # (C_final, HW), lastact=Identity

        # AdaptiveAvgPool2d(1) + Linear  ==  mean_over_pixels(W @ act) + b
        z = jnp.dot(params["classifier"]["w"][...], act,
                    preferred_element_type=jnp.float32)    # (NUM_CLASSES, HW)
        logits = jnp.mean(z, axis=1, keepdims=True) \
            + params["classifier"]["b"][...]               # (NUM_CLASSES, 1)
        o_ref[...] = logits[None]                          # (1, NUM_CLASSES, 1)

    return kernel


# ----------------------------------------------------------------------------
# Public forward
# ----------------------------------------------------------------------------
def rob_shared_net_forward(params, x_nchw, genotypes):
    n, cin, h, w = x_nchw.shape
    hw = h * w
    # One-time boundary transform: NCHW -> channel-major (N, CIN_PAD, H*W).
    x = x_nchw.reshape(n, cin, hw).astype(jnp.float32)
    x = jnp.pad(x, ((0, 0), (0, CIN_PAD - cin), (0, 0)))

    tap_shift, needs_mask, masks_np = _tap_tables(h, w)
    masks = jnp.asarray(masks_np)                          # (9, HW) f32 input

    leaves, treedef = jax.tree_util.tree_flatten(params)
    kernel = _make_kernel(treedef, len(leaves), genotypes, h, w,
                          tap_shift, needs_mask)

    def _const_spec(arr):
        nd = arr.ndim
        return pl.BlockSpec(arr.shape, lambda i, _nd=nd: (0,) * _nd)

    in_specs = [pl.BlockSpec((1, CIN_PAD, hw), lambda i: (i, 0, 0)),
                _const_spec(masks)]
    in_specs += [_const_spec(leaf) for leaf in leaves]

    out = pl.pallas_call(
        kernel,
        out_shape=jax.ShapeDtypeStruct((n, NUM_CLASSES, 1), jnp.float32),
        grid=(n,),
        in_specs=in_specs,
        out_specs=pl.BlockSpec((1, NUM_CLASSES, 1), lambda i: (i, 0, 0)),
        compiler_params=pltpu.CompilerParams(
            dimension_semantics=("parallel",)),
    )(x, masks, *leaves)
    return out[:, :, 0]                                    # (N, NUM_CLASSES)


# ----------------------------------------------------------------------------
# Deterministic parameter initialization (kernel-layout weights)
# ----------------------------------------------------------------------------
def _normal(key, shape, scale=0.1):
    return scale * jax.random.normal(key, shape, jnp.float32)


def _bn_fold(c):
    # BN eval, running mean=0, var=1  ->  y = x / sqrt(1+eps)  (gamma=1, beta=0)
    scale = jnp.full((c, 1), 1.0 / math.sqrt(1.0 + BN_EPS), jnp.float32)
    bias = jnp.zeros((c, 1), jnp.float32)
    return scale, bias


def _sep_conv_params(key, c, c_out):
    k1, k2, k3, k4 = jax.random.split(key, 4)
    s1, b1 = _bn_fold(c)
    s2, b2 = _bn_fold(c_out)
    return {
        "dw1": _normal(k1, (9, c, 1)),                        # depthwise taps
        "pw1": _normal(k2, (c, c)).astype(jnp.bfloat16),      # (Cout, Cin)
        "bn1_scale": s1, "bn1_bias": b1,
        "dw2": _normal(k3, (9, c, 1)),
        "pw2": _normal(k4, (c_out, c)).astype(jnp.bfloat16),
        "bn2_scale": s2, "bn2_bias": b2,
    }


def init_params(key):
    keys = jax.random.split(key, 16)
    # stem: conv_bn_3x3 (3 -> C_STEM), stride 1, BN affine=True.
    # Weight stored im2col-style (C_STEM, 9*CIN_PAD), zero cols for padded channels.
    w_raw = _normal(keys[0], (C_STEM, 9, 3))
    w_stem = jnp.pad(w_raw, ((0, 0), (0, 0), (0, CIN_PAD - 3)))
    s, b = _bn_fold(C_STEM)
    params = {"stem": {"w": w_stem.reshape(C_STEM, 9 * CIN_PAD).astype(jnp.bfloat16),
                       "scale": s, "bias": b}}

    cells = []
    prev_num_channels = [C_STEM] * NUM_INIT_NODES
    num_channels = INIT_CHANNELS
    kidx = 1
    for i_layer in range(NUM_LAYERS):
        stride = 2 if CELL_LAYOUT[i_layer] in REDUCE_CELL_GROUPS else 1
        if stride > 1:
            num_channels *= stride
        c_out = num_channels
        cell = {"preprocess": [], "edges": {}}
        for prev_c in prev_num_channels:
            if prev_c == c_out and stride == 1:
                cell["preprocess"].append(None)   # skip_connect_2 -> Identity
            else:
                # TODO(synk): exact aw_nas `skip_connect_2` definition unavailable;
                # using ReLU -> Conv1x1 -> BN(affine=True) channel adapter.
                ps, pb = _bn_fold(c_out)
                cell["preprocess"].append({
                    "w": _normal(keys[kidx], (c_out, prev_c)).astype(jnp.bfloat16),
                    "scale": ps, "bias": pb})
                kidx += 1
        # supernet: every edge holds weights for the conv primitives
        for from_ in range(NUM_NODES):
            for to_ in range(max(NUM_INIT_NODES, from_ + 1), NUM_NODES):
                ek = jax.random.fold_in(keys[kidx], from_ * 10 + to_)
                cell["edges"][(from_, to_)] = {
                    "sep": _sep_conv_params(ek, c_out, c_out)}
        kidx += 1
        cells.append(cell)
        prev_num_channels.append(NUM_STEPS * c_out)     # cell.num_out_channel()
        prev_num_channels = prev_num_channels[1:]
    params["cells"] = cells
    params["classifier"] = {
        "w": _normal(keys[kidx], (NUM_CLASSES, prev_num_channels[-1])),
        "b": jnp.zeros((NUM_CLASSES, 1), jnp.float32),
    }
    return params


# ----------------------------------------------------------------------------
if __name__ == "__main__":
    key = jax.random.PRNGKey(0)
    kx, kp = jax.random.split(key)

    # NCHW input, like the PyTorch module (batch=2, 3 channels, 16x16 image)
    x = jax.random.normal(kx, (2, 3, 16, 16), jnp.float32)
    params = init_params(kp)

    # genotype[cell_group][to_][from_] -> primitive index
    genotypes = [
        np.array([[0, 0, 0], [2, 0, 0], [1, 3, 0]], dtype=np.int32),
        np.array([[0, 0, 0], [3, 0, 0], [2, 0, 0]], dtype=np.int32),
    ]

    fwd = jax.jit(lambda p, xx: rob_shared_net_forward(p, xx, genotypes))
    logits = jax.block_until_ready(fwd(params, x))

    assert logits.shape == (2, NUM_CLASSES), logits.shape
    assert bool(jnp.all(jnp.isfinite(logits)))
    print("KERNEL_OK")
</pallas_src>

<mosaic_0001>
module attributes {stable_mosaic.version = 11 : i64} {
  func.func @kernel(%arg0: i32, %arg1: memref<1x8x256xf32, #tpu.memory_space<vmem>>, %arg2: memref<9x256xf32, #tpu.memory_space<vmem>>, %arg3: memref<8x1xf32, #tpu.memory_space<vmem>>, %arg4: memref<8x1xf32, #tpu.memory_space<vmem>>, %arg5: memref<8x1xf32, #tpu.memory_space<vmem>>, %arg6: memref<8x1xf32, #tpu.memory_space<vmem>>, %arg7: memref<9x8x1xf32, #tpu.memory_space<vmem>>, %arg8: memref<9x8x1xf32, #tpu.memory_space<vmem>>, %arg9: memref<8x8xbf16, #tpu.memory_space<vmem>>, %arg10: memref<8x8xbf16, #tpu.memory_space<vmem>>, %arg11: memref<8x1xf32, #tpu.memory_space<vmem>>, %arg12: memref<8x1xf32, #tpu.memory_space<vmem>>, %arg13: memref<8x1xf32, #tpu.memory_space<vmem>>, %arg14: memref<8x1xf32, #tpu.memory_space<vmem>>, %arg15: memref<9x8x1xf32, #tpu.memory_space<vmem>>, %arg16: memref<9x8x1xf32, #tpu.memory_space<vmem>>, %arg17: memref<8x8xbf16, #tpu.memory_space<vmem>>, %arg18: memref<8x8xbf16, #tpu.memory_space<vmem>>, %arg19: memref<8x1xf32, #tpu.memory_space<vmem>>, %arg20: memref<8x1xf32, #tpu.memory_space<vmem>>, %arg21: memref<8x1xf32, #tpu.memory_space<vmem>>, %arg22: memref<8x1xf32, #tpu.memory_space<vmem>>, %arg23: memref<9x8x1xf32, #tpu.memory_space<vmem>>, %arg24: memref<9x8x1xf32, #tpu.memory_space<vmem>>, %arg25: memref<8x8xbf16, #tpu.memory_space<vmem>>, %arg26: memref<8x8xbf16, #tpu.memory_space<vmem>>, %arg27: memref<8x1xf32, #tpu.memory_space<vmem>>, %arg28: memref<8x1xf32, #tpu.memory_space<vmem>>, %arg29: memref<8x1xf32, #tpu.memory_space<vmem>>, %arg30: memref<8x1xf32, #tpu.memory_space<vmem>>, %arg31: memref<9x8x1xf32, #tpu.memory_space<vmem>>, %arg32: memref<9x8x1xf32, #tpu.memory_space<vmem>>, %arg33: memref<8x8xbf16, #tpu.memory_space<vmem>>, %arg34: memref<8x8xbf16, #tpu.memory_space<vmem>>, %arg35: memref<8x1xf32, #tpu.memory_space<vmem>>, %arg36: memref<8x1xf32, #tpu.memory_space<vmem>>, %arg37: memref<8x1xf32, #tpu.memory_space<vmem>>, %arg38: memref<8x1xf32, #tpu.memory_space<vmem>>, %arg39: memref<9x8x1xf32, #tpu.memory_space<vmem>>, %arg40: memref<9x8x1xf32, #tpu.memory_space<vmem>>, %arg41: memref<8x8xbf16, #tpu.memory_space<vmem>>, %arg42: memref<8x8xbf16, #tpu.memory_space<vmem>>, %arg43: memref<8x1xf32, #tpu.memory_space<vmem>>, %arg44: memref<8x1xf32, #tpu.memory_space<vmem>>, %arg45: memref<8x1xf32, #tpu.memory_space<vmem>>, %arg46: memref<8x1xf32, #tpu.memory_space<vmem>>, %arg47: memref<9x8x1xf32, #tpu.memory_space<vmem>>, %arg48: memref<9x8x1xf32, #tpu.memory_space<vmem>>, %arg49: memref<8x8xbf16, #tpu.memory_space<vmem>>, %arg50: memref<8x8xbf16, #tpu.memory_space<vmem>>, %arg51: memref<8x1xf32, #tpu.memory_space<vmem>>, %arg52: memref<8x1xf32, #tpu.memory_space<vmem>>, %arg53: memref<8x16xbf16, #tpu.memory_space<vmem>>, %arg54: memref<10x1xf32, #tpu.memory_space<vmem>>, %arg55: memref<10x16xf32, #tpu.memory_space<vmem>>, %arg56: memref<8x1xf32, #tpu.memory_space<vmem>>, %arg57: memref<8x1xf32, #tpu.memory_space<vmem>>, %arg58: memref<8x72xbf16, #tpu.memory_space<vmem>>, %arg59: memref<1x10x1xf32, #tpu.memory_space<vmem>>) attributes {dimension_semantics = [#tpu.dimension_semantics<parallel>], iteration_bounds = array<i64: 2>, scalar_prefetch = 0 : i64, scratch_operands = 0 : i64, tpu.core_type = #tpu.core_type<tc>, window_params = [{transform_indices = @transform_0, window_bounds = array<i64: 1, 8, 256>}, {pipeline_mode = #tpu.pipeline_mode<synchronous>, transform_indices = @transform_1, window_bounds = array<i64: 9, 256>}, {pipeline_mode = #tpu.pipeline_mode<synchronous>, transform_indices = @transform_2, window_bounds = array<i64: 8, 1>}, {pipeline_mode = #tpu.pipeline_mode<synchronous>, transform_indices = @transform_3, window_bounds = array<i64: 8, 1>}, {pipeline_mode = #tpu.pipeline_mode<synchronous>, transform_indices = @transform_4, window_bounds = array<i64: 8, 1>}, {pipeline_mode = #tpu.pipeline_mode<synchronous>, transform_indices = @transform_5, window_bounds = array<i64: 8, 1>}, {pipeline_mode = #tpu.pipeline_mode<synchronous>, transform_indices = @transform_6, window_bounds = array<i64: 9, 8, 1>}, {pipeline_mode = #tpu.pipeline_mode<synchronous>, transform_indices = @transform_7, window_bounds = array<i64: 9, 8, 1>}, {pipeline_mode = #tpu.pipeline_mode<synchronous>, transform_indices = @transform_8, window_bounds = array<i64: 8, 8>}, {pipeline_mode = #tpu.pipeline_mode<synchronous>, transform_indices = @transform_9, window_bounds = array<i64: 8, 8>}, {pipeline_mode = #tpu.pipeline_mode<synchronous>, transform_indices = @transform_10, window_bounds = array<i64: 8, 1>}, {pipeline_mode = #tpu.pipeline_mode<synchronous>, transform_indices = @transform_11, window_bounds = array<i64: 8, 1>}, {pipeline_mode = #tpu.pipeline_mode<synchronous>, transform_indices = @transform_12, window_bounds = array<i64: 8, 1>}, {pipeline_mode = #tpu.pipeline_mode<synchronous>, transform_indices = @transform_13, window_bounds = array<i64: 8, 1>}, {pipeline_mode = #tpu.pipeline_mode<synchronous>, transform_indices = @transform_14, window_bounds = array<i64: 9, 8, 1>}, {pipeline_mode = #tpu.pipeline_mode<synchronous>, transform_indices = @transform_15, window_bounds = array<i64: 9, 8, 1>}, {pipeline_mode = #tpu.pipeline_mode<synchronous>, transform_indices = @transform_16, window_bounds = array<i64: 8, 8>}, {pipeline_mode = #tpu.pipeline_mode<synchronous>, transform_indices = @transform_17, window_bounds = array<i64: 8, 8>}, {pipeline_mode = #tpu.pipeline_mode<synchronous>, transform_indices = @transform_18, window_bounds = array<i64: 8, 1>}, {pipeline_mode = #tpu.pipeline_mode<synchronous>, transform_indices = @transform_19, window_bounds = array<i64: 8, 1>}, {pipeline_mode = #tpu.pipeline_mode<synchronous>, transform_indices = @transform_20, window_bounds = array<i64: 8, 1>}, {pipeline_mode = #tpu.pipeline_mode<synchronous>, transform_indices = @transform_21, window_bounds = array<i64: 8, 1>}, {pipeline_mode = #tpu.pipeline_mode<synchronous>, transform_indices = @transform_22, window_bounds = array<i64: 9, 8, 1>}, {pipeline_mode = #tpu.pipeline_mode<synchronous>, transform_indices = @transform_23, window_bounds = array<i64: 9, 8, 1>}, {pipeline_mode = #tpu.pipeline_mode<synchronous>, transform_indices = @transform_24, window_bounds = array<i64: 8, 8>}, {pipeline_mode = #tpu.pipeline_mode<synchronous>, transform_indices = @transform_25, window_bounds = array<i64: 8, 8>}, {pipeline_mode = #tpu.pipeline_mode<synchronous>, transform_indices = @transform_26, window_bounds = array<i64: 8, 1>}, {pipeline_mode = #tpu.pipeline_mode<synchronous>, transform_indices = @transform_27, window_bounds = array<i64: 8, 1>}, {pipeline_mode = #tpu.pipeline_mode<synchronous>, transform_indices = @transform_28, window_bounds = array<i64: 8, 1>}, {pipeline_mode = #tpu.pipeline_mode<synchronous>, transform_indices = @transform_29, window_bounds = array<i64: 8, 1>}, {pipeline_mode = #tpu.pipeline_mode<synchronous>, transform_indices = @transform_30, window_bounds = array<i64: 9, 8, 1>}, {pipeline_mode = #tpu.pipeline_mode<synchronous>, transform_indices = @transform_31, window_bounds = array<i64: 9, 8, 1>}, {pipeline_mode = #tpu.pipeline_mode<synchronous>, transform_indices = @transform_32, window_bounds = array<i64: 8, 8>}, {pipeline_mode = #tpu.pipeline_mode<synchronous>, transform_indices = @transform_33, window_bounds = array<i64: 8, 8>}, {pipeline_mode = #tpu.pipeline_mode<synchronous>, transform_indices = @transform_34, window_bounds = array<i64: 8, 1>}, {pipeline_mode = #tpu.pipeline_mode<synchronous>, transform_indices = @transform_35, window_bounds = array<i64: 8, 1>}, {pipeline_mode = #tpu.pipeline_mode<synchronous>, transform_indices = @transform_36, window_bounds = array<i64: 8, 1>}, {pipeline_mode = #tpu.pipeline_mode<synchronous>, transform_indices = @transform_37, window_bounds = array<i64: 8, 1>}, {pipeline_mode = #tpu.pipeline_mode<synchronous>, transform_indices = @transform_38, window_bounds = array<i64: 9, 8, 1>}, {pipeline_mode = #tpu.pipeline_mode<synchronous>, transform_indices = @transform_39, window_bounds = array<i64: 9, 8, 1>}, {pipeline_mode = #tpu.pipeline_mode<synchronous>, transform_indices = @transform_40, window_bounds = array<i64: 8, 8>}, {pipeline_mode = #tpu.pipeline_mode<synchronous>, transform_indices = @transform_41, window_bounds = array<i64: 8, 8>}, {pipeline_mode = #tpu.pipeline_mode<synchronous>, transform_indices = @transform_42, window_bounds = array<i64: 8, 1>}, {pipeline_mode = #tpu.pipeline_mode<synchronous>, transform_indices = @transform_43, window_bounds = array<i64: 8, 1>}, {pipeline_mode = #tpu.pipeline_mode<synchronous>, transform_indices = @transform_44, window_bounds = array<i64: 8, 1>}, {pipeline_mode = #tpu.pipeline_mode<synchronous>, transform_indices = @transform_45, window_bounds = array<i64: 8, 1>}, {pipeline_mode = #tpu.pipeline_mode<synchronous>, transform_indices = @transform_46, window_bounds = array<i64: 9, 8, 1>}, {pipeline_mode = #tpu.pipeline_mode<synchronous>, transform_indices = @transform_47, window_bounds = array<i64: 9, 8, 1>}, {pipeline_mode = #tpu.pipeline_mode<synchronous>, transform_indices = @transform_48, window_bounds = array<i64: 8, 8>}, {pipeline_mode = #tpu.pipeline_mode<synchronous>, transform_indices = @transform_49, window_bounds = array<i64: 8, 8>}, {pipeline_mode = #tpu.pipeline_mode<synchronous>, transform_indices = @transform_50, window_bounds = array<i64: 8, 1>}, {pipeline_mode = #tpu.pipeline_mode<synchronous>, transform_indices = @transform_51, window_bounds = array<i64: 8, 1>}, {pipeline_mode = #tpu.pipeline_mode<synchronous>, transform_indices = @transform_52, window_bounds = array<i64: 8, 16>}, {pipeline_mode = #tpu.pipeline_mode<synchronous>, transform_indices = @transform_53, window_bounds = array<i64: 10, 1>}, {pipeline_mode = #tpu.pipeline_mode<synchronous>, transform_indices = @transform_54, window_bounds = array<i64: 10, 16>}, {pipeline_mode = #tpu.pipeline_mode<synchronous>, transform_indices = @transform_55, window_bounds = array<i64: 8, 1>}, {pipeline_mode = #tpu.pipeline_mode<synchronous>, transform_indices = @transform_56, window_bounds = array<i64: 8, 1>}, {pipeline_mode = #tpu.pipeline_mode<synchronous>, transform_indices = @transform_57, window_bounds = array<i64: 8, 72>}, {transform_indices = @transform_58, window_bounds = array<i64: 1, 10, 1>}]} {
    %c0 = arith.constant 0 : index
    %c0_0 = arith.constant 0 : index
    %0 = vector.load %arg2[%c0, %c0_0] : memref<9x256xf32, #tpu.memory_space<vmem>>, vector<1x256xf32>
    %c1 = arith.constant 1 : index
    %c0_1 = arith.constant 0 : index
    %1 = vector.load %arg2[%c1, %c0_1] : memref<9x256xf32, #tpu.memory_space<vmem>>, vector<1x256xf32>
    %c2 = arith.constant 2 : index
    %c0_2 = arith.constant 0 : index
    %2 = vector.load %arg2[%c2, %c0_2] : memref<9x256xf32, #tpu.memory_space<vmem>>, vector<1x256xf32>
    %c3 = arith.constant 3 : index
    %c0_3 = arith.constant 0 : index
    %3 = vector.load %arg2[%c3, %c0_3] : memref<9x256xf32, #tpu.memory_space<vmem>>, vector<1x256xf32>
    %c5 = arith.constant 5 : index
    %c0_4 = arith.constant 0 : index
    %4 = vector.load %arg2[%c5, %c0_4] : memref<9x256xf32, #tpu.memory_space<vmem>>, vector<1x256xf32>
    %c6 = arith.constant 6 : index
    %c0_5 = arith.constant 0 : index
    %5 = vector.load %arg2[%c6, %c0_5] : memref<9x256xf32, #tpu.memory_space<vmem>>, vector<1x256xf32>
    %c7 = arith.constant 7 : index
    %c0_6 = arith.constant 0 : index
    %6 = vector.load %arg2[%c7, %c0_6] : memref<9x256xf32, #tpu.memory_space<vmem>>, vector<1x256xf32>
    %c8 = arith.constant 8 : index
    %c0_7 = arith.constant 0 : index
    %7 = vector.load %arg2[%c8, %c0_7] : memref<9x256xf32, #tpu.memory_space<vmem>>, vector<1x256xf32>
    %c0_8 = arith.constant 0 : index
    %c0_9 = arith.constant 0 : index
    %c0_10 = arith.constant 0 : index
    %8 = vector.load %arg1[%c0_8, %c0_9, %c0_10] : memref<1x8x256xf32, #tpu.memory_space<vmem>>, vector<1x8x256xf32>
    %9 = vector.shape_cast %8 : vector<1x8x256xf32> to vector<8x256xf32>
    %10 = vector.extract_strided_slice %9 {offsets = [0, 239], sizes = [8, 17], strides = [1, 1]} : vector<8x256xf32> to vector<8x17xf32>
    %11 = vector.extract_strided_slice %9 {offsets = [0, 0], sizes = [8, 239], strides = [1, 1]} : vector<8x256xf32> to vector<8x239xf32>
    %12 = tpu.concatenate %10, %11 in 1 : vector<8x17xf32>, vector<8x239xf32> -> vector<8x256xf32>
    %13 = vector.broadcast %0 : vector<1x256xf32> to vector<8x256xf32>
    %14 = arith.mulf %12, %13 : vector<8x256xf32>
    %15 = vector.extract_strided_slice %9 {offsets = [0, 240], sizes = [8, 16], strides = [1, 1]} : vector<8x256xf32> to vector<8x16xf32>
    %16 = vector.extract_strided_slice %9 {offsets = [0, 0], sizes = [8, 240], strides = [1, 1]} : vector<8x256xf32> to vector<8x240xf32>
    %17 = tpu.concatenate %15, %16 in 1 : vector<8x16xf32>, vector<8x240xf32> -> vector<8x256xf32>
    %18 = vector.broadcast %1 : vector<1x256xf32> to vector<8x256xf32>
    %19 = arith.mulf %17, %18 : vector<8x256xf32>
    %20 = vector.extract_strided_slice %9 {offsets = [0, 241], sizes = [8, 15], strides = [1, 1]} : vector<8x256xf32> to vector<8x15xf32>
    %21 = vector.extract_strided_slice %9 {offsets = [0, 0], sizes = [8, 241], strides = [1, 1]} : vector<8x256xf32> to vector<8x241xf32>
    %22 = tpu.concatenate %20, %21 in 1 : vector<8x15xf32>, vector<8x241xf32> -> vector<8x256xf32>
    %23 = vector.broadcast %2 : vector<1x256xf32> to vector<8x256xf32>
    %24 = arith.mulf %22, %23 : vector<8x256xf32>
    %25 = vector.extract_strided_slice %9 {offsets = [0, 255], sizes = [8, 1], strides = [1, 1]} : vector<8x256xf32> to vector<8x1xf32>
    %26 = vector.extract_strided_slice %9 {offsets = [0, 0], sizes = [8, 255], strides = [1, 1]} : vector<8x256xf32> to vector<8x255xf32>
    %27 = tpu.concatenate %25, %26 in 1 : vector<8x1xf32>, vector<8x255xf32> -> vector<8x256xf32>
    %28 = vector.broadcast %3 : vector<1x256xf32> to vector<8x256xf32>
    %29 = arith.mulf %27, %28 : vector<8x256xf32>
    %30 = vector.extract_strided_slice %9 {offsets = [0, 1], sizes = [8, 255], strides = [1, 1]} : vector<8x256xf32> to vector<8x255xf32>
    %31 = vector.extract_strided_slice %9 {offsets = [0, 0], sizes = [8, 1], strides = [1, 1]} : vector<8x256xf32> to vector<8x1xf32>
    %32 = tpu.concatenate %30, %31 in 1 : vector<8x255xf32>, vector<8x1xf32> -> vector<8x256xf32>
    %33 = vector.broadcast %4 : vector<1x256xf32> to vector<8x256xf32>
    %34 = arith.mulf %32, %33 : vector<8x256xf32>
    %35 = vector.extract_strided_slice %9 {offsets = [0, 15], sizes = [8, 241], strides = [1, 1]} : vector<8x256xf32> to vector<8x241xf32>
    %36 = vector.extract_strided_slice %9 {offsets = [0, 0], sizes = [8, 15], strides = [1, 1]} : vector<8x256xf32> to vector<8x15xf32>
    %37 = tpu.concatenate %35, %36 in 1 : vector<8x241xf32>, vector<8x15xf32> -> vector<8x256xf32>
    %38 = vector.broadcast %5 : vector<1x256xf32> to vector<8x256xf32>
    %39 = arith.mulf %37, %38 : vector<8x256xf32>
    %40 = vector.extract_strided_slice %9 {offsets = [0, 16], sizes = [8, 240], strides = [1, 1]} : vector<8x256xf32> to vector<8x240xf32>
    %41 = vector.extract_strided_slice %9 {offsets = [0, 0], sizes = [8, 16], strides = [1, 1]} : vector<8x256xf32> to vector<8x16xf32>
    %42 = tpu.concatenate %40, %41 in 1 : vector<8x240xf32>, vector<8x16xf32> -> vector<8x256xf32>
    %43 = vector.broadcast %6 : vector<1x256xf32> to vector<8x256xf32>
    %44 = arith.mulf %42, %43 : vector<8x256xf32>
    %45 = vector.extract_strided_slice %9 {offsets = [0, 17], sizes = [8, 239], strides = [1, 1]} : vector<8x256xf32> to vector<8x239xf32>
    %46 = vector.extract_strided_slice %9 {offsets = [0, 0], sizes = [8, 17], strides = [1, 1]} : vector<8x256xf32> to vector<8x17xf32>
    %47 = tpu.concatenate %45, %46 in 1 : vector<8x239xf32>, vector<8x17xf32> -> vector<8x256xf32>
    %48 = vector.broadcast %7 : vector<1x256xf32> to vector<8x256xf32>
    %49 = arith.mulf %47, %48 : vector<8x256xf32>
    %50 = tpu.concatenate %14, %19, %24, %29, %9, %34, %39, %44, %49 in 0 : vector<8x256xf32>, vector<8x256xf32>, vector<8x256xf32>, vector<8x256xf32>, vector<8x256xf32>, vector<8x256xf32>, vector<8x256xf32>, vector<8x256xf32>, vector<8x256xf32> -> vector<72x256xf32>
    %c0_11 = arith.constant 0 : index
    %c0_12 = arith.constant 0 : index
    %51 = vector.load %arg58[%c0_11, %c0_12] : memref<8x72xbf16, #tpu.memory_space<vmem>>, vector<8x72xbf16>
    %52 = arith.truncf %50 : vector<72x256xf32> to vector<72x256xbf16>
    %cst = arith.constant dense<0.000000e+00> : vector<8x256xf32>
    %53 = tpu.matmul %51, %52, %cst {dimension_numbers = #tpu.dot_dimension_numbers<[1], [0], [0], [1], [0, 0, 1, 1], [], []>} : vector<8x72xbf16>, vector<72x256xbf16>, vector<8x256xf32> -> vector<8x256xf32>
    %c0_13 = arith.constant 0 : index
    %c0_14 = arith.constant 0 : index
    %54 = vector.load %arg57[%c0_13, %c0_14] : memref<8x1xf32, #tpu.memory_space<vmem>>, vector<8x1xf32>
    %55 = vector.broadcast %54 : vector<8x1xf32> to vector<8x256xf32>
    %56 = arith.mulf %53, %55 : vector<8x256xf32>
    %c0_15 = arith.constant 0 : index
    %c0_16 = arith.constant 0 : index
    %57 = vector.load %arg56[%c0_15, %c0_16] : memref<8x1xf32, #tpu.memory_space<vmem>>, vector<8x1xf32>
    %58 = vector.broadcast %57 : vector<8x1xf32> to vector<8x256xf32>
    %59 = arith.addf %56, %58 : vector<8x256xf32>
    %cst_17 = arith.constant 0.000000e+00 : f32
    %60 = vector.broadcast %cst_17 : f32 to vector<8x256xf32>
    %61 = arith.maximumf %59, %60 : vector<8x256xf32>
    %c0_18 = arith.constant 0 : index
    %c0_19 = arith.constant 0 : index
    %c0_20 = arith.constant 0 : index
    %62 = vector.load %arg7[%c0_18, %c0_19, %c0_20] : memref<9x8x1xf32, #tpu.memory_space<vmem>>, vector<9x8x1xf32>
    %63 = vector.extract_strided_slice %61 {offsets = [0, 239], sizes = [8, 17], strides = [1, 1]} : vector<8x256xf32> to vector<8x17xf32>
    %64 = vector.extract_strided_slice %61 {offsets = [0, 0], sizes = [8, 239], strides = [1, 1]} : vector<8x256xf32> to vector<8x239xf32>
    %65 = tpu.concatenate %63, %64 in 1 : vector<8x17xf32>, vector<8x239xf32> -> vector<8x256xf32>
    %66 = vector.broadcast %0 : vector<1x256xf32> to vector<8x256xf32>
    %67 = arith.mulf %65, %66 : vector<8x256xf32>
    %68 = vector.extract_strided_slice %62 {offsets = [0, 0, 0], sizes = [1, 8, 1], strides = [1, 1, 1]} : vector<9x8x1xf32> to vector<1x8x1xf32>
    %69 = vector.shape_cast %68 : vector<1x8x1xf32> to vector<8x1xf32>
    %70 = vector.broadcast %69 : vector<8x1xf32> to vector<8x256xf32>
    %71 = arith.mulf %67, %70 : vector<8x256xf32>
    %72 = vector.extract_strided_slice %61 {offsets = [0, 240], sizes = [8, 16], strides = [1, 1]} : vector<8x256xf32> to vector<8x16xf32>
    %73 = vector.extract_strided_slice %61 {offsets = [0, 0], sizes = [8, 240], strides = [1, 1]} : vector<8x256xf32> to vector<8x240xf32>
    %74 = tpu.concatenate %72, %73 in 1 : vector<8x16xf32>, vector<8x240xf32> -> vector<8x256xf32>
    %75 = vector.broadcast %1 : vector<1x256xf32> to vector<8x256xf32>
    %76 = arith.mulf %74, %75 : vector<8x256xf32>
    %77 = vector.extract_strided_slice %62 {offsets = [1, 0, 0], sizes = [1, 8, 1], strides = [1, 1, 1]} : vector<9x8x1xf32> to vector<1x8x1xf32>
    %78 = vector.shape_cast %77 : vector<1x8x1xf32> to vector<8x1xf32>
    %79 = vector.broadcast %78 : vector<8x1xf32> to vector<8x256xf32>
    %80 = arith.mulf %76, %79 : vector<8x256xf32>
    %81 = arith.addf %71, %80 : vector<8x256xf32>
    %82 = vector.extract_strided_slice %61 {offsets = [0, 241], sizes = [8, 15], strides = [1, 1]} : vector<8x256xf32> to vector<8x15xf32>
    %83 = vector.extract_strided_slice %61 {offsets = [0, 0], sizes = [8, 241], strides = [1, 1]} : vector<8x256xf32> to vector<8x241xf32>
    %84 = tpu.concatenate %82, %83 in 1 : vector<8x15xf32>, vector<8x241xf32> -> vector<8x256xf32>
    %85 = vector.broadcast %2 : vector<1x256xf32> to vector<8x256xf32>
    %86 = arith.mulf %84, %85 : vector<8x256xf32>
    %87 = vector.extract_strided_slice %62 {offsets = [2, 0, 0], sizes = [1, 8, 1], strides = [1, 1, 1]} : vector<9x8x1xf32> to vector<1x8x1xf32>
    %88 = vector.shape_cast %87 : vector<1x8x1xf32> to vector<8x1xf32>
    %89 = vector.broadcast %88 : vector<8x1xf32> to vector<8x256xf32>
    %90 = arith.mulf %86, %89 : vector<8x256xf32>
    %91 = arith.addf %81, %90 : vector<8x256xf32>
    %92 = vector.extract_strided_slice %61 {offsets = [0, 255], sizes = [8, 1], strides = [1, 1]} : vector<8x256xf32> to vector<8x1xf32>
    %93 = vector.extract_strided_slice %61 {offsets = [0, 0], sizes = [8, 255], strides = [1, 1]} : vector<8x256xf32> to vector<8x255xf32>
    %94 = tpu.concatenate %92, %93 in 1 : vector<8x1xf32>, vector<8x255xf32> -> vector<8x256xf32>
    %95 = vector.broadcast %3 : vector<1x256xf32> to vector<8x256xf32>
    %96 = arith.mulf %94, %95 : vector<8x256xf32>
    %97 = vector.extract_strided_slice %62 {offsets = [3, 0, 0], sizes = [1, 8, 1], strides = [1, 1, 1]} : vector<9x8x1xf32> to vector<1x8x1xf32>
    %98 = vector.shape_cast %97 : vector<1x8x1xf32> to vector<8x1xf32>
    %99 = vector.broadcast %98 : vector<8x1xf32> to vector<8x256xf32>
    %100 = arith.mulf %96, %99 : vector<8x256xf32>
    %101 = arith.addf %91, %100 : vector<8x256xf32>
    %102 = vector.extract_strided_slice %62 {offsets = [4, 0, 0], sizes = [1, 8, 1], strides = [1, 1, 1]} : vector<9x8x1xf32> to vector<1x8x1xf32>
    %103 = vector.shape_cast %102 : vector<1x8x1xf32> to vector<8x1xf32>
    %104 = vector.broadcast %103 : vector<8x1xf32> to vector<8x256xf32>
    %105 = arith.mulf %61, %104 : vector<8x256xf32>
    %106 = arith.addf %101, %105 : vector<8x256xf32>
    %107 = vector.extract_strided_slice %61 {offsets = [0, 1], sizes = [8, 255], strides = [1, 1]} : vector<8x256xf32> to vector<8x255xf32>
    %108 = vector.extract_strided_slice %61 {offsets = [0, 0], sizes = [8, 1], strides = [1, 1]} : vector<8x256xf32> to vector<8x1xf32>
    %109 = tpu.concatenate %107, %108 in 1 : vector<8x255xf32>, vector<8x1xf32> -> vector<8x256xf32>
    %110 = vector.broadcast %4 : vector<1x256xf32> to vector<8x256xf32>
    %111 = arith.mulf %109, %110 : vector<8x256xf32>
    %112 = vector.extract_strided_slice %62 {offsets = [5, 0, 0], sizes = [1, 8, 1], strides = [1, 1, 1]} : vector<9x8x1xf32> to vector<1x8x1xf32>
    %113 = vector.shape_cast %112 : vector<1x8x1xf32> to vector<8x1xf32>
    %114 = vector.broadcast %113 : vector<8x1xf32> to vector<8x256xf32>
    %115 = arith.mulf %111, %114 : vector<8x256xf32>
    %116 = arith.addf %106, %115 : vector<8x256xf32>
    %117 = vector.extract_strided_slice %61 {offsets = [0, 15], sizes = [8, 241], strides = [1, 1]} : vector<8x256xf32> to vector<8x241xf32>
    %118 = vector.extract_strided_slice %61 {offsets = [0, 0], sizes = [8, 15], strides = [1, 1]} : vector<8x256xf32> to vector<8x15xf32>
    %119 = tpu.concatenate %117, %118 in 1 : vector<8x241xf32>, vector<8x15xf32> -> vector<8x256xf32>
    %120 = vector.broadcast %5 : vector<1x256xf32> to vector<8x256xf32>
    %121 = arith.mulf %119, %120 : vector<8x256xf32>
    %122 = vector.extract_strided_slice %62 {offsets = [6, 0, 0], sizes = [1, 8, 1], strides = [1, 1, 1]} : vector<9x8x1xf32> to vector<1x8x1xf32>
    %123 = vector.shape_cast %122 : vector<1x8x1xf32> to vector<8x1xf32>
    %124 = vector.broadcast %123 : vector<8x1xf32> to vector<8x256xf32>
    %125 = arith.mulf %121, %124 : vector<8x256xf32>
    %126 = arith.addf %116, %125 : vector<8x256xf32>
    %127 = vector.extract_strided_slice %61 {offsets = [0, 16], sizes = [8, 240], strides = [1, 1]} : vector<8x256xf32> to vector<8x240xf32>
    %128 = vector.extract_strided_slice %61 {offsets = [0, 0], sizes = [8, 16], strides = [1, 1]} : vector<8x256xf32> to vector<8x16xf32>
    %129 = tpu.concatenate %127, %128 in 1 : vector<8x240xf32>, vector<8x16xf32> -> vector<8x256xf32>
    %130 = vector.broadcast %6 : vector<1x256xf32> to vector<8x256xf32>
    %131 = arith.mulf %129, %130 : vector<8x256xf32>
    %132 = vector.extract_strided_slice %62 {offsets = [7, 0, 0], sizes = [1, 8, 1], strides = [1, 1, 1]} : vector<9x8x1xf32> to vector<1x8x1xf32>
    %133 = vector.shape_cast %132 : vector<1x8x1xf32> to vector<8x1xf32>
    %134 = vector.broadcast %133 : vector<8x1xf32> to vector<8x256xf32>
    %135 = arith.mulf %131, %134 : vector<8x256xf32>
    %136 = arith.addf %126, %135 : vector<8x256xf32>
    %137 = vector.extract_strided_slice %61 {offsets = [0, 17], sizes = [8, 239], strides = [1, 1]} : vector<8x256xf32> to vector<8x239xf32>
    %138 = vector.extract_strided_slice %61 {offsets = [0, 0], sizes = [8, 17], strides = [1, 1]} : vector<8x256xf32> to vector<8x17xf32>
    %139 = tpu.concatenate %137, %138 in 1 : vector<8x239xf32>, vector<8x17xf32> -> vector<8x256xf32>
    %140 = vector.broadcast %7 : vector<1x256xf32> to vector<8x256xf32>
    %141 = arith.mulf %139, %140 : vector<8x256xf32>
    %142 = vector.extract_strided_slice %62 {offsets = [8, 0, 0], sizes = [1, 8, 1], strides = [1, 1, 1]} : vector<9x8x1xf32> to vector<1x8x1xf32>
    %143 = vector.shape_cast %142 : vector<1x8x1xf32> to vector<8x1xf32>
    %144 = vector.broadcast %143 : vector<8x1xf32> to vector<8x256xf32>
    %145 = arith.mulf %141, %144 : vector<8x256xf32>
    %146 = arith.addf %136, %145 : vector<8x256xf32>
    %c0_21 = arith.constant 0 : index
    %c0_22 = arith.constant 0 : index
    %147 = vector.load %arg9[%c0_21, %c0_22] : memref<8x8xbf16, #tpu.memory_space<vmem>>, vector<8x8xbf16>
    %148 = arith.truncf %146 : vector<8x256xf32> to vector<8x256xbf16>
    %cst_23 = arith.constant dense<0.000000e+00> : vector<8x256xf32>
    %149 = tpu.matmul %147, %148, %cst_23 {dimension_numbers = #tpu.dot_dimension_numbers<[1], [0], [0], [1], [0, 0, 1, 1], [], []>} : vector<8x8xbf16>, vector<8x256xbf16>, vector<8x256xf32> -> vector<8x256xf32>
    %c0_24 = arith.constant 0 : index
    %c0_25 = arith.constant 0 : index
    %150 = vector.load %arg4[%c0_24, %c0_25] : memref<8x1xf32, #tpu.memory_space<vmem>>, vector<8x1xf32>
    %151 = vector.broadcast %150 : vector<8x1xf32> to vector<8x256xf32>
    %152 = arith.mulf %149, %151 : vector<8x256xf32>
    %c0_26 = arith.constant 0 : index
    %c0_27 = arith.constant 0 : index
    %153 = vector.load %arg3[%c0_26, %c0_27] : memref<8x1xf32, #tpu.memory_space<vmem>>, vector<8x1xf32>
    %154 = vector.broadcast %153 : vector<8x1xf32> to vector<8x256xf32>
    %155 = arith.addf %152, %154 : vector<8x256xf32>
    %cst_28 = arith.constant 0.000000e+00 : f32
    %156 = vector.broadcast %cst_28 : f32 to vector<8x256xf32>
    %157 = arith.maximumf %155, %156 : vector<8x256xf32>
    %c0_29 = arith.constant 0 : index
    %c0_30 = arith.constant 0 : index
    %c0_31 = arith.constant 0 : index
    %158 = vector.load %arg8[%c0_29, %c0_30, %c0_31] : memref<9x8x1xf32, #tpu.memory_space<vmem>>, vector<9x8x1xf32>
    %159 = vector.extract_strided_slice %157 {offsets = [0, 239], sizes = [8, 17], strides = [1, 1]} : vector<8x256xf32> to vector<8x17xf32>
    %160 = vector.extract_strided_slice %157 {offsets = [0, 0], sizes = [8, 239], strides = [1, 1]} : vector<8x256xf32> to vector<8x239xf32>
    %161 = tpu.concatenate %159, %160 in 1 : vector<8x17xf32>, vector<8x239xf32> -> vector<8x256xf32>
    %162 = vector.broadcast %0 : vector<1x256xf32> to vector<8x256xf32>
    %163 = arith.mulf %161, %162 : vector<8x256xf32>
    %164 = vector.extract_strided_slice %158 {offsets = [0, 0, 0], sizes = [1, 8, 1], strides = [1, 1, 1]} : vector<9x8x1xf32> to vector<1x8x1xf32>
    %165 = vector.shape_cast %164 : vector<1x8x1xf32> to vector<8x1xf32>
    %166 = vector.broadcast %165 : vector<8x1xf32> to vector<8x256xf32>
    %167 = arith.mulf %163, %166 : vector<8x256xf32>
    %168 = vector.extract_strided_slice %157 {offsets = [0, 240], sizes = [8, 16], strides = [1, 1]} : vector<8x256xf32> to vector<8x16xf32>
    %169 = vector.extract_strided_slice %157 {offsets = [0, 0], sizes = [8, 240], strides = [1, 1]} : vector<8x256xf32> to vector<8x240xf32>
    %170 = tpu.concatenate %168, %169 in 1 : vector<8x16xf32>, vector<8x240xf32> -> vector<8x256xf32>
    %171 = vector.broadcast %1 : vector<1x256xf32> to vector<8x256xf32>
    %172 = arith.mulf %170, %171 : vector<8x256xf32>
    %173 = vector.extract_strided_slice %158 {offsets = [1, 0, 0], sizes = [1, 8, 1], strides = [1, 1, 1]} : vector<9x8x1xf32> to vector<1x8x1xf32>
    %174 = vector.shape_cast %173 : vector<1x8x1xf32> to vector<8x1xf32>
    %175 = vector.broadcast %174 : vector<8x1xf32> to vector<8x256xf32>
    %176 = arith.mulf %172, %175 : vector<8x256xf32>
    %177 = arith.addf %167, %176 : vector<8x256xf32>
    %178 = vector.extract_strided_slice %157 {offsets = [0, 241], sizes = [8, 15], strides = [1, 1]} : vector<8x256xf32> to vector<8x15xf32>
    %179 = vector.extract_strided_slice %157 {offsets = [0, 0], sizes = [8, 241], strides = [1, 1]} : vector<8x256xf32> to vector<8x241xf32>
    %180 = tpu.concatenate %178, %179 in 1 : vector<8x15xf32>, vector<8x241xf32> -> vector<8x256xf32>
    %181 = vector.broadcast %2 : vector<1x256xf32> to vector<8x256xf32>
    %182 = arith.mulf %180, %181 : vector<8x256xf32>
    %183 = vector.extract_strided_slice %158 {offsets = [2, 0, 0], sizes = [1, 8, 1], strides = [1, 1, 1]} : vector<9x8x1xf32> to vector<1x8x1xf32>
    %184 = vector.shape_cast %183 : vector<1x8x1xf32> to vector<8x1xf32>
    %185 = vector.broadcast %184 : vector<8x1xf32> to vector<8x256xf32>
    %186 = arith.mulf %182, %185 : vector<8x256xf32>
    %187 = arith.addf %177, %186 : vector<8x256xf32>
    %188 = vector.extract_strided_slice %157 {offsets = [0, 255], sizes = [8, 1], strides = [1, 1]} : vector<8x256xf32> to vector<8x1xf32>
    %189 = vector.extract_strided_slice %157 {offsets = [0, 0], sizes = [8, 255], strides = [1, 1]} : vector<8x256xf32> to vector<8x255xf32>
    %190 = tpu.concatenate %188, %189 in 1 : vector<8x1xf32>, vector<8x255xf32> -> vector<8x256xf32>
    %191 = vector.broadcast %3 : vector<1x256xf32> to vector<8x256xf32>
    %192 = arith.mulf %190, %191 : vector<8x256xf32>
    %193 = vector.extract_strided_slice %158 {offsets = [3, 0, 0], sizes = [1, 8, 1], strides = [1, 1, 1]} : vector<9x8x1xf32> to vector<1x8x1xf32>
    %194 = vector.shape_cast %193 : vector<1x8x1xf32> to vector<8x1xf32>
    %195 = vector.broadcast %194 : vector<8x1xf32> to vector<8x256xf32>
    %196 = arith.mulf %192, %195 : vector<8x256xf32>
    %197 = arith.addf %187, %196 : vector<8x256xf32>
    %198 = vector.extract_strided_slice %158 {offsets = [4, 0, 0], sizes = [1, 8, 1], strides = [1, 1, 1]} : vector<9x8x1xf32> to vector<1x8x1xf32>
    %199 = vector.shape_cast %198 : vector<1x8x1xf32> to vector<8x1xf32>
    %200 = vector.broadcast %199 : vector<8x1xf32> to vector<8x256xf32>
    %201 = arith.mulf %157, %200 : vector<8x256xf32>
    %202 = arith.addf %197, %201 : vector<8x256xf32>
    %203 = vector.extract_strided_slice %157 {offsets = [0, 1], sizes = [8, 255], strides = [1, 1]} : vector<8x256xf32> to vector<8x255xf32>
    %204 = vector.extract_strided_slice %157 {offsets = [0, 0], sizes = [8, 1], strides = [1, 1]} : vector<8x256xf32> to vector<8x1xf32>
    %205 = tpu.concatenate %203, %204 in 1 : vector<8x255xf32>, vector<8x1xf32> -> vector<8x256xf32>
    %206 = vector.broadcast %4 : vector<1x256xf32> to vector<8x256xf32>
    %207 = arith.mulf %205, %206 : vector<8x256xf32>
    %208 = vector.extract_strided_slice %158 {offsets = [5, 0, 0], sizes = [1, 8, 1], strides = [1, 1, 1]} : vector<9x8x1xf32> to vector<1x8x1xf32>
    %209 = vector.shape_cast %208 : vector<1x8x1xf32> to vector<8x1xf32>
    %210 = vector.broadcast %209 : vector<8x1xf32> to vector<8x256xf32>
    %211 = arith.mulf %207, %210 : vector<8x256xf32>
    %212 = arith.addf %202, %211 : vector<8x256xf32>
    %213 = vector.extract_strided_slice %157 {offsets = [0, 15], sizes = [8, 241], strides = [1, 1]} : vector<8x256xf32> to vector<8x241xf32>
    %214 = vector.extract_strided_slice %157 {offsets = [0, 0], sizes = [8, 15], strides = [1, 1]} : vector<8x256xf32> to vector<8x15xf32>
    %215 = tpu.concatenate %213, %214 in 1 : vector<8x241xf32>, vector<8x15xf32> -> vector<8x256xf32>
    %216 = vector.broadcast %5 : vector<1x256xf32> to vector<8x256xf32>
    %217 = arith.mulf %215, %216 : vector<8x256xf32>
    %218 = vector.extract_strided_slice %158 {offsets = [6, 0, 0], sizes = [1, 8, 1], strides = [1, 1, 1]} : vector<9x8x1xf32> to vector<1x8x1xf32>
    %219 = vector.shape_cast %218 : vector<1x8x1xf32> to vector<8x1xf32>
    %220 = vector.broadcast %219 : vector<8x1xf32> to vector<8x256xf32>
    %221 = arith.mulf %217, %220 : vector<8x256xf32>
    %222 = arith.addf %212, %221 : vector<8x256xf32>
    %223 = vector.extract_strided_slice %157 {offsets = [0, 16], sizes = [8, 240], strides = [1, 1]} : vector<8x256xf32> to vector<8x240xf32>
    %224 = vector.extract_strided_slice %157 {offsets = [0, 0], sizes = [8, 16], strides = [1, 1]} : vector<8x256xf32> to vector<8x16xf32>
    %225 = tpu.concatenate %223, %224 in 1 : vector<8x240xf32>, vector<8x16xf32> -> vector<8x256xf32>
    %226 = vector.broadcast %6 : vector<1x256xf32> to vector<8x256xf32>
    %227 = arith.mulf %225, %226 : vector<8x256xf32>
    %228 = vector.extract_strided_slice %158 {offsets = [7, 0, 0], sizes = [1, 8, 1], strides = [1, 1, 1]} : vector<9x8x1xf32> to vector<1x8x1xf32>
    %229 = vector.shape_cast %228 : vector<1x8x1xf32> to vector<8x1xf32>
    %230 = vector.broadcast %229 : vector<8x1xf32> to vector<8x256xf32>
    %231 = arith.mulf %227, %230 : vector<8x256xf32>
    %232 = arith.addf %222, %231 : vector<8x256xf32>
    %233 = vector.extract_strided_slice %157 {offsets = [0, 17], sizes = [8, 239], strides = [1, 1]} : vector<8x256xf32> to vector<8x239xf32>
    %234 = vector.extract_strided_slice %157 {offsets = [0, 0], sizes = [8, 17], strides = [1, 1]} : vector<8x256xf32> to vector<8x17xf32>
    %235 = tpu.concatenate %233, %234 in 1 : vector<8x239xf32>, vector<8x17xf32> -> vector<8x256xf32>
    %236 = vector.broadcast %7 : vector<1x256xf32> to vector<8x256xf32>
    %237 = arith.mulf %235, %236 : vector<8x256xf32>
    %238 = vector.extract_strided_slice %158 {offsets = [8, 0, 0], sizes = [1, 8, 1], strides = [1, 1, 1]} : vector<9x8x1xf32> to vector<1x8x1xf32>
    %239 = vector.shape_cast %238 : vector<1x8x1xf32> to vector<8x1xf32>
    %240 = vector.broadcast %239 : vector<8x1xf32> to vector<8x256xf32>
    %241 = arith.mulf %237, %240 : vector<8x256xf32>
    %242 = arith.addf %232, %241 : vector<8x256xf32>
    %c0_32 = arith.constant 0 : index
    %c0_33 = arith.constant 0 : index
    %243 = vector.load %arg10[%c0_32, %c0_33] : memref<8x8xbf16, #tpu.memory_space<vmem>>, vector<8x8xbf16>
    %244 = arith.truncf %242 : vector<8x256xf32> to vector<8x256xbf16>
    %cst_34 = arith.constant dense<0.000000e+00> : vector<8x256xf32>
    %245 = tpu.matmul %243, %244, %cst_34 {dimension_numbers = #tpu.dot_dimension_numbers<[1], [0], [0], [1], [0, 0, 1, 1], [], []>} : vector<8x8xbf16>, vector<8x256xbf16>, vector<8x256xf32> -> vector<8x256xf32>
    %c0_35 = arith.constant 0 : index
    %c0_36 = arith.constant 0 : index
    %246 = vector.load %arg6[%c0_35, %c0_36] : memref<8x1xf32, #tpu.memory_space<vmem>>, vector<8x1xf32>
    %247 = vector.broadcast %246 : vector<8x1xf32> to vector<8x256xf32>
    %248 = arith.mulf %245, %247 : vector<8x256xf32>
    %c0_37 = arith.constant 0 : index
    %c0_38 = arith.constant 0 : index
    %249 = vector.load %arg5[%c0_37, %c0_38] : memref<8x1xf32, #tpu.memory_space<vmem>>, vector<8x1xf32>
    %250 = vector.broadcast %249 : vector<8x1xf32> to vector<8x256xf32>
    %251 = arith.addf %248, %250 : vector<8x256xf32>
    %cst_39 = arith.constant 0.000000e+00 : f32
    %252 = vector.broadcast %cst_39 : f32 to vector<8x256xf32>
    %253 = arith.maximumf %251, %252 : vector<8x256xf32>
    %c0_40 = arith.constant 0 : index
    %c0_41 = arith.constant 0 : index
    %c0_42 = arith.constant 0 : index
    %254 = vector.load %arg23[%c0_40, %c0_41, %c0_42] : memref<9x8x1xf32, #tpu.memory_space<vmem>>, vector<9x8x1xf32>
    %255 = vector.extract_strided_slice %253 {offsets = [0, 239], sizes = [8, 17], strides = [1, 1]} : vector<8x256xf32> to vector<8x17xf32>
    %256 = vector.extract_strided_slice %253 {offsets = [0, 0], sizes = [8, 239], strides = [1, 1]} : vector<8x256xf32> to vector<8x239xf32>
    %257 = tpu.concatenate %255, %256 in 1 : vector<8x17xf32>, vector<8x239xf32> -> vector<8x256xf32>
    %258 = vector.broadcast %0 : vector<1x256xf32> to vector<8x256xf32>
    %259 = arith.mulf %257, %258 : vector<8x256xf32>
    %260 = vector.extract_strided_slice %254 {offsets = [0, 0, 0], sizes = [1, 8, 1], strides = [1, 1, 1]} : vector<9x8x1xf32> to vector<1x8x1xf32>
    %261 = vector.shape_cast %260 : vector<1x8x1xf32> to vector<8x1xf32>
    %262 = vector.broadcast %261 : vector<8x1xf32> to vector<8x256xf32>
    %263 = arith.mulf %259, %262 : vector<8x256xf32>
    %264 = vector.extract_strided_slice %253 {offsets = [0, 240], sizes = [8, 16], strides = [1, 1]} : vector<8x256xf32> to vector<8x16xf32>
    %265 = vector.extract_strided_slice %253 {offsets = [0, 0], sizes = [8, 240], strides = [1, 1]} : vector<8x256xf32> to vector<8x240xf32>
    %266 = tpu.concatenate %264, %265 in 1 : vector<8x16xf32>, vector<8x240xf32> -> vector<8x256xf32>
    %267 = vector.broadcast %1 : vector<1x256xf32> to vector<8x256xf32>
    %268 = arith.mulf %266, %267 : vector<8x256xf32>
    %269 = vector.extract_strided_slice %254 {offsets = [1, 0, 0], sizes = [1, 8, 1], strides = [1, 1, 1]} : vector<9x8x1xf32> to vector<1x8x1xf32>
    %270 = vector.shape_cast %269 : vector<1x8x1xf32> to vector<8x1xf32>
    %271 = vector.broadcast %270 : vector<8x1xf32> to vector<8x256xf32>
    %272 = arith.mulf %268, %271 : vector<8x256xf32>
    %273 = arith.addf %263, %272 : vector<8x256xf32>
    %274 = vector.extract_strided_slice %253 {offsets = [0, 241], sizes = [8, 15], strides = [1, 1]} : vector<8x256xf32> to vector<8x15xf32>
    %275 = vector.extract_strided_slice %253 {offsets = [0, 0], sizes = [8, 241], strides = [1, 1]} : vector<8x256xf32> to vector<8x241xf32>
    %276 = tpu.concatenate %274, %275 in 1 : vector<8x15xf32>, vector<8x241xf32> -> vector<8x256xf32>
    %277 = vector.broadcast %2 : vector<1x256xf32> to vector<8x256xf32>
    %278 = arith.mulf %276, %277 : vector<8x256xf32>
    %279 = vector.extract_strided_slice %254 {offsets = [2, 0, 0], sizes = [1, 8, 1], strides = [1, 1, 1]} : vector<9x8x1xf32> to vector<1x8x1xf32>
    %280 = vector.shape_cast %279 : vector<1x8x1xf32> to vector<8x1xf32>
    %281 = vector.broadcast %280 : vector<8x1xf32> to vector<8x256xf32>
    %282 = arith.mulf %278, %281 : vector<8x256xf32>
    %283 = arith.addf %273, %282 : vector<8x256xf32>
    %284 = vector.extract_strided_slice %253 {offsets = [0, 255], sizes = [8, 1], strides = [1, 1]} : vector<8x256xf32> to vector<8x1xf32>
    %285 = vector.extract_strided_slice %253 {offsets = [0, 0], sizes = [8, 255], strides = [1, 1]} : vector<8x256xf32> to vector<8x255xf32>
    %286 = tpu.concatenate %284, %285 in 1 : vector<8x1xf32>, vector<8x255xf32> -> vector<8x256xf32>
    %287 = vector.broadcast %3 : vector<1x256xf32> to vector<8x256xf32>
    %288 = arith.mulf %286, %287 : vector<8x256xf32>
    %289 = vector.extract_strided_slice %254 {offsets = [3, 0, 0], sizes = [1, 8, 1], strides = [1, 1, 1]} : vector<9x8x1xf32> to vector<1x8x1xf32>
    %290 = vector.shape_cast %289 : vector<1x8x1xf32> to vector<8x1xf32>
    %291 = vector.broadcast %290 : vector<8x1xf32> to vector<8x256xf32>
    %292 = arith.mulf %288, %291 : vector<8x256xf32>
    %293 = arith.addf %283, %292 : vector<8x256xf32>
    %294 = vector.extract_strided_slice %254 {offsets = [4, 0, 0], sizes = [1, 8, 1], strides = [1, 1, 1]} : vector<9x8x1xf32> to vector<1x8x1xf32>
    %295 = vector.shape_cast %294 : vector<1x8x1xf32> to vector<8x1xf32>
    %296 = vector.broadcast %295 : vector<8x1xf32> to vector<8x256xf32>
    %297 = arith.mulf %253, %296 : vector<8x256xf32>
    %298 = arith.addf %293, %297 : vector<8x256xf32>
    %299 = vector.extract_strided_slice %253 {offsets = [0, 1], sizes = [8, 255], strides = [1, 1]} : vector<8x256xf32> to vector<8x255xf32>
    %300 = vector.extract_strided_slice %253 {offsets = [0, 0], sizes = [8, 1], strides = [1, 1]} : vector<8x256xf32> to vector<8x1xf32>
    %301 = tpu.concatenate %299, %300 in 1 : vector<8x255xf32>, vector<8x1xf32> -> vector<8x256xf32>
    %302 = vector.broadcast %4 : vector<1x256xf32> to vector<8x256xf32>
    %303 = arith.mulf %301, %302 : vector<8x256xf32>
    %304 = vector.extract_strided_slice %254 {offsets = [5, 0, 0], sizes = [1, 8, 1], strides = [1, 1, 1]} : vector<9x8x1xf32> to vector<1x8x1xf32>
    %305 = vector.shape_cast %304 : vector<1x8x1xf32> to vector<8x1xf32>
    %306 = vector.broadcast %305 : vector<8x1xf32> to vector<8x256xf32>
    %307 = arith.mulf %303, %306 : vector<8x256xf32>
    %308 = arith.addf %298, %307 : vector<8x256xf32>
    %309 = vector.extract_strided_slice %253 {offsets = [0, 15], sizes = [8, 241], strides = [1, 1]} : vector<8x256xf32> to vector<8x241xf32>
    %310 = vector.extract_strided_slice %253 {offsets = [0, 0], sizes = [8, 15], strides = [1, 1]} : vector<8x256xf32> to vector<8x15xf32>
    %311 = tpu.concatenate %309, %310 in 1 : vector<8x241xf32>, vector<8x15xf32> -> vector<8x256xf32>
    %312 = vector.broadcast %5 : vector<1x256xf32> to vector<8x256xf32>
    %313 = arith.mulf %311, %312 : vector<8x256xf32>
    %314 = vector.extract_strided_slice %254 {offsets = [6, 0, 0], sizes = [1, 8, 1], strides = [1, 1, 1]} : vector<9x8x1xf32> to vector<1x8x1xf32>
    %315 = vector.shape_cast %314 : vector<1x8x1xf32> to vector<8x1xf32>
    %316 = vector.broadcast %315 : vector<8x1xf32> to vector<8x256xf32>
    %317 = arith.mulf %313, %316 : vector<8x256xf32>
    %318 = arith.addf %308, %317 : vector<8x256xf32>
    %319 = vector.extract_strided_slice %253 {offsets = [0, 16], sizes = [8, 240], strides = [1, 1]} : vector<8x256xf32> to vector<8x240xf32>
    %320 = vector.extract_strided_slice %253 {offsets = [0, 0], sizes = [8, 16], strides = [1, 1]} : vector<8x256xf32> to vector<8x16xf32>
    %321 = tpu.concatenate %319, %320 in 1 : vector<8x240xf32>, vector<8x16xf32> -> vector<8x256xf32>
    %322 = vector.broadcast %6 : vector<1x256xf32> to vector<8x256xf32>
    %323 = arith.mulf %321, %322 : vector<8x256xf32>
    %324 = vector.extract_strided_slice %254 {offsets = [7, 0, 0], sizes = [1, 8, 1], strides = [1, 1, 1]} : vector<9x8x1xf32> to vector<1x8x1xf32>
    %325 = vector.shape_cast %324 : vector<1x8x1xf32> to vector<8x1xf32>
    %326 = vector.broadcast %325 : vector<8x1xf32> to vector<8x256xf32>
    %327 = arith.mulf %323, %326 : vector<8x256xf32>
    %328 = arith.addf %318, %327 : vector<8x256xf32>
    %329 = vector.extract_strided_slice %253 {offsets = [0, 17], sizes = [8, 239], strides = [1, 1]} : vector<8x256xf32> to vector<8x239xf32>
    %330 = vector.extract_strided_slice %253 {offsets = [0, 0], sizes = [8, 17], strides = [1, 1]} : vector<8x256xf32> to vector<8x17xf32>
    %331 = tpu.concatenate %329, %330 in 1 : vector<8x239xf32>, vector<8x17xf32> -> vector<8x256xf32>
    %332 = vector.broadcast %7 : vector<1x256xf32> to vector<8x256xf32>
    %333 = arith.mulf %331, %332 : vector<8x256xf32>
    %334 = vector.extract_strided_slice %254 {offsets = [8, 0, 0], sizes = [1, 8, 1], strides = [1, 1, 1]} : vector<9x8x1xf32> to vector<1x8x1xf32>
    %335 = vector.shape_cast %334 : vector<1x8x1xf32> to vector<8x1xf32>
    %336 = vector.broadcast %335 : vector<8x1xf32> to vector<8x256xf32>
    %337 = arith.mulf %333, %336 : vector<8x256xf32>
    %338 = arith.addf %328, %337 : vector<8x256xf32>
    %c0_43 = arith.constant 0 : index
    %c0_44 = arith.constant 0 : index
    %339 = vector.load %arg25[%c0_43, %c0_44] : memref<8x8xbf16, #tpu.memory_space<vmem>>, vector<8x8xbf16>
    %340 = arith.truncf %338 : vector<8x256xf32> to vector<8x256xbf16>
    %cst_45 = arith.constant dense<0.000000e+00> : vector<8x256xf32>
    %341 = tpu.matmul %339, %340, %cst_45 {dimension_numbers = #tpu.dot_dimension_numbers<[1], [0], [0], [1], [0, 0, 1, 1], [], []>} : vector<8x8xbf16>, vector<8x256xbf16>, vector<8x256xf32> -> vector<8x256xf32>
    %c0_46 = arith.constant 0 : index
    %c0_47 = arith.constant 0 : index
    %342 = vector.load %arg20[%c0_46, %c0_47] : memref<8x1xf32, #tpu.memory_space<vmem>>, vector<8x1xf32>
    %343 = vector.broadcast %342 : vector<8x1xf32> to vector<8x256xf32>
    %344 = arith.mulf %341, %343 : vector<8x256xf32>
    %c0_48 = arith.constant 0 : index
    %c0_49 = arith.constant 0 : index
    %345 = vector.load %arg19[%c0_48, %c0_49] : memref<8x1xf32, #tpu.memory_space<vmem>>, vector<8x1xf32>
    %346 = vector.broadcast %345 : vector<8x1xf32> to vector<8x256xf32>
    %347 = arith.addf %344, %346 : vector<8x256xf32>
    %cst_50 = arith.constant 0.000000e+00 : f32
    %348 = vector.broadcast %cst_50 : f32 to vector<8x256xf32>
    %349 = arith.maximumf %347, %348 : vector<8x256xf32>
    %c0_51 = arith.constant 0 : index
    %c0_52 = arith.constant 0 : index
    %c0_53 = arith.constant 0 : index
    %350 = vector.load %arg24[%c0_51, %c0_52, %c0_53] : memref<9x8x1xf32, #tpu.memory_space<vmem>>, vector<9x8x1xf32>
    %351 = vector.extract_strided_slice %349 {offsets = [0, 239], sizes = [8, 17], strides = [1, 1]} : vector<8x256xf32> to vector<8x17xf32>
    %352 = vector.extract_strided_slice %349 {offsets = [0, 0], sizes = [8, 239], strides = [1, 1]} : vector<8x256xf32> to vector<8x239xf32>
    %353 = tpu.concatenate %351, %352 in 1 : vector<8x17xf32>, vector<8x239xf32> -> vector<8x256xf32>
    %354 = vector.broadcast %0 : vector<1x256xf32> to vector<8x256xf32>
    %355 = arith.mulf %353, %354 : vector<8x256xf32>
    %356 = vector.extract_strided_slice %350 {offsets = [0, 0, 0], sizes = [1, 8, 1], strides = [1, 1, 1]} : vector<9x8x1xf32> to vector<1x8x1xf32>
    %357 = vector.shape_cast %356 : vector<1x8x1xf32> to vector<8x1xf32>
    %358 = vector.broadcast %357 : vector<8x1xf32> to vector<8x256xf32>
    %359 = arith.mulf %355, %358 : vector<8x256xf32>
    %360 = vector.extract_strided_slice %349 {offsets = [0, 240], sizes = [8, 16], strides = [1, 1]} : vector<8x256xf32> to vector<8x16xf32>
    %361 = vector.extract_strided_slice %349 {offsets = [0, 0], sizes = [8, 240], strides = [1, 1]} : vector<8x256xf32> to vector<8x240xf32>
    %362 = tpu.concatenate %360, %361 in 1 : vector<8x16xf32>, vector<8x240xf32> -> vector<8x256xf32>
    %363 = vector.broadcast %1 : vector<1x256xf32> to vector<8x256xf32>
    %364 = arith.mulf %362, %363 : vector<8x256xf32>
    %365 = vector.extract_strided_slice %350 {offsets = [1, 0, 0], sizes = [1, 8, 1], strides = [1, 1, 1]} : vector<9x8x1xf32> to vector<1x8x1xf32>
    %366 = vector.shape_cast %365 : vector<1x8x1xf32> to vector<8x1xf32>
    %367 = vector.broadcast %366 : vector<8x1xf32> to vector<8x256xf32>
    %368 = arith.mulf %364, %367 : vector<8x256xf32>
    %369 = arith.addf %359, %368 : vector<8x256xf32>
    %370 = vector.extract_strided_slice %349 {offsets = [0, 241], sizes = [8, 15], strides = [1, 1]} : vector<8x256xf32> to vector<8x15xf32>
    %371 = vector.extract_strided_slice %349 {offsets = [0, 0], sizes = [8, 241], strides = [1, 1]} : vector<8x256xf32> to vector<8x241xf32>
    %372 = tpu.concatenate %370, %371 in 1 : vector<8x15xf32>, vector<8x241xf32> -> vector<8x256xf32>
    %373 = vector.broadcast %2 : vector<1x256xf32> to vector<8x256xf32>
    %374 = arith.mulf %372, %373 : vector<8x256xf32>
    %375 = vector.extract_strided_slice %350 {offsets = [2, 0, 0], sizes = [1, 8, 1], strides = [1, 1, 1]} : vector<9x8x1xf32> to vector<1x8x1xf32>
    %376 = vector.shape_cast %375 : vector<1x8x1xf32> to vector<8x1xf32>
    %377 = vector.broadcast %376 : vector<8x1xf32> to vector<8x256xf32>
    %378 = arith.mulf %374, %377 : vector<8x256xf32>
    %379 = arith.addf %369, %378 : vector<8x256xf32>
    %380 = vector.extract_strided_slice %349 {offsets = [0, 255], sizes = [8, 1], strides = [1, 1]} : vector<8x256xf32> to vector<8x1xf32>
    %381 = vector.extract_strided_slice %349 {offsets = [0, 0], sizes = [8, 255], strides = [1, 1]} : vector<8x256xf32> to vector<8x255xf32>
    %382 = tpu.concatenate %380, %381 in 1 : vector<8x1xf32>, vector<8x255xf32> -> vector<8x256xf32>
    %383 = vector.broadcast %3 : vector<1x256xf32> to vector<8x256xf32>
    %384 = arith.mulf %382, %383 : vector<8x256xf32>
    %385 = vector.extract_strided_slice %350 {offsets = [3, 0, 0], sizes = [1, 8, 1], strides = [1, 1, 1]} : vector<9x8x1xf32> to vector<1x8x1xf32>
    %386 = vector.shape_cast %385 : vector<1x8x1xf32> to vector<8x1xf32>
    %387 = vector.broadcast %386 : vector<8x1xf32> to vector<8x256xf32>
    %388 = arith.mulf %384, %387 : vector<8x256xf32>
    %389 = arith.addf %379, %388 : vector<8x256xf32>
    %390 = vector.extract_strided_slice %350 {offsets = [4, 0, 0], sizes = [1, 8, 1], strides = [1, 1, 1]} : vector<9x8x1xf32> to vector<1x8x1xf32>
    %391 = vector.shape_cast %390 : vector<1x8x1xf32> to vector<8x1xf32>
    %392 = vector.broadcast %391 : vector<8x1xf32> to vector<8x256xf32>
    %393 = arith.mulf %349, %392 : vector<8x256xf32>
    %394 = arith.addf %389, %393 : vector<8x256xf32>
    %395 = vector.extract_strided_slice %349 {offsets = [0, 1], sizes = [8, 255], strides = [1, 1]} : vector<8x256xf32> to vector<8x255xf32>
    %396 = vector.extract_strided_slice %349 {offsets = [0, 0], sizes = [8, 1], strides = [1, 1]} : vector<8x256xf32> to vector<8x1xf32>
    %397 = tpu.concatenate %395, %396 in 1 : vector<8x255xf32>, vector<8x1xf32> -> vector<8x256xf32>
    %398 = vector.broadcast %4 : vector<1x256xf32> to vector<8x256xf32>
    %399 = arith.mulf %397, %398 : vector<8x256xf32>
    %400 = vector.extract_strided_slice %350 {offsets = [5, 0, 0], sizes = [1, 8, 1], strides = [1, 1, 1]} : vector<9x8x1xf32> to vector<1x8x1xf32>
    %401 = vector.shape_cast %400 : vector<1x8x1xf32> to vector<8x1xf32>
    %402 = vector.broadcast %401 : vector<8x1xf32> to vector<8x256xf32>
    %403 = arith.mulf %399, %402 : vector<8x256xf32>
    %404 = arith.addf %394, %403 : vector<8x256xf32>
    %405 = vector.extract_strided_slice %349 {offsets = [0, 15], sizes = [8, 241], strides = [1, 1]} : vector<8x256xf32> to vector<8x241xf32>
    %406 = vector.extract_strided_slice %349 {offsets = [0, 0], sizes = [8, 15], strides = [1, 1]} : vector<8x256xf32> to vector<8x15xf32>
    %407 = tpu.concatenate %405, %406 in 1 : vector<8x241xf32>, vector<8x15xf32> -> vector<8x256xf32>
    %408 = vector.broadcast %5 : vector<1x256xf32> to vector<8x256xf32>
    %409 = arith.mulf %407, %408 : vector<8x256xf32>
    %410 = vector.extract_strided_slice %350 {offsets = [6, 0, 0], sizes = [1, 8, 1], strides = [1, 1, 1]} : vector<9x8x1xf32> to vector<1x8x1xf32>
    %411 = vector.shape_cast %410 : vector<1x8x1xf32> to vector<8x1xf32>
    %412 = vector.broadcast %411 : vector<8x1xf32> to vector<8x256xf32>
    %413 = arith.mulf %409, %412 : vector<8x256xf32>
    %414 = arith.addf %404, %413 : vector<8x256xf32>
    %415 = vector.extract_strided_slice %349 {offsets = [0, 16], sizes = [8, 240], strides = [1, 1]} : vector<8x256xf32> to vector<8x240xf32>
    %416 = vector.extract_strided_slice %349 {offsets = [0, 0], sizes = [8, 16], strides = [1, 1]} : vector<8x256xf32> to vector<8x16xf32>
    %417 = tpu.concatenate %415, %416 in 1 : vector<8x240xf32>, vector<8x16xf32> -> vector<8x256xf32>
    %418 = vector.broadcast %6 : vector<1x256xf32> to vector<8x256xf32>
    %419 = arith.mulf %417, %418 : vector<8x256xf32>
    %420 = vector.extract_strided_slice %350 {offsets = [7, 0, 0], sizes = [1, 8, 1], strides = [1, 1, 1]} : vector<9x8x1xf32> to vector<1x8x1xf32>
    %421 = vector.shape_cast %420 : vector<1x8x1xf32> to vector<8x1xf32>
    %422 = vector.broadcast %421 : vector<8x1xf32> to vector<8x256xf32>
    %423 = arith.mulf %419, %422 : vector<8x256xf32>
    %424 = arith.addf %414, %423 : vector<8x256xf32>
    %425 = vector.extract_strided_slice %349 {offsets = [0, 17], sizes = [8, 239], strides = [1, 1]} : vector<8x256xf32> to vector<8x239xf32>
    %426 = vector.extract_strided_slice %349 {offsets = [0, 0], sizes = [8, 17], strides = [1, 1]} : vector<8x256xf32> to vector<8x17xf32>
    %427 = tpu.concatenate %425, %426 in 1 : vector<8x239xf32>, vector<8x17xf32> -> vector<8x256xf32>
    %428 = vector.broadcast %7 : vector<1x256xf32> to vector<8x256xf32>
    %429 = arith.mulf %427, %428 : vector<8x256xf32>
    %430 = vector.extract_strided_slice %350 {offsets = [8, 0, 0], sizes = [1, 8, 1], strides = [1, 1, 1]} : vector<9x8x1xf32> to vector<1x8x1xf32>
    %431 = vector.shape_cast %430 : vector<1x8x1xf32> to vector<8x1xf32>
    %432 = vector.broadcast %431 : vector<8x1xf32> to vector<8x256xf32>
    %433 = arith.mulf %429, %432 : vector<8x256xf32>
    %434 = arith.addf %424, %433 : vector<8x256xf32>
    %c0_54 = arith.constant 0 : index
    %c0_55 = arith.constant 0 : index
    %435 = vector.load %arg26[%c0_54, %c0_55] : memref<8x8xbf16, #tpu.memory_space<vmem>>, vector<8x8xbf16>
    %436 = arith.truncf %434 : vector<8x256xf32> to vector<8x256xbf16>
    %cst_56 = arith.constant dense<0.000000e+00> : vector<8x256xf32>
    %437 = tpu.matmul %435, %436, %cst_56 {dimension_numbers = #tpu.dot_dimension_numbers<[1], [0], [0], [1], [0, 0, 1, 1], [], []>} : vector<8x8xbf16>, vector<8x256xbf16>, vector<8x256xf32> -> vector<8x256xf32>
    %c0_57 = arith.constant 0 : index
    %c0_58 = arith.constant 0 : index
    %438 = vector.load %arg22[%c0_57, %c0_58] : memref<8x1xf32, #tpu.memory_space<vmem>>, vector<8x1xf32>
    %439 = vector.broadcast %438 : vector<8x1xf32> to vector<8x256xf32>
    %440 = arith.mulf %437, %439 : vector<8x256xf32>
    %c0_59 = arith.constant 0 : index
    %c0_60 = arith.constant 0 : index
    %441 = vector.load %arg21[%c0_59, %c0_60] : memref<8x1xf32, #tpu.memory_space<vmem>>, vector<8x1xf32>
    %442 = vector.broadcast %441 : vector<8x1xf32> to vector<8x256xf32>
    %443 = arith.addf %440, %442 : vector<8x256xf32>
    %444 = arith.addf %443, %251 : vector<8x256xf32>
    %445 = arith.addf %59, %444 : vector<8x256xf32>
    %446 = tpu.concatenate %251, %445 in 0 : vector<8x256xf32>, vector<8x256xf32> -> vector<16x256xf32>
    %cst_61 = arith.constant 0.000000e+00 : f32
    %447 = vector.broadcast %cst_61 : f32 to vector<16x256xf32>
    %448 = arith.maximumf %446, %447 : vector<16x256xf32>
    %c0_62 = arith.constant 0 : index
    %c0_63 = arith.constant 0 : index
    %449 = vector.load %arg53[%c0_62, %c0_63] : memref<8x16xbf16, #tpu.memory_space<vmem>>, vector<8x16xbf16>
    %450 = arith.truncf %448 : vector<16x256xf32> to vector<16x256xbf16>
    %cst_64 = arith.constant dense<0.000000e+00> : vector<8x256xf32>
    %451 = tpu.matmul %449, %450, %cst_64 {dimension_numbers = #tpu.dot_dimension_numbers<[1], [0], [0], [1], [0, 0, 1, 1], [], []>} : vector<8x16xbf16>, vector<16x256xbf16>, vector<8x256xf32> -> vector<8x256xf32>
    %c0_65 = arith.constant 0 : index
    %c0_66 = arith.constant 0 : index
    %452 = vector.load %arg52[%c0_65, %c0_66] : memref<8x1xf32, #tpu.memory_space<vmem>>, vector<8x1xf32>
    %453 = vector.broadcast %452 : vector<8x1xf32> to vector<8x256xf32>
    %454 = arith.mulf %451, %453 : vector<8x256xf32>
    %c0_67 = arith.constant 0 : index
    %c0_68 = arith.constant 0 : index
    %455 = vector.load %arg51[%c0_67, %c0_68] : memref<8x1xf32, #tpu.memory_space<vmem>>, vector<8x1xf32>
    %456 = vector.broadcast %455 : vector<8x1xf32> to vector<8x256xf32>
    %457 = arith.addf %454, %456 : vector<8x256xf32>
    %cst_69 = arith.constant 0.000000e+00 : f32
    %458 = vector.broadcast %cst_69 : f32 to vector<8x256xf32>
    %459 = arith.maximumf %457, %458 : vector<8x256xf32>
    %c0_70 = arith.constant 0 : index
    %c0_71 = arith.constant 0 : index
    %c0_72 = arith.constant 0 : index
    %460 = vector.load %arg31[%c0_70, %c0_71, %c0_72] : memref<9x8x1xf32, #tpu.memory_space<vmem>>, vector<9x8x1xf32>
    %461 = vector.extract_strided_slice %459 {offsets = [0, 239], sizes = [8, 17], strides = [1, 1]} : vector<8x256xf32> to vector<8x17xf32>
    %462 = vector.extract_strided_slice %459 {offsets = [0, 0], sizes = [8, 239], strides = [1, 1]} : vector<8x256xf32> to vector<8x239xf32>
    %463 = tpu.concatenate %461, %462 in 1 : vector<8x17xf32>, vector<8x239xf32> -> vector<8x256xf32>
    %464 = vector.broadcast %0 : vector<1x256xf32> to vector<8x256xf32>
    %465 = arith.mulf %463, %464 : vector<8x256xf32>
    %466 = vector.extract_strided_slice %460 {offsets = [0, 0, 0], sizes = [1, 8, 1], strides = [1, 1, 1]} : vector<9x8x1xf32> to vector<1x8x1xf32>
    %467 = vector.shape_cast %466 : vector<1x8x1xf32> to vector<8x1xf32>
    %468 = vector.broadcast %467 : vector<8x1xf32> to vector<8x256xf32>
    %469 = arith.mulf %465, %468 : vector<8x256xf32>
    %470 = vector.extract_strided_slice %459 {offsets = [0, 240], sizes = [8, 16], strides = [1, 1]} : vector<8x256xf32> to vector<8x16xf32>
    %471 = vector.extract_strided_slice %459 {offsets = [0, 0], sizes = [8, 240], strides = [1, 1]} : vector<8x256xf32> to vector<8x240xf32>
    %472 = tpu.concatenate %470, %471 in 1 : vector<8x16xf32>, vector<8x240xf32> -> vector<8x256xf32>
    %473 = vector.broadcast %1 : vector<1x256xf32> to vector<8x256xf32>
    %474 = arith.mulf %472, %473 : vector<8x256xf32>
    %475 = vector.extract_strided_slice %460 {offsets = [1, 0, 0], sizes = [1, 8, 1], strides = [1, 1, 1]} : vector<9x8x1xf32> to vector<1x8x1xf32>
    %476 = vector.shape_cast %475 : vector<1x8x1xf32> to vector<8x1xf32>
    %477 = vector.broadcast %476 : vector<8x1xf32> to vector<8x256xf32>
    %478 = arith.mulf %474, %477 : vector<8x256xf32>
    %479 = arith.addf %469, %478 : vector<8x256xf32>
    %480 = vector.extract_strided_slice %459 {offsets = [0, 241], sizes = [8, 15], strides = [1, 1]} : vector<8x256xf32> to vector<8x15xf32>
    %481 = vector.extract_strided_slice %459 {offsets = [0, 0], sizes = [8, 241], strides = [1, 1]} : vector<8x256xf32> to vector<8x241xf32>
    %482 = tpu.concatenate %480, %481 in 1 : vector<8x15xf32>, vector<8x241xf32> -> vector<8x256xf32>
    %483 = vector.broadcast %2 : vector<1x256xf32> to vector<8x256xf32>
    %484 = arith.mulf %482, %483 : vector<8x256xf32>
    %485 = vector.extract_strided_slice %460 {offsets = [2, 0, 0], sizes = [1, 8, 1], strides = [1, 1, 1]} : vector<9x8x1xf32> to vector<1x8x1xf32>
    %486 = vector.shape_cast %485 : vector<1x8x1xf32> to vector<8x1xf32>
    %487 = vector.broadcast %486 : vector<8x1xf32> to vector<8x256xf32>
    %488 = arith.mulf %484, %487 : vector<8x256xf32>
    %489 = arith.addf %479, %488 : vector<8x256xf32>
    %490 = vector.extract_strided_slice %459 {offsets = [0, 255], sizes = [8, 1], strides = [1, 1]} : vector<8x256xf32> to vector<8x1xf32>
    %491 = vector.extract_strided_slice %459 {offsets = [0, 0], sizes = [8, 255], strides = [1, 1]} : vector<8x256xf32> to vector<8x255xf32>
    %492 = tpu.concatenate %490, %491 in 1 : vector<8x1xf32>, vector<8x255xf32> -> vector<8x256xf32>
    %493 = vector.broadcast %3 : vector<1x256xf32> to vector<8x256xf32>
    %494 = arith.mulf %492, %493 : vector<8x256xf32>
    %495 = vector.extract_strided_slice %460 {offsets = [3, 0, 0], sizes = [1, 8, 1], strides = [1, 1, 1]} : vector<9x8x1xf32> to vector<1x8x1xf32>
    %496 = vector.shape_cast %495 : vector<1x8x1xf32> to vector<8x1xf32>
    %497 = vector.broadcast %496 : vector<8x1xf32> to vector<8x256xf32>
    %498 = arith.mulf %494, %497 : vector<8x256xf32>
    %499 = arith.addf %489, %498 : vector<8x256xf32>
    %500 = vector.extract_strided_slice %460 {offsets = [4, 0, 0], sizes = [1, 8, 1], strides = [1, 1, 1]} : vector<9x8x1xf32> to vector<1x8x1xf32>
    %501 = vector.shape_cast %500 : vector<1x8x1xf32> to vector<8x1xf32>
    %502 = vector.broadcast %501 : vector<8x1xf32> to vector<8x256xf32>
    %503 = arith.mulf %459, %502 : vector<8x256xf32>
    %504 = arith.addf %499, %503 : vector<8x256xf32>
    %505 = vector.extract_strided_slice %459 {offsets = [0, 1], sizes = [8, 255], strides = [1, 1]} : vector<8x256xf32> to vector<8x255xf32>
    %506 = vector.extract_strided_slice %459 {offsets = [0, 0], sizes = [8, 1], strides = [1, 1]} : vector<8x256xf32> to vector<8x1xf32>
    %507 = tpu.concatenate %505, %506 in 1 : vector<8x255xf32>, vector<8x1xf32> -> vector<8x256xf32>
    %508 = vector.broadcast %4 : vector<1x256xf32> to vector<8x256xf32>
    %509 = arith.mulf %507, %508 : vector<8x256xf32>
    %510 = vector.extract_strided_slice %460 {offsets = [5, 0, 0], sizes = [1, 8, 1], strides = [1, 1, 1]} : vector<9x8x1xf32> to vector<1x8x1xf32>
    %511 = vector.shape_cast %510 : vector<1x8x1xf32> to vector<8x1xf32>
    %512 = vector.broadcast %511 : vector<8x1xf32> to vector<8x256xf32>
    %513 = arith.mulf %509, %512 : vector<8x256xf32>
    %514 = arith.addf %504, %513 : vector<8x256xf32>
    %515 = vector.extract_strided_slice %459 {offsets = [0, 15], sizes = [8, 241], strides = [1, 1]} : vector<8x256xf32> to vector<8x241xf32>
    %516 = vector.extract_strided_slice %459 {offsets = [0, 0], sizes = [8, 15], strides = [1, 1]} : vector<8x256xf32> to vector<8x15xf32>
    %517 = tpu.concatenate %515, %516 in 1 : vector<8x241xf32>, vector<8x15xf32> -> vector<8x256xf32>
    %518 = vector.broadcast %5 : vector<1x256xf32> to vector<8x256xf32>
    %519 = arith.mulf %517, %518 : vector<8x256xf32>
    %520 = vector.extract_strided_slice %460 {offsets = [6, 0, 0], sizes = [1, 8, 1], strides = [1, 1, 1]} : vector<9x8x1xf32> to vector<1x8x1xf32>
    %521 = vector.shape_cast %520 : vector<1x8x1xf32> to vector<8x1xf32>
    %522 = vector.broadcast %521 : vector<8x1xf32> to vector<8x256xf32>
    %523 = arith.mulf %519, %522 : vector<8x256xf32>
    %524 = arith.addf %514, %523 : vector<8x256xf32>
    %525 = vector.extract_strided_slice %459 {offsets = [0, 16], sizes = [8, 240], strides = [1, 1]} : vector<8x256xf32> to vector<8x240xf32>
    %526 = vector.extract_strided_slice %459 {offsets = [0, 0], sizes = [8, 16], strides = [1, 1]} : vector<8x256xf32> to vector<8x16xf32>
    %527 = tpu.concatenate %525, %526 in 1 : vector<8x240xf32>, vector<8x16xf32> -> vector<8x256xf32>
    %528 = vector.broadcast %6 : vector<1x256xf32> to vector<8x256xf32>
    %529 = arith.mulf %527, %528 : vector<8x256xf32>
    %530 = vector.extract_strided_slice %460 {offsets = [7, 0, 0], sizes = [1, 8, 1], strides = [1, 1, 1]} : vector<9x8x1xf32> to vector<1x8x1xf32>
    %531 = vector.shape_cast %530 : vector<1x8x1xf32> to vector<8x1xf32>
    %532 = vector.broadcast %531 : vector<8x1xf32> to vector<8x256xf32>
    %533 = arith.mulf %529, %532 : vector<8x256xf32>
    %534 = arith.addf %524, %533 : vector<8x256xf32>
    %535 = vector.extract_strided_slice %459 {offsets = [0, 17], sizes = [8, 239], strides = [1, 1]} : vector<8x256xf32> to vector<8x239xf32>
    %536 = vector.extract_strided_slice %459 {offsets = [0, 0], sizes = [8, 17], strides = [1, 1]} : vector<8x256xf32> to vector<8x17xf32>
    %537 = tpu.concatenate %535, %536 in 1 : vector<8x239xf32>, vector<8x17xf32> -> vector<8x256xf32>
    %538 = vector.broadcast %7 : vector<1x256xf32> to vector<8x256xf32>
    %539 = arith.mulf %537, %538 : vector<8x256xf32>
    %540 = vector.extract_strided_slice %460 {offsets = [8, 0, 0], sizes = [1, 8, 1], strides = [1, 1, 1]} : vector<9x8x1xf32> to vector<1x8x1xf32>
    %541 = vector.shape_cast %540 : vector<1x8x1xf32> to vector<8x1xf32>
    %542 = vector.broadcast %541 : vector<8x1xf32> to vector<8x256xf32>
    %543 = arith.mulf %539, %542 : vector<8x256xf32>
    %544 = arith.addf %534, %543 : vector<8x256xf32>
    %c0_73 = arith.constant 0 : index
    %c0_74 = arith.constant 0 : index
    %545 = vector.load %arg33[%c0_73, %c0_74] : memref<8x8xbf16, #tpu.memory_space<vmem>>, vector<8x8xbf16>
    %546 = arith.truncf %544 : vector<8x256xf32> to vector<8x256xbf16>
    %cst_75 = arith.constant dense<0.000000e+00> : vector<8x256xf32>
    %547 = tpu.matmul %545, %546, %cst_75 {dimension_numbers = #tpu.dot_dimension_numbers<[1], [0], [0], [1], [0, 0, 1, 1], [], []>} : vector<8x8xbf16>, vector<8x256xbf16>, vector<8x256xf32> -> vector<8x256xf32>
    %c0_76 = arith.constant 0 : index
    %c0_77 = arith.constant 0 : index
    %548 = vector.load %arg28[%c0_76, %c0_77] : memref<8x1xf32, #tpu.memory_space<vmem>>, vector<8x1xf32>
    %549 = vector.broadcast %548 : vector<8x1xf32> to vector<8x256xf32>
    %550 = arith.mulf %547, %549 : vector<8x256xf32>
    %c0_78 = arith.constant 0 : index
    %c0_79 = arith.constant 0 : index
    %551 = vector.load %arg27[%c0_78, %c0_79] : memref<8x1xf32, #tpu.memory_space<vmem>>, vector<8x1xf32>
    %552 = vector.broadcast %551 : vector<8x1xf32> to vector<8x256xf32>
    %553 = arith.addf %550, %552 : vector<8x256xf32>
    %cst_80 = arith.constant 0.000000e+00 : f32
    %554 = vector.broadcast %cst_80 : f32 to vector<8x256xf32>
    %555 = arith.maximumf %553, %554 : vector<8x256xf32>
    %c0_81 = arith.constant 0 : index
    %c0_82 = arith.constant 0 : index
    %c0_83 = arith.constant 0 : index
    %556 = vector.load %arg32[%c0_81, %c0_82, %c0_83] : memref<9x8x1xf32, #tpu.memory_space<vmem>>, vector<9x8x1xf32>
    %557 = vector.extract_strided_slice %555 {offsets = [0, 239], sizes = [8, 17], strides = [1, 1]} : vector<8x256xf32> to vector<8x17xf32>
    %558 = vector.extract_strided_slice %555 {offsets = [0, 0], sizes = [8, 239], strides = [1, 1]} : vector<8x256xf32> to vector<8x239xf32>
    %559 = tpu.concatenate %557, %558 in 1 : vector<8x17xf32>, vector<8x239xf32> -> vector<8x256xf32>
    %560 = vector.broadcast %0 : vector<1x256xf32> to vector<8x256xf32>
    %561 = arith.mulf %559, %560 : vector<8x256xf32>
    %562 = vector.extract_strided_slice %556 {offsets = [0, 0, 0], sizes = [1, 8, 1], strides = [1, 1, 1]} : vector<9x8x1xf32> to vector<1x8x1xf32>
    %563 = vector.shape_cast %562 : vector<1x8x1xf32> to vector<8x1xf32>
    %564 = vector.broadcast %563 : vector<8x1xf32> to vector<8x256xf32>
    %565 = arith.mulf %561, %564 : vector<8x256xf32>
    %566 = vector.extract_strided_slice %555 {offsets = [0, 240], sizes = [8, 16], strides = [1, 1]} : vector<8x256xf32> to vector<8x16xf32>
    %567 = vector.extract_strided_slice %555 {offsets = [0, 0], sizes = [8, 240], strides = [1, 1]} : vector<8x256xf32> to vector<8x240xf32>
    %568 = tpu.concatenate %566, %567 in 1 : vector<8x16xf32>, vector<8x240xf32> -> vector<8x256xf32>
    %569 = vector.broadcast %1 : vector<1x256xf32> to vector<8x256xf32>
    %570 = arith.mulf %568, %569 : vector<8x256xf32>
    %571 = vector.extract_strided_slice %556 {offsets = [1, 0, 0], sizes = [1, 8, 1], strides = [1, 1, 1]} : vector<9x8x1xf32> to vector<1x8x1xf32>
    %572 = vector.shape_cast %571 : vector<1x8x1xf32> to vector<8x1xf32>
    %573 = vector.broadcast %572 : vector<8x1xf32> to vector<8x256xf32>
    %574 = arith.mulf %570, %573 : vector<8x256xf32>
    %575 = arith.addf %565, %574 : vector<8x256xf32>
    %576 = vector.extract_strided_slice %555 {offsets = [0, 241], sizes = [8, 15], strides = [1, 1]} : vector<8x256xf32> to vector<8x15xf32>
    %577 = vector.extract_strided_slice %555 {offsets = [0, 0], sizes = [8, 241], strides = [1, 1]} : vector<8x256xf32> to vector<8x241xf32>
    %578 = tpu.concatenate %576, %577 in 1 : vector<8x15xf32>, vector<8x241xf32> -> vector<8x256xf32>
    %579 = vector.broadcast %2 : vector<1x256xf32> to vector<8x256xf32>
    %580 = arith.mulf %578, %579 : vector<8x256xf32>
    %581 = vector.extract_strided_slice %556 {offsets = [2, 0, 0], sizes = [1, 8, 1], strides = [1, 1, 1]} : vector<9x8x1xf32> to vector<1x8x1xf32>
    %582 = vector.shape_cast %581 : vector<1x8x1xf32> to vector<8x1xf32>
    %583 = vector.broadcast %582 : vector<8x1xf32> to vector<8x256xf32>
    %584 = arith.mulf %580, %583 : vector<8x256xf32>
    %585 = arith.addf %575, %584 : vector<8x256xf32>
    %586 = vector.extract_strided_slice %555 {offsets = [0, 255], sizes = [8, 1], strides = [1, 1]} : vector<8x256xf32> to vector<8x1xf32>
    %587 = vector.extract_strided_slice %555 {offsets = [0, 0], sizes = [8, 255], strides = [1, 1]} : vector<8x256xf32> to vector<8x255xf32>
    %588 = tpu.concatenate %586, %587 in 1 : vector<8x1xf32>, vector<8x255xf32> -> vector<8x256xf32>
    %589 = vector.broadcast %3 : vector<1x256xf32> to vector<8x256xf32>
    %590 = arith.mulf %588, %589 : vector<8x256xf32>
    %591 = vector.extract_strided_slice %556 {offsets = [3, 0, 0], sizes = [1, 8, 1], strides = [1, 1, 1]} : vector<9x8x1xf32> to vector<1x8x1xf32>
    %592 = vector.shape_cast %591 : vector<1x8x1xf32> to vector<8x1xf32>
    %593 = vector.broadcast %592 : vector<8x1xf32> to vector<8x256xf32>
    %594 = arith.mulf %590, %593 : vector<8x256xf32>
    %595 = arith.addf %585, %594 : vector<8x256xf32>
    %596 = vector.extract_strided_slice %556 {offsets = [4, 0, 0], sizes = [1, 8, 1], strides = [1, 1, 1]} : vector<9x8x1xf32> to vector<1x8x1xf32>
    %597 = vector.shape_cast %596 : vector<1x8x1xf32> to vector<8x1xf32>
    %598 = vector.broadcast %597 : vector<8x1xf32> to vector<8x256xf32>
    %599 = arith.mulf %555, %598 : vector<8x256xf32>
    %600 = arith.addf %595, %599 : vector<8x256xf32>
    %601 = vector.extract_strided_slice %555 {offsets = [0, 1], sizes = [8, 255], strides = [1, 1]} : vector<8x256xf32> to vector<8x255xf32>
    %602 = vector.extract_strided_slice %555 {offsets = [0, 0], sizes = [8, 1], strides = [1, 1]} : vector<8x256xf32> to vector<8x1xf32>
    %603 = tpu.concatenate %601, %602 in 1 : vector<8x255xf32>, vector<8x1xf32> -> vector<8x256xf32>
    %604 = vector.broadcast %4 : vector<1x256xf32> to vector<8x256xf32>
    %605 = arith.mulf %603, %604 : vector<8x256xf32>
    %606 = vector.extract_strided_slice %556 {offsets = [5, 0, 0], sizes = [1, 8, 1], strides = [1, 1, 1]} : vector<9x8x1xf32> to vector<1x8x1xf32>
    %607 = vector.shape_cast %606 : vector<1x8x1xf32> to vector<8x1xf32>
    %608 = vector.broadcast %607 : vector<8x1xf32> to vector<8x256xf32>
    %609 = arith.mulf %605, %608 : vector<8x256xf32>
    %610 = arith.addf %600, %609 : vector<8x256xf32>
    %611 = vector.extract_strided_slice %555 {offsets = [0, 15], sizes = [8, 241], strides = [1, 1]} : vector<8x256xf32> to vector<8x241xf32>
    %612 = vector.extract_strided_slice %555 {offsets = [0, 0], sizes = [8, 15], strides = [1, 1]} : vector<8x256xf32> to vector<8x15xf32>
    %613 = tpu.concatenate %611, %612 in 1 : vector<8x241xf32>, vector<8x15xf32> -> vector<8x256xf32>
    %614 = vector.broadcast %5 : vector<1x256xf32> to vector<8x256xf32>
    %615 = arith.mulf %613, %614 : vector<8x256xf32>
    %616 = vector.extract_strided_slice %556 {offsets = [6, 0, 0], sizes = [1, 8, 1], strides = [1, 1, 1]} : vector<9x8x1xf32> to vector<1x8x1xf32>
    %617 = vector.shape_cast %616 : vector<1x8x1xf32> to vector<8x1xf32>
    %618 = vector.broadcast %617 : vector<8x1xf32> to vector<8x256xf32>
    %619 = arith.mulf %615, %618 : vector<8x256xf32>
    %620 = arith.addf %610, %619 : vector<8x256xf32>
    %621 = vector.extract_strided_slice %555 {offsets = [0, 16], sizes = [8, 240], strides = [1, 1]} : vector<8x256xf32> to vector<8x240xf32>
    %622 = vector.extract_strided_slice %555 {offsets = [0, 0], sizes = [8, 16], strides = [1, 1]} : vector<8x256xf32> to vector<8x16xf32>
    %623 = tpu.concatenate %621, %622 in 1 : vector<8x240xf32>, vector<8x16xf32> -> vector<8x256xf32>
    %624 = vector.broadcast %6 : vector<1x256xf32> to vector<8x256xf32>
    %625 = arith.mulf %623, %624 : vector<8x256xf32>
    %626 = vector.extract_strided_slice %556 {offsets = [7, 0, 0], sizes = [1, 8, 1], strides = [1, 1, 1]} : vector<9x8x1xf32> to vector<1x8x1xf32>
    %627 = vector.shape_cast %626 : vector<1x8x1xf32> to vector<8x1xf32>
    %628 = vector.broadcast %627 : vector<8x1xf32> to vector<8x256xf32>
    %629 = arith.mulf %625, %628 : vector<8x256xf32>
    %630 = arith.addf %620, %629 : vector<8x256xf32>
    %631 = vector.extract_strided_slice %555 {offsets = [0, 17], sizes = [8, 239], strides = [1, 1]} : vector<8x256xf32> to vector<8x239xf32>
    %632 = vector.extract_strided_slice %555 {offsets = [0, 0], sizes = [8, 17], strides = [1, 1]} : vector<8x256xf32> to vector<8x17xf32>
    %633 = tpu.concatenate %631, %632 in 1 : vector<8x239xf32>, vector<8x17xf32> -> vector<8x256xf32>
    %634 = vector.broadcast %7 : vector<1x256xf32> to vector<8x256xf32>
    %635 = arith.mulf %633, %634 : vector<8x256xf32>
    %636 = vector.extract_strided_slice %556 {offsets = [8, 0, 0], sizes = [1, 8, 1], strides = [1, 1, 1]} : vector<9x8x1xf32> to vector<1x8x1xf32>
    %637 = vector.shape_cast %636 : vector<1x8x1xf32> to vector<8x1xf32>
    %638 = vector.broadcast %637 : vector<8x1xf32> to vector<8x256xf32>
    %639 = arith.mulf %635, %638 : vector<8x256xf32>
    %640 = arith.addf %630, %639 : vector<8x256xf32>
    %c0_84 = arith.constant 0 : index
    %c0_85 = arith.constant 0 : index
    %641 = vector.load %arg34[%c0_84, %c0_85] : memref<8x8xbf16, #tpu.memory_space<vmem>>, vector<8x8xbf16>
    %642 = arith.truncf %640 : vector<8x256xf32> to vector<8x256xbf16>
    %cst_86 = arith.constant dense<0.000000e+00> : vector<8x256xf32>
    %643 = tpu.matmul %641, %642, %cst_86 {dimension_numbers = #tpu.dot_dimension_numbers<[1], [0], [0], [1], [0, 0, 1, 1], [], []>} : vector<8x8xbf16>, vector<8x256xbf16>, vector<8x256xf32> -> vector<8x256xf32>
    %c0_87 = arith.constant 0 : index
    %c0_88 = arith.constant 0 : index
    %644 = vector.load %arg30[%c0_87, %c0_88] : memref<8x1xf32, #tpu.memory_space<vmem>>, vector<8x1xf32>
    %645 = vector.broadcast %644 : vector<8x1xf32> to vector<8x256xf32>
    %646 = arith.mulf %643, %645 : vector<8x256xf32>
    %c0_89 = arith.constant 0 : index
    %c0_90 = arith.constant 0 : index
    %647 = vector.load %arg29[%c0_89, %c0_90] : memref<8x1xf32, #tpu.memory_space<vmem>>, vector<8x1xf32>
    %648 = vector.broadcast %647 : vector<8x1xf32> to vector<8x256xf32>
    %649 = arith.addf %646, %648 : vector<8x256xf32>
    %650 = arith.addf %649, %457 : vector<8x256xf32>
    %cst_91 = arith.constant 0.000000e+00 : f32
    %651 = vector.broadcast %cst_91 : f32 to vector<8x256xf32>
    %652 = arith.maximumf %457, %651 : vector<8x256xf32>
    %c0_92 = arith.constant 0 : index
    %c0_93 = arith.constant 0 : index
    %c0_94 = arith.constant 0 : index
    %653 = vector.load %arg39[%c0_92, %c0_93, %c0_94] : memref<9x8x1xf32, #tpu.memory_space<vmem>>, vector<9x8x1xf32>
    %654 = vector.extract_strided_slice %652 {offsets = [0, 239], sizes = [8, 17], strides = [1, 1]} : vector<8x256xf32> to vector<8x17xf32>
    %655 = vector.extract_strided_slice %652 {offsets = [0, 0], sizes = [8, 239], strides = [1, 1]} : vector<8x256xf32> to vector<8x239xf32>
    %656 = tpu.concatenate %654, %655 in 1 : vector<8x17xf32>, vector<8x239xf32> -> vector<8x256xf32>
    %657 = vector.broadcast %0 : vector<1x256xf32> to vector<8x256xf32>
    %658 = arith.mulf %656, %657 : vector<8x256xf32>
    %659 = vector.extract_strided_slice %653 {offsets = [0, 0, 0], sizes = [1, 8, 1], strides = [1, 1, 1]} : vector<9x8x1xf32> to vector<1x8x1xf32>
    %660 = vector.shape_cast %659 : vector<1x8x1xf32> to vector<8x1xf32>
    %661 = vector.broadcast %660 : vector<8x1xf32> to vector<8x256xf32>
    %662 = arith.mulf %658, %661 : vector<8x256xf32>
    %663 = vector.extract_strided_slice %652 {offsets = [0, 240], sizes = [8, 16], strides = [1, 1]} : vector<8x256xf32> to vector<8x16xf32>
    %664 = vector.extract_strided_slice %652 {offsets = [0, 0], sizes = [8, 240], strides = [1, 1]} : vector<8x256xf32> to vector<8x240xf32>
    %665 = tpu.concatenate %663, %664 in 1 : vector<8x16xf32>, vector<8x240xf32> -> vector<8x256xf32>
    %666 = vector.broadcast %1 : vector<1x256xf32> to vector<8x256xf32>
    %667 = arith.mulf %665, %666 : vector<8x256xf32>
    %668 = vector.extract_strided_slice %653 {offsets = [1, 0, 0], sizes = [1, 8, 1], strides = [1, 1, 1]} : vector<9x8x1xf32> to vector<1x8x1xf32>
    %669 = vector.shape_cast %668 : vector<1x8x1xf32> to vector<8x1xf32>
    %670 = vector.broadcast %669 : vector<8x1xf32> to vector<8x256xf32>
    %671 = arith.mulf %667, %670 : vector<8x256xf32>
    %672 = arith.addf %662, %671 : vector<8x256xf32>
    %673 = vector.extract_strided_slice %652 {offsets = [0, 241], sizes = [8, 15], strides = [1, 1]} : vector<8x256xf32> to vector<8x15xf32>
    %674 = vector.extract_strided_slice %652 {offsets = [0, 0], sizes = [8, 241], strides = [1, 1]} : vector<8x256xf32> to vector<8x241xf32>
    %675 = tpu.concatenate %673, %674 in 1 : vector<8x15xf32>, vector<8x241xf32> -> vector<8x256xf32>
    %676 = vector.broadcast %2 : vector<1x256xf32> to vector<8x256xf32>
    %677 = arith.mulf %675, %676 : vector<8x256xf32>
    %678 = vector.extract_strided_slice %653 {offsets = [2, 0, 0], sizes = [1, 8, 1], strides = [1, 1, 1]} : vector<9x8x1xf32> to vector<1x8x1xf32>
    %679 = vector.shape_cast %678 : vector<1x8x1xf32> to vector<8x1xf32>
    %680 = vector.broadcast %679 : vector<8x1xf32> to vector<8x256xf32>
    %681 = arith.mulf %677, %680 : vector<8x256xf32>
    %682 = arith.addf %672, %681 : vector<8x256xf32>
    %683 = vector.extract_strided_slice %652 {offsets = [0, 255], sizes = [8, 1], strides = [1, 1]} : vector<8x256xf32> to vector<8x1xf32>
    %684 = vector.extract_strided_slice %652 {offsets = [0, 0], sizes = [8, 255], strides = [1, 1]} : vector<8x256xf32> to vector<8x255xf32>
    %685 = tpu.concatenate %683, %684 in 1 : vector<8x1xf32>, vector<8x255xf32> -> vector<8x256xf32>
    %686 = vector.broadcast %3 : vector<1x256xf32> to vector<8x256xf32>
    %687 = arith.mulf %685, %686 : vector<8x256xf32>
    %688 = vector.extract_strided_slice %653 {offsets = [3, 0, 0], sizes = [1, 8, 1], strides = [1, 1, 1]} : vector<9x8x1xf32> to vector<1x8x1xf32>
    %689 = vector.shape_cast %688 : vector<1x8x1xf32> to vector<8x1xf32>
    %690 = vector.broadcast %689 : vector<8x1xf32> to vector<8x256xf32>
    %691 = arith.mulf %687, %690 : vector<8x256xf32>
    %692 = arith.addf %682, %691 : vector<8x256xf32>
    %693 = vector.extract_strided_slice %653 {offsets = [4, 0, 0], sizes = [1, 8, 1], strides = [1, 1, 1]} : vector<9x8x1xf32> to vector<1x8x1xf32>
    %694 = vector.shape_cast %693 : vector<1x8x1xf32> to vector<8x1xf32>
    %695 = vector.broadcast %694 : vector<8x1xf32> to vector<8x256xf32>
    %696 = arith.mulf %652, %695 : vector<8x256xf32>
    %697 = arith.addf %692, %696 : vector<8x256xf32>
    %698 = vector.extract_strided_slice %652 {offsets = [0, 1], sizes = [8, 255], strides = [1, 1]} : vector<8x256xf32> to vector<8x255xf32>
    %699 = vector.extract_strided_slice %652 {offsets = [0, 0], sizes = [8, 1], strides = [1, 1]} : vector<8x256xf32> to vector<8x1xf32>
    %700 = tpu.concatenate %698, %699 in 1 : vector<8x255xf32>, vector<8x1xf32> -> vector<8x256xf32>
    %701 = vector.broadcast %4 : vector<1x256xf32> to vector<8x256xf32>
    %702 = arith.mulf %700, %701 : vector<8x256xf32>
    %703 = vector.extract_strided_slice %653 {offsets = [5, 0, 0], sizes = [1, 8, 1], strides = [1, 1, 1]} : vector<9x8x1xf32> to vector<1x8x1xf32>
    %704 = vector.shape_cast %703 : vector<1x8x1xf32> to vector<8x1xf32>
    %705 = vector.broadcast %704 : vector<8x1xf32> to vector<8x256xf32>
    %706 = arith.mulf %702, %705 : vector<8x256xf32>
    %707 = arith.addf %697, %706 : vector<8x256xf32>
    %708 = vector.extract_strided_slice %652 {offsets = [0, 15], sizes = [8, 241], strides = [1, 1]} : vector<8x256xf32> to vector<8x241xf32>
    %709 = vector.extract_strided_slice %652 {offsets = [0, 0], sizes = [8, 15], strides = [1, 1]} : vector<8x256xf32> to vector<8x15xf32>
    %710 = tpu.concatenate %708, %709 in 1 : vector<8x241xf32>, vector<8x15xf32> -> vector<8x256xf32>
    %711 = vector.broadcast %5 : vector<1x256xf32> to vector<8x256xf32>
    %712 = arith.mulf %710, %711 : vector<8x256xf32>
    %713 = vector.extract_strided_slice %653 {offsets = [6, 0, 0], sizes = [1, 8, 1], strides = [1, 1, 1]} : vector<9x8x1xf32> to vector<1x8x1xf32>
    %714 = vector.shape_cast %713 : vector<1x8x1xf32> to vector<8x1xf32>
    %715 = vector.broadcast %714 : vector<8x1xf32> to vector<8x256xf32>
    %716 = arith.mulf %712, %715 : vector<8x256xf32>
    %717 = arith.addf %707, %716 : vector<8x256xf32>
    %718 = vector.extract_strided_slice %652 {offsets = [0, 16], sizes = [8, 240], strides = [1, 1]} : vector<8x256xf32> to vector<8x240xf32>
    %719 = vector.extract_strided_slice %652 {offsets = [0, 0], sizes = [8, 16], strides = [1, 1]} : vector<8x256xf32> to vector<8x16xf32>
    %720 = tpu.concatenate %718, %719 in 1 : vector<8x240xf32>, vector<8x16xf32> -> vector<8x256xf32>
    %721 = vector.broadcast %6 : vector<1x256xf32> to vector<8x256xf32>
    %722 = arith.mulf %720, %721 : vector<8x256xf32>
    %723 = vector.extract_strided_slice %653 {offsets = [7, 0, 0], sizes = [1, 8, 1], strides = [1, 1, 1]} : vector<9x8x1xf32> to vector<1x8x1xf32>
    %724 = vector.shape_cast %723 : vector<1x8x1xf32> to vector<8x1xf32>
    %725 = vector.broadcast %724 : vector<8x1xf32> to vector<8x256xf32>
    %726 = arith.mulf %722, %725 : vector<8x256xf32>
    %727 = arith.addf %717, %726 : vector<8x256xf32>
    %728 = vector.extract_strided_slice %652 {offsets = [0, 17], sizes = [8, 239], strides = [1, 1]} : vector<8x256xf32> to vector<8x239xf32>
    %729 = vector.extract_strided_slice %652 {offsets = [0, 0], sizes = [8, 17], strides = [1, 1]} : vector<8x256xf32> to vector<8x17xf32>
    %730 = tpu.concatenate %728, %729 in 1 : vector<8x239xf32>, vector<8x17xf32> -> vector<8x256xf32>
    %731 = vector.broadcast %7 : vector<1x256xf32> to vector<8x256xf32>
    %732 = arith.mulf %730, %731 : vector<8x256xf32>
    %733 = vector.extract_strided_slice %653 {offsets = [8, 0, 0], sizes = [1, 8, 1], strides = [1, 1, 1]} : vector<9x8x1xf32> to vector<1x8x1xf32>
    %734 = vector.shape_cast %733 : vector<1x8x1xf32> to vector<8x1xf32>
    %735 = vector.broadcast %734 : vector<8x1xf32> to vector<8x256xf32>
    %736 = arith.mulf %732, %735 : vector<8x256xf32>
    %737 = arith.addf %727, %736 : vector<8x256xf32>
    %c0_95 = arith.constant 0 : index
    %c0_96 = arith.constant 0 : index
    %738 = vector.load %arg41[%c0_95, %c0_96] : memref<8x8xbf16, #tpu.memory_space<vmem>>, vector<8x8xbf16>
    %739 = arith.truncf %737 : vector<8x256xf32> to vector<8x256xbf16>
    %cst_97 = arith.constant dense<0.000000e+00> : vector<8x256xf32>
    %740 = tpu.matmul %738, %739, %cst_97 {dimension_numbers = #tpu.dot_dimension_numbers<[1], [0], [0], [1], [0, 0, 1, 1], [], []>} : vector<8x8xbf16>, vector<8x256xbf16>, vector<8x256xf32> -> vector<8x256xf32>
    %c0_98 = arith.constant 0 : index
    %c0_99 = arith.constant 0 : index
    %741 = vector.load %arg36[%c0_98, %c0_99] : memref<8x1xf32, #tpu.memory_space<vmem>>, vector<8x1xf32>
    %742 = vector.broadcast %741 : vector<8x1xf32> to vector<8x256xf32>
    %743 = arith.mulf %740, %742 : vector<8x256xf32>
    %c0_100 = arith.constant 0 : index
    %c0_101 = arith.constant 0 : index
    %744 = vector.load %arg35[%c0_100, %c0_101] : memref<8x1xf32, #tpu.memory_space<vmem>>, vector<8x1xf32>
    %745 = vector.broadcast %744 : vector<8x1xf32> to vector<8x256xf32>
    %746 = arith.addf %743, %745 : vector<8x256xf32>
    %cst_102 = arith.constant 0.000000e+00 : f32
    %747 = vector.broadcast %cst_102 : f32 to vector<8x256xf32>
    %748 = arith.maximumf %746, %747 : vector<8x256xf32>
    %c0_103 = arith.constant 0 : index
    %c0_104 = arith.constant 0 : index
    %c0_105 = arith.constant 0 : index
    %749 = vector.load %arg40[%c0_103, %c0_104, %c0_105] : memref<9x8x1xf32, #tpu.memory_space<vmem>>, vector<9x8x1xf32>
    %750 = vector.extract_strided_slice %748 {offsets = [0, 239], sizes = [8, 17], strides = [1, 1]} : vector<8x256xf32> to vector<8x17xf32>
    %751 = vector.extract_strided_slice %748 {offsets = [0, 0], sizes = [8, 239], strides = [1, 1]} : vector<8x256xf32> to vector<8x239xf32>
    %752 = tpu.concatenate %750, %751 in 1 : vector<8x17xf32>, vector<8x239xf32> -> vector<8x256xf32>
    %753 = vector.broadcast %0 : vector<1x256xf32> to vector<8x256xf32>
    %754 = arith.mulf %752, %753 : vector<8x256xf32>
    %755 = vector.extract_strided_slice %749 {offsets = [0, 0, 0], sizes = [1, 8, 1], strides = [1, 1, 1]} : vector<9x8x1xf32> to vector<1x8x1xf32>
    %756 = vector.shape_cast %755 : vector<1x8x1xf32> to vector<8x1xf32>
    %757 = vector.broadcast %756 : vector<8x1xf32> to vector<8x256xf32>
    %758 = arith.mulf %754, %757 : vector<8x256xf32>
    %759 = vector.extract_strided_slice %748 {offsets = [0, 240], sizes = [8, 16], strides = [1, 1]} : vector<8x256xf32> to vector<8x16xf32>
    %760 = vector.extract_strided_slice %748 {offsets = [0, 0], sizes = [8, 240], strides = [1, 1]} : vector<8x256xf32> to vector<8x240xf32>
    %761 = tpu.concatenate %759, %760 in 1 : vector<8x16xf32>, vector<8x240xf32> -> vector<8x256xf32>
    %762 = vector.broadcast %1 : vector<1x256xf32> to vector<8x256xf32>
    %763 = arith.mulf %761, %762 : vector<8x256xf32>
    %764 = vector.extract_strided_slice %749 {offsets = [1, 0, 0], sizes = [1, 8, 1], strides = [1, 1, 1]} : vector<9x8x1xf32> to vector<1x8x1xf32>
    %765 = vector.shape_cast %764 : vector<1x8x1xf32> to vector<8x1xf32>
    %766 = vector.broadcast %765 : vector<8x1xf32> to vector<8x256xf32>
    %767 = arith.mulf %763, %766 : vector<8x256xf32>
    %768 = arith.addf %758, %767 : vector<8x256xf32>
    %769 = vector.extract_strided_slice %748 {offsets = [0, 241], sizes = [8, 15], strides = [1, 1]} : vector<8x256xf32> to vector<8x15xf32>
    %770 = vector.extract_strided_slice %748 {offsets = [0, 0], sizes = [8, 241], strides = [1, 1]} : vector<8x256xf32> to vector<8x241xf32>
    %771 = tpu.concatenate %769, %770 in 1 : vector<8x15xf32>, vector<8x241xf32> -> vector<8x256xf32>
    %772 = vector.broadcast %2 : vector<1x256xf32> to vector<8x256xf32>
    %773 = arith.mulf %771, %772 : vector<8x256xf32>
    %774 = vector.extract_strided_slice %749 {offsets = [2, 0, 0], sizes = [1, 8, 1], strides = [1, 1, 1]} : vector<9x8x1xf32> to vector<1x8x1xf32>
    %775 = vector.shape_cast %774 : vector<1x8x1xf32> to vector<8x1xf32>
    %776 = vector.broadcast %775 : vector<8x1xf32> to vector<8x256xf32>
    %777 = arith.mulf %773, %776 : vector<8x256xf32>
    %778 = arith.addf %768, %777 : vector<8x256xf32>
    %779 = vector.extract_strided_slice %748 {offsets = [0, 255], sizes = [8, 1], strides = [1, 1]} : vector<8x256xf32> to vector<8x1xf32>
    %780 = vector.extract_strided_slice %748 {offsets = [0, 0], sizes = [8, 255], strides = [1, 1]} : vector<8x256xf32> to vector<8x255xf32>
    %781 = tpu.concatenate %779, %780 in 1 : vector<8x1xf32>, vector<8x255xf32> -> vector<8x256xf32>
    %782 = vector.broadcast %3 : vector<1x256xf32> to vector<8x256xf32>
    %783 = arith.mulf %781, %782 : vector<8x256xf32>
    %784 = vector.extract_strided_slice %749 {offsets = [3, 0, 0], sizes = [1, 8, 1], strides = [1, 1, 1]} : vector<9x8x1xf32> to vector<1x8x1xf32>
    %785 = vector.shape_cast %784 : vector<1x8x1xf32> to vector<8x1xf32>
    %786 = vector.broadcast %785 : vector<8x1xf32> to vector<8x256xf32>
    %787 = arith.mulf %783, %786 : vector<8x256xf32>
    %788 = arith.addf %778, %787 : vector<8x256xf32>
    %789 = vector.extract_strided_slice %749 {offsets = [4, 0, 0], sizes = [1, 8, 1], strides = [1, 1, 1]} : vector<9x8x1xf32> to vector<1x8x1xf32>
    %790 = vector.shape_cast %789 : vector<1x8x1xf32> to vector<8x1xf32>
    %791 = vector.broadcast %790 : vector<8x1xf32> to vector<8x256xf32>
    %792 = arith.mulf %748, %791 : vector<8x256xf32>
    %793 = arith.addf %788, %792 : vector<8x256xf32>
    %794 = vector.extract_strided_slice %748 {offsets = [0, 1], sizes = [8, 255], strides = [1, 1]} : vector<8x256xf32> to vector<8x255xf32>
    %795 = vector.extract_strided_slice %748 {offsets = [0, 0], sizes = [8, 1], strides = [1, 1]} : vector<8x256xf32> to vector<8x1xf32>
    %796 = tpu.concatenate %794, %795 in 1 : vector<8x255xf32>, vector<8x1xf32> -> vector<8x256xf32>
    %797 = vector.broadcast %4 : vector<1x256xf32> to vector<8x256xf32>
    %798 = arith.mulf %796, %797 : vector<8x256xf32>
    %799 = vector.extract_strided_slice %749 {offsets = [5, 0, 0], sizes = [1, 8, 1], strides = [1, 1, 1]} : vector<9x8x1xf32> to vector<1x8x1xf32>
    %800 = vector.shape_cast %799 : vector<1x8x1xf32> to vector<8x1xf32>
    %801 = vector.broadcast %800 : vector<8x1xf32> to vector<8x256xf32>
    %802 = arith.mulf %798, %801 : vector<8x256xf32>
    %803 = arith.addf %793, %802 : vector<8x256xf32>
    %804 = vector.extract_strided_slice %748 {offsets = [0, 15], sizes = [8, 241], strides = [1, 1]} : vector<8x256xf32> to vector<8x241xf32>
    %805 = vector.extract_strided_slice %748 {offsets = [0, 0], sizes = [8, 15], strides = [1, 1]} : vector<8x256xf32> to vector<8x15xf32>
    %806 = tpu.concatenate %804, %805 in 1 : vector<8x241xf32>, vector<8x15xf32> -> vector<8x256xf32>
    %807 = vector.broadcast %5 : vector<1x256xf32> to vector<8x256xf32>
    %808 = arith.mulf %806, %807 : vector<8x256xf32>
    %809 = vector.extract_strided_slice %749 {offsets = [6, 0, 0], sizes = [1, 8, 1], strides = [1, 1, 1]} : vector<9x8x1xf32> to vector<1x8x1xf32>
    %810 = vector.shape_cast %809 : vector<1x8x1xf32> to vector<8x1xf32>
    %811 = vector.broadcast %810 : vector<8x1xf32> to vector<8x256xf32>
    %812 = arith.mulf %808, %811 : vector<8x256xf32>
    %813 = arith.addf %803, %812 : vector<8x256xf32>
    %814 = vector.extract_strided_slice %748 {offsets = [0, 16], sizes = [8, 240], strides = [1, 1]} : vector<8x256xf32> to vector<8x240xf32>
    %815 = vector.extract_strided_slice %748 {offsets = [0, 0], sizes = [8, 16], strides = [1, 1]} : vector<8x256xf32> to vector<8x16xf32>
    %816 = tpu.concatenate %814, %815 in 1 : vector<8x240xf32>, vector<8x16xf32> -> vector<8x256xf32>
    %817 = vector.broadcast %6 : vector<1x256xf32> to vector<8x256xf32>
    %818 = arith.mulf %816, %817 : vector<8x256xf32>
    %819 = vector.extract_strided_slice %749 {offsets = [7, 0, 0], sizes = [1, 8, 1], strides = [1, 1, 1]} : vector<9x8x1xf32> to vector<1x8x1xf32>
    %820 = vector.shape_cast %819 : vector<1x8x1xf32> to vector<8x1xf32>
    %821 = vector.broadcast %820 : vector<8x1xf32> to vector<8x256xf32>
    %822 = arith.mulf %818, %821 : vector<8x256xf32>
    %823 = arith.addf %813, %822 : vector<8x256xf32>
    %824 = vector.extract_strided_slice %748 {offsets = [0, 17], sizes = [8, 239], strides = [1, 1]} : vector<8x256xf32> to vector<8x239xf32>
    %825 = vector.extract_strided_slice %748 {offsets = [0, 0], sizes = [8, 17], strides = [1, 1]} : vector<8x256xf32> to vector<8x17xf32>
    %826 = tpu.concatenate %824, %825 in 1 : vector<8x239xf32>, vector<8x17xf32> -> vector<8x256xf32>
    %827 = vector.broadcast %7 : vector<1x256xf32> to vector<8x256xf32>
    %828 = arith.mulf %826, %827 : vector<8x256xf32>
    %829 = vector.extract_strided_slice %749 {offsets = [8, 0, 0], sizes = [1, 8, 1], strides = [1, 1, 1]} : vector<9x8x1xf32> to vector<1x8x1xf32>
    %830 = vector.shape_cast %829 : vector<1x8x1xf32> to vector<8x1xf32>
    %831 = vector.broadcast %830 : vector<8x1xf32> to vector<8x256xf32>
    %832 = arith.mulf %828, %831 : vector<8x256xf32>
    %833 = arith.addf %823, %832 : vector<8x256xf32>
    %c0_106 = arith.constant 0 : index
    %c0_107 = arith.constant 0 : index
    %834 = vector.load %arg42[%c0_106, %c0_107] : memref<8x8xbf16, #tpu.memory_space<vmem>>, vector<8x8xbf16>
    %835 = arith.truncf %833 : vector<8x256xf32> to vector<8x256xbf16>
    %cst_108 = arith.constant dense<0.000000e+00> : vector<8x256xf32>
    %836 = tpu.matmul %834, %835, %cst_108 {dimension_numbers = #tpu.dot_dimension_numbers<[1], [0], [0], [1], [0, 0, 1, 1], [], []>} : vector<8x8xbf16>, vector<8x256xbf16>, vector<8x256xf32> -> vector<8x256xf32>
    %c0_109 = arith.constant 0 : index
    %c0_110 = arith.constant 0 : index
    %837 = vector.load %arg38[%c0_109, %c0_110] : memref<8x1xf32, #tpu.memory_space<vmem>>, vector<8x1xf32>
    %838 = vector.broadcast %837 : vector<8x1xf32> to vector<8x256xf32>
    %839 = arith.mulf %836, %838 : vector<8x256xf32>
    %c0_111 = arith.constant 0 : index
    %c0_112 = arith.constant 0 : index
    %840 = vector.load %arg37[%c0_111, %c0_112] : memref<8x1xf32, #tpu.memory_space<vmem>>, vector<8x1xf32>
    %841 = vector.broadcast %840 : vector<8x1xf32> to vector<8x256xf32>
    %842 = arith.addf %839, %841 : vector<8x256xf32>
    %843 = tpu.concatenate %650, %842 in 0 : vector<8x256xf32>, vector<8x256xf32> -> vector<16x256xf32>
    %c0_113 = arith.constant 0 : index
    %c0_114 = arith.constant 0 : index
    %844 = vector.load %arg55[%c0_113, %c0_114] : memref<10x16xf32, #tpu.memory_space<vmem>>, vector<10x16xf32>
    %cst_115 = arith.constant dense<0.000000e+00> : vector<10x256xf32>
    %845 = tpu.matmul %844, %843, %cst_115 {dimension_numbers = #tpu.dot_dimension_numbers<[1], [0], [0], [1], [0, 0, 1, 1], [], []>} : vector<10x16xf32>, vector<16x256xf32>, vector<10x256xf32> -> vector<10x256xf32>
    %cst_116 = arith.constant dense<0.000000e+00> : vector<10xf32>
    %846 = vector.multi_reduction <add>, %845, %cst_116 [1] : vector<10x256xf32> to vector<10xf32>
    %847 = vector.shape_cast %846 : vector<10xf32> to vector<10x1xf32>
    %cst_117 = arith.constant 2.560000e+02 : f32
    %848 = vector.broadcast %cst_117 : f32 to vector<10x1xf32>
    %849 = arith.divf %847, %848 : vector<10x1xf32>
    %c0_118 = arith.constant 0 : index
    %c0_119 = arith.constant 0 : index
    %850 = vector.load %arg54[%c0_118, %c0_119] : memref<10x1xf32, #tpu.memory_space<vmem>>, vector<10x1xf32>
    %851 = arith.addf %849, %850 : vector<10x1xf32>
    %852 = vector.shape_cast %851 : vector<10x1xf32> to vector<1x10x1xf32>
    %c0_120 = arith.constant 0 : index
    %c0_121 = arith.constant 0 : index
    %c0_122 = arith.constant 0 : index
    %853 = vector.load %arg59[%c0_120, %c0_121, %c0_122] : memref<1x10x1xf32, #tpu.memory_space<vmem>>, vector<1x10x1xf32>
    tpu.vector_store %arg59[%c0_120, %c0_121, %c0_122], %852 {strides = array<i32>} : memref<1x10x1xf32, #tpu.memory_space<vmem>>, vector<1x10x1xf32>,
    return
  }
  func.func @transform_0(%arg0: i32) -> (i32, i32, i32) {
    %c0_i32 = arith.constant 0 : i32
    %c0_i32_0 = arith.constant 0 : i32
    %c0_i32_1 = arith.constant 0 : i32
    return %arg0, %c0_i32, %c0_i32_0 : i32, i32, i32
  }
  func.func @transform_1(%arg0: i32) -> (i32, i32) {
    %c0_i32 = arith.constant 0 : i32
    %c0_i32_0 = arith.constant 0 : i32
    %c0_i32_1 = arith.constant 0 : i32
    return %c0_i32, %c0_i32_0 : i32, i32
  }
  func.func @transform_2(%arg0: i32) -> (i32, i32) {
    %c0_i32 = arith.constant 0 : i32
    %c0_i32_0 = arith.constant 0 : i32
    %c0_i32_1 = arith.constant 0 : i32
    return %c0_i32, %c0_i32_0 : i32, i32
  }
  func.func @transform_3(%arg0: i32) -> (i32, i32) {
    %c0_i32 = arith.constant 0 : i32
    %c0_i32_0 = arith.constant 0 : i32
    %c0_i32_1 = arith.constant 0 : i32
    return %c0_i32, %c0_i32_0 : i32, i32
  }
  func.func @transform_4(%arg0: i32) -> (i32, i32) {
    %c0_i32 = arith.constant 0 : i32
    %c0_i32_0 = arith.constant 0 : i32
    %c0_i32_1 = arith.constant 0 : i32
    return %c0_i32, %c0_i32_0 : i32, i32
  }
  func.func @transform_5(%arg0: i32) -> (i32, i32) {
    %c0_i32 = arith.constant 0 : i32
    %c0_i32_0 = arith.constant 0 : i32
    %c0_i32_1 = arith.constant 0 : i32
    return %c0_i32, %c0_i32_0 : i32, i32
  }
  func.func @transform_6(%arg0: i32) -> (i32, i32, i32) {
    %c0_i32 = arith.constant 0 : i32
    %c0_i32_0 = arith.constant 0 : i32
    %c0_i32_1 = arith.constant 0 : i32
    %c0_i32_2 = arith.constant 0 : i32
    return %c0_i32, %c0_i32_0, %c0_i32_1 : i32, i32, i32
  }
  func.func @transform_7(%arg0: i32) -> (i32, i32, i32) {
    %c0_i32 = arith.constant 0 : i32
    %c0_i32_0 = arith.constant 0 : i32
    %c0_i32_1 = arith.constant 0 : i32
    %c0_i32_2 = arith.constant 0 : i32
    return %c0_i32, %c0_i32_0, %c0_i32_1 : i32, i32, i32
  }
  func.func @transform_8(%arg0: i32) -> (i32, i32) {
    %c0_i32 = arith.constant 0 : i32
    %c0_i32_0 = arith.constant 0 : i32
    %c0_i32_1 = arith.constant 0 : i32
    return %c0_i32, %c0_i32_0 : i32, i32
  }
  func.func @transform_9(%arg0: i32) -> (i32, i32) {
    %c0_i32 = arith.constant 0 : i32
    %c0_i32_0 = arith.constant 0 : i32
    %c0_i32_1 = arith.constant 0 : i32
    return %c0_i32, %c0_i32_0 : i32, i32
  }
  func.func @transform_10(%arg0: i32) -> (i32, i32) {
    %c0_i32 = arith.constant 0 : i32
    %c0_i32_0 = arith.constant 0 : i32
    %c0_i32_1 = arith.constant 0 : i32
    return %c0_i32, %c0_i32_0 : i32, i32
  }
  func.func @transform_11(%arg0: i32) -> (i32, i32) {
    %c0_i32 = arith.constant 0 : i32
    %c0_i32_0 = arith.constant 0 : i32
    %c0_i32_1 = arith.constant 0 : i32
    return %c0_i32, %c0_i32_0 : i32, i32
  }
  func.func @transform_12(%arg0: i32) -> (i32, i32) {
    %c0_i32 = arith.constant 0 : i32
    %c0_i32_0 = arith.constant 0 : i32
    %c0_i32_1 = arith.constant 0 : i32
    return %c0_i32, %c0_i32_0 : i32, i32
  }
  func.func @transform_13(%arg0: i32) -> (i32, i32) {
    %c0_i32 = arith.constant 0 : i32
    %c0_i32_0 = arith.constant 0 : i32
    %c0_i32_1 = arith.constant 0 : i32
    return %c0_i32, %c0_i32_0 : i32, i32
  }
  func.func @transform_14(%arg0: i32) -> (i32, i32, i32) {
    %c0_i32 = arith.constant 0 : i32
    %c0_i32_0 = arith.constant 0 : i32
    %c0_i32_1 = arith.constant 0 : i32
    %c0_i32_2 = arith.constant 0 : i32
    return %c0_i32, %c0_i32_0, %c0_i32_1 : i32, i32, i32
  }
  func.func @transform_15(%arg0: i32) -> (i32, i32, i32) {
    %c0_i32 = arith.constant 0 : i32
    %c0_i32_0 = arith.constant 0 : i32
    %c0_i32_1 = arith.constant 0 : i32
    %c0_i32_2 = arith.constant 0 : i32
    return %c0_i32, %c0_i32_0, %c0_i32_1 : i32, i32, i32
  }
  func.func @transform_16(%arg0: i32) -> (i32, i32) {
    %c0_i32 = arith.constant 0 : i32
    %c0_i32_0 = arith.constant 0 : i32
    %c0_i32_1 = arith.constant 0 : i32
    return %c0_i32, %c0_i32_0 : i32, i32
  }
  func.func @transform_17(%arg0: i32) -> (i32, i32) {
    %c0_i32 = arith.constant 0 : i32
    %c0_i32_0 = arith.constant 0 : i32
    %c0_i32_1 = arith.constant 0 : i32
    return %c0_i32, %c0_i32_0 : i32, i32
  }
  func.func @transform_18(%arg0: i32) -> (i32, i32) {
    %c0_i32 = arith.constant 0 : i32
    %c0_i32_0 = arith.constant 0 : i32
    %c0_i32_1 = arith.constant 0 : i32
    return %c0_i32, %c0_i32_0 : i32, i32
  }
  func.func @transform_19(%arg0: i32) -> (i32, i32) {
    %c0_i32 = arith.constant 0 : i32
    %c0_i32_0 = arith.constant 0 : i32
    %c0_i32_1 = arith.constant 0 : i32
    return %c0_i32, %c0_i32_0 : i32, i32
  }
  func.func @transform_20(%arg0: i32) -> (i32, i32) {
    %c0_i32 = arith.constant 0 : i32
    %c0_i32_0 = arith.constant 0 : i32
    %c0_i32_1 = arith.constant 0 : i32
    return %c0_i32, %c0_i32_0 : i32, i32
  }
  func.func @transform_21(%arg0: i32) -> (i32, i32) {
    %c0_i32 = arith.constant 0 : i32
    %c0_i32_0 = arith.constant 0 : i32
    %c0_i32_1 = arith.constant 0 : i32
    return %c0_i32, %c0_i32_0 : i32, i32
  }
  func.func @transform_22(%arg0: i32) -> (i32, i32, i32) {
    %c0_i32 = arith.constant 0 : i32
    %c0_i32_0 = arith.constant 0 : i32
    %c0_i32_1 = arith.constant 0 : i32
    %c0_i32_2 = arith.constant 0 : i32
    return %c0_i32, %c0_i32_0, %c0_i32_1 : i32, i32, i32
  }
  func.func @transform_23(%arg0: i32) -> (i32, i32, i32) {
    %c0_i32 = arith.constant 0 : i32
    %c0_i32_0 = arith.constant 0 : i32
    %c0_i32_1 = arith.constant 0 : i32
    %c0_i32_2 = arith.constant 0 : i32
    return %c0_i32, %c0_i32_0, %c0_i32_1 : i32, i32, i32
  }
  func.func @transform_24(%arg0: i32) -> (i32, i32) {
    %c0_i32 = arith.constant 0 : i32
    %c0_i32_0 = arith.constant 0 : i32
    %c0_i32_1 = arith.constant 0 : i32
    return %c0_i32, %c0_i32_0 : i32, i32
  }
  func.func @transform_25(%arg0: i32) -> (i32, i32) {
    %c0_i32 = arith.constant 0 : i32
    %c0_i32_0 = arith.constant 0 : i32
    %c0_i32_1 = arith.constant 0 : i32
    return %c0_i32, %c0_i32_0 : i32, i32
  }
  func.func @transform_26(%arg0: i32) -> (i32, i32) {
    %c0_i32 = arith.constant 0 : i32
    %c0_i32_0 = arith.constant 0 : i32
    %c0_i32_1 = arith.constant 0 : i32
    return %c0_i32, %c0_i32_0 : i32, i32
  }
  func.func @transform_27(%arg0: i32) -> (i32, i32) {
    %c0_i32 = arith.constant 0 : i32
    %c0_i32_0 = arith.constant 0 : i32
    %c0_i32_1 = arith.constant 0 : i32
    return %c0_i32, %c0_i32_0 : i32, i32
  }
  func.func @transform_28(%arg0: i32) -> (i32, i32) {
    %c0_i32 = arith.constant 0 : i32
    %c0_i32_0 = arith.constant 0 : i32
    %c0_i32_1 = arith.constant 0 : i32
    return %c0_i32, %c0_i32_0 : i32, i32
  }
  func.func @transform_29(%arg0: i32) -> (i32, i32) {
    %c0_i32 = arith.constant 0 : i32
    %c0_i32_0 = arith.constant 0 : i32
    %c0_i32_1 = arith.constant 0 : i32
    return %c0_i32, %c0_i32_0 : i32, i32
  }
  func.func @transform_30(%arg0: i32) -> (i32, i32, i32) {
    %c0_i32 = arith.constant 0 : i32
    %c0_i32_0 = arith.constant 0 : i32
    %c0_i32_1 = arith.constant 0 : i32
    %c0_i32_2 = arith.constant 0 : i32
    return %c0_i32, %c0_i32_0, %c0_i32_1 : i32, i32, i32
  }
  func.func @transform_31(%arg0: i32) -> (i32, i32, i32) {
    %c0_i32 = arith.constant 0 : i32
    %c0_i32_0 = arith.constant 0 : i32
    %c0_i32_1 = arith.constant 0 : i32
    %c0_i32_2 = arith.constant 0 : i32
    return %c0_i32, %c0_i32_0, %c0_i32_1 : i32, i32, i32
  }
  func.func @transform_32(%arg0: i32) -> (i32, i32) {
    %c0_i32 = arith.constant 0 : i32
    %c0_i32_0 = arith.constant 0 : i32
    %c0_i32_1 = arith.constant 0 : i32
    return %c0_i32, %c0_i32_0 : i32, i32
  }
  func.func @transform_33(%arg0: i32) -> (i32, i32) {
    %c0_i32 = arith.constant 0 : i32
    %c0_i32_0 = arith.constant 0 : i32
    %c0_i32_1 = arith.constant 0 : i32
    return %c0_i32, %c0_i32_0 : i32, i32
  }
  func.func @transform_34(%arg0: i32) -> (i32, i32) {
    %c0_i32 = arith.constant 0 : i32
    %c0_i32_0 = arith.constant 0 : i32
    %c0_i32_1 = arith.constant 0 : i32
    return %c0_i32, %c0_i32_0 : i32, i32
  }
  func.func @transform_35(%arg0: i32) -> (i32, i32) {
    %c0_i32 = arith.constant 0 : i32
    %c0_i32_0 = arith.constant 0 : i32
    %c0_i32_1 = arith.constant 0 : i32
    return %c0_i32, %c0_i32_0 : i32, i32
  }
  func.func @transform_36(%arg0: i32) -> (i32, i32) {
    %c0_i32 = arith.constant 0 : i32
    %c0_i32_0 = arith.constant 0 : i32
    %c0_i32_1 = arith.constant 0 : i32
    return %c0_i32, %c0_i32_0 : i32, i32
  }
  func.func @transform_37(%arg0: i32) -> (i32, i32) {
    %c0_i32 = arith.constant 0 : i32
    %c0_i32_0 = arith.constant 0 : i32
    %c0_i32_1 = arith.constant 0 : i32
    return %c0_i32, %c0_i32_0 : i32, i32
  }
  func.func @transform_38(%arg0: i32) -> (i32, i32, i32) {
    %c0_i32 = arith.constant 0 : i32
    %c0_i32_0 = arith.constant 0 : i32
    %c0_i32_1 = arith.constant 0 : i32
    %c0_i32_2 = arith.constant 0 : i32
    return %c0_i32, %c0_i32_0, %c0_i32_1 : i32, i32, i32
  }
  func.func @transform_39(%arg0: i32) -> (i32, i32, i32) {
    %c0_i32 = arith.constant 0 : i32
    %c0_i32_0 = arith.constant 0 : i32
    %c0_i32_1 = arith.constant 0 : i32
    %c0_i32_2 = arith.constant 0 : i32
    return %c0_i32, %c0_i32_0, %c0_i32_1 : i32, i32, i32
  }
  func.func @transform_40(%arg0: i32) -> (i32, i32) {
    %c0_i32 = arith.constant 0 : i32
    %c0_i32_0 = arith.constant 0 : i32
    %c0_i32_1 = arith.constant 0 : i32
    return %c0_i32, %c0_i32_0 : i32, i32
  }
  func.func @transform_41(%arg0: i32) -> (i32, i32) {
    %c0_i32 = arith.constant 0 : i32
    %c0_i32_0 = arith.constant 0 : i32
    %c0_i32_1 = arith.constant 0 : i32
    return %c0_i32, %c0_i32_0 : i32, i32
  }
  func.func @transform_42(%arg0: i32) -> (i32, i32) {
    %c0_i32 = arith.constant 0 : i32
    %c0_i32_0 = arith.constant 0 : i32
    %c0_i32_1 = arith.constant 0 : i32
    return %c0_i32, %c0_i32_0 : i32, i32
  }
  func.func @transform_43(%arg0: i32) -> (i32, i32) {
    %c0_i32 = arith.constant 0 : i32
    %c0_i32_0 = arith.constant 0 : i32
    %c0_i32_1 = arith.constant 0 : i32
    return %c0_i32, %c0_i32_0 : i32, i32
  }
  func.func @transform_44(%arg0: i32) -> (i32, i32) {
    %c0_i32 = arith.constant 0 : i32
    %c0_i32_0 = arith.constant 0 : i32
    %c0_i32_1 = arith.constant 0 : i32
    return %c0_i32, %c0_i32_0 : i32, i32
  }
  func.func @transform_45(%arg0: i32) -> (i32, i32) {
    %c0_i32 = arith.constant 0 : i32
    %c0_i32_0 = arith.constant 0 : i32
    %c0_i32_1 = arith.constant 0 : i32
    return %c0_i32, %c0_i32_0 : i32, i32
  }
  func.func @transform_46(%arg0: i32) -> (i32, i32, i32) {
    %c0_i32 = arith.constant 0 : i32
    %c0_i32_0 = arith.constant 0 : i32
    %c0_i32_1 = arith.constant 0 : i32
    %c0_i32_2 = arith.constant 0 : i32
    return %c0_i32, %c0_i32_0, %c0_i32_1 : i32, i32, i32
  }
  func.func @transform_47(%arg0: i32) -> (i32, i32, i32) {
    %c0_i32 = arith.constant 0 : i32
    %c0_i32_0 = arith.constant 0 : i32
    %c0_i32_1 = arith.constant 0 : i32
    %c0_i32_2 = arith.constant 0 : i32
    return %c0_i32, %c0_i32_0, %c0_i32_1 : i32, i32, i32
  }
  func.func @transform_48(%arg0: i32) -> (i32, i32) {
    %c0_i32 = arith.constant 0 : i32
    %c0_i32_0 = arith.constant 0 : i32
    %c0_i32_1 = arith.constant 0 : i32
    return %c0_i32, %c0_i32_0 : i32, i32
  }
  func.func @transform_49(%arg0: i32) -> (i32, i32) {
    %c0_i32 = arith.constant 0 : i32
    %c0_i32_0 = arith.constant 0 : i32
    %c0_i32_1 = arith.constant 0 : i32
    return %c0_i32, %c0_i32_0 : i32, i32
  }
  func.func @transform_50(%arg0: i32) -> (i32, i32) {
    %c0_i32 = arith.constant 0 : i32
    %c0_i32_0 = arith.constant 0 : i32
    %c0_i32_1 = arith.constant 0 : i32
    return %c0_i32, %c0_i32_0 : i32, i32
  }
  func.func @transform_51(%arg0: i32) -> (i32, i32) {
    %c0_i32 = arith.constant 0 : i32
    %c0_i32_0 = arith.constant 0 : i32
    %c0_i32_1 = arith.constant 0 : i32
    return %c0_i32, %c0_i32_0 : i32, i32
  }
  func.func @transform_52(%arg0: i32) -> (i32, i32) {
    %c0_i32 = arith.constant 0 : i32
    %c0_i32_0 = arith.constant 0 : i32
    %c0_i32_1 = arith.constant 0 : i32
    return %c0_i32, %c0_i32_0 : i32, i32
  }
  func.func @transform_53(%arg0: i32) -> (i32, i32) {
    %c0_i32 = arith.constant 0 : i32
    %c0_i32_0 = arith.constant 0 : i32
    %c0_i32_1 = arith.constant 0 : i32
    return %c0_i32, %c0_i32_0 : i32, i32
  }
  func.func @transform_54(%arg0: i32) -> (i32, i32) {
    %c0_i32 = arith.constant 0 : i32
    %c0_i32_0 = arith.constant 0 : i32
    %c0_i32_1 = arith.constant 0 : i32
    return %c0_i32, %c0_i32_0 : i32, i32
  }
  func.func @transform_55(%arg0: i32) -> (i32, i32) {
    %c0_i32 = arith.constant 0 : i32
    %c0_i32_0 = arith.constant 0 : i32
    %c0_i32_1 = arith.constant 0 : i32
    return %c0_i32, %c0_i32_0 : i32, i32
  }
  func.func @transform_56(%arg0: i32) -> (i32, i32) {
    %c0_i32 = arith.constant 0 : i32
    %c0_i32_0 = arith.constant 0 : i32
    %c0_i32_1 = arith.constant 0 : i32
    return %c0_i32, %c0_i32_0 : i32, i32
  }
  func.func @transform_57(%arg0: i32) -> (i32, i32) {
    %c0_i32 = arith.constant 0 : i32
    %c0_i32_0 = arith.constant 0 : i32
    %c0_i32_1 = arith.constant 0 : i32
    return %c0_i32, %c0_i32_0 : i32, i32
  }
  func.func @transform_58(%arg0: i32) -> (i32, i32, i32) {
    %c0_i32 = arith.constant 0 : i32
    %c0_i32_0 = arith.constant 0 : i32
    %c0_i32_1 = arith.constant 0 : i32
    return %arg0, %c0_i32, %c0_i32_0 : i32, i32, i32
  }
}

</mosaic_0001>

<bundles_post_ra>
// kernel: _lambda_.1
= control target key start
LH: loop header
LB: loop body
LE: loop exit
PB: predicated region body
PF: predicated region fallthrough
CT: control target
= control target key end

     0   :  { %s4286_s6 = smov 1   ;;  %s4287_s10 = smov 2   ;;  %s5498_s0 = inlined_call_operand.smem [shape: u32[59], index: -1, kind: input, shape index: {}] }
   0x1   :  { %s4346_s5 = sld [smem:[%s5498_s0]]   ;;  %s4288_s14 = smov 3  }
   0x2   :  { %s4351_s9 = sld [smem:[%s5498_s0 + %s4286_s6]]   ;;  %s4289_s18 = smov 4  }
   0x3   :  { %s4356_s13 = sld [smem:[%s5498_s0 + %s4287_s10]]   ;;  %s4290_s22 = smov 5  }
   0x4   :  { %s4361_s17 = sld [smem:[%s5498_s0 + %s4288_s14]]   ;;  %s4291_s26 = smov 6  }
   0x5   :  { %s4366_s21 = sld [smem:[%s5498_s0 + %s4289_s18]]   ;;  %s4292_s30 = smov 7  }
   0x6   :  { %s4371_s25 = sld [smem:[%s5498_s0 + %s4290_s22]]   ;;  %s4293_s4 = smov 8  }
   0x7   :  { %5527 = sst [smem:[#allocation2_spill]] %s4346_s5  ;;  %s4294_s10 = smov 9  }
   0x8   :  { %s4376_s29 = sld [smem:[%s5498_s0 + %s4291_s26]]   ;;  %s4295_s15 = smov 18  }
   0x9   :  { %s4381_s3 = sld [smem:[%s5498_s0 + %s4292_s30]]   ;;  %s4296_s20 = smov 19  }
   0xa   :  { %s4386_s8 = sld [smem:[%s5498_s0 + %s4293_s4]]   ;;  %s4297_s26 = smov 20  }
   0xb   :  { %s4391_s14 = sld [smem:[%s5498_s0 + %s4294_s10]]   ;;  %s4298_s1 = smov 21  }
   0xc   :  { %s4396_s19 = sld [smem:[%s5498_s0 + %s4295_s15]]   ;;  %s4299_s7 = smov 22  }
   0xd   :  { %s4401_s24 = sld [smem:[%s5498_s0 + %s4296_s20]]   ;;  %s4300_s15 = smov 23  }
   0xe   :  { %s4406_s30 = sld [smem:[%s5498_s0 + %s4297_s26]]   ;;  %s4301_s22 = smov 24  }
   0xf   :  { %5528 = sst [smem:[#allocation3_spill]] %s4381_s3  ;;  %s4302_s28 = smov 25  }
  0x10   :  { %s4411_s6 = sld [smem:[%s5498_s0 + %s4298_s1]]  }
  0x11   :  { %s4416_s12 = sld [smem:[%s5498_s0 + %s4299_s7]]   ;;  %s4303_s7 = smov 26  }
  0x12   :  { %s4421_s20 = sld [smem:[%s5498_s0 + %s4300_s15]]   ;;  %s4304_s15 = smov 27  }
  0x13   :  { %s4426_s27 = sld [smem:[%s5498_s0 + %s4301_s22]]   ;;  %s4305_s22 = smov 28  }
  0x14   :  { %5529 = sst [smem:[#allocation4_spill]] %s4406_s30 }
  0x15   :  { %s4431_s4 = sld [smem:[%s5498_s0 + %s4302_s28]]   ;;  %s4306_s28 = smov 29  }
  0x16   :  { %5530 = sst [smem:[#allocation5_spill]] %s4411_s6 }
  0x17   :  { %s4436_s30 = sld [smem:[%s5498_s0 + %s4303_s7]]   ;;  %s4307_s7 = smov 30  }
  0x18   :  { %s4441_s6 = sld [smem:[%s5498_s0 + %s4304_s15]]   ;;  %s4308_s15 = smov 31  }
  0x19   :  { %5531 = sst [smem:[#allocation6_spill]] %s4426_s27 }
  0x1a   :  { %s4446_s27 = sld [smem:[%s5498_s0 + %s4305_s22]]   ;;  %s4309_s22 = smov 32  }
  0x1b   :  { %5532 = sst [smem:[#allocation7_spill]] %s4431_s4 }
  0x1c   :  { %s4451_s4 = sld [smem:[%s5498_s0 + %s4306_s28]]   ;;  %s4310_s28 = smov 33  }
  0x1d   :  { %5533 = sst [smem:[#allocation8_spill]] %s4436_s30 }
  0x1e   :  { %5534 = sst [smem:[#allocation9_spill]] %s4441_s6 }
  0x1f   :  { %s4456_s30 = sld [smem:[%s5498_s0 + %s4307_s7]]   ;;  %s4311_s7 = smov 34  }
  0x20   :  { %5535 = sst [smem:[#allocation10_spill]] %s4446_s27 }
  0x21   :  { %s4461_s6 = sld [smem:[%s5498_s0 + %s4308_s15]]   ;;  %s4312_s15 = smov 35  }
  0x22   :  { %5536 = sst [smem:[#allocation11_spill]] %s4451_s4 }
  0x23   :  { %s4466_s27 = sld [smem:[%s5498_s0 + %s4309_s22]]   ;;  %s4313_s22 = smov 36  }
  0x24   :  { %s4471_s4 = sld [smem:[%s5498_s0 + %s4310_s28]]   ;;  %s4314_s28 = smov 37  }
  0x25   :  { %5537 = sst [smem:[#allocation12_spill]] %s4456_s30 }
  0x26   :  { %s4476_s30 = sld [smem:[%s5498_s0 + %s4311_s7]]   ;;  %s4315_s7 = smov 38  }
  0x27   :  { %5538 = sst [smem:[#allocation13_spill]] %s4461_s6 }
  0x28   :  { %s4481_s6 = sld [smem:[%s5498_s0 + %s4312_s15]]   ;;  %s4316_s15 = smov 39  }
  0x29   :  { %5539 = sst [smem:[#allocation14_spill]] %s4466_s27 }
  0x2a   :  { %5540 = sst [smem:[#allocation15_spill]] %s4471_s4 }
  0x2b   :  { %s4486_s27 = sld [smem:[%s5498_s0 + %s4313_s22]]   ;;  %s4317_s22 = smov 40  }
  0x2c   :  { %5541 = sst [smem:[#allocation16_spill]] %s4476_s30 }
  0x2d   :  { %s4491_s4 = sld [smem:[%s5498_s0 + %s4314_s28]]   ;;  %s4318_s28 = smov 41  }
  0x2e   :  { %5542 = sst [smem:[#allocation17_spill]] %s4481_s6 }
  0x2f   :  { %s4496_s30 = sld [smem:[%s5498_s0 + %s4315_s7]]   ;;  %s4319_s7 = smov 50  }
  0x30   :  { %s4501_s6 = sld [smem:[%s5498_s0 + %s4316_s15]]   ;;  %s4320_s15 = smov 51  }
  0x31   :  { %5543 = sst [smem:[#allocation18_spill]] %s4486_s27 }
  0x32   :  { %s4506_s27 = sld [smem:[%s5498_s0 + %s4317_s22]]   ;;  %s4321_s22 = smov 52  }
  0x33   :  { %5544 = sst [smem:[#allocation19_spill]] %s4491_s4 }
  0x34   :  { %s4511_s4 = sld [smem:[%s5498_s0 + %s4318_s28]]   ;;  %s4322_s28 = smov 53  }
  0x35   :  { %5545 = sst [smem:[#allocation20_spill]] %s4496_s30 }
  0x36   :  { %5546 = sst [smem:[#allocation21_spill]] %s4501_s6 }
  0x37   :  { %s4516_s30 = sld [smem:[%s5498_s0 + %s4319_s7]]   ;;  %s4323_s7 = smov 54  }
  0x38   :  { %5547 = sst [smem:[#allocation22_spill]] %s4506_s27 }
  0x39   :  { %s4521_s6 = sld [smem:[%s5498_s0 + %s4320_s15]]   ;;  %s4324_s15 = smov 55  }
  0x3a   :  { %5548 = sst [smem:[#allocation23_spill]] %s4511_s4 }
  0x3b   :  { %s4526_s27 = sld [smem:[%s5498_s0 + %s4321_s22]]   ;;  %s4325_s22 = smov 56  }
  0x3c   :  { %s4531_s4 = sld [smem:[%s5498_s0 + %s4322_s28]]   ;;  %s4326_s28 = smov 57  }
  0x3d   :  { %5549 = sst [smem:[#allocation24_spill]] %s4516_s30 }
  0x3e   :  { %s4536_s30 = sld [smem:[%s5498_s0 + %s4323_s7]]   ;;  %s4327_s7 = smov 58  }
  0x3f   :  { %5550 = sst [smem:[#allocation25_spill]] %s4521_s6 }
  0x40   :  { %s4541_s6 = sld [smem:[%s5498_s0 + %s4324_s15]]   ;;  %s4558_s15 = smov 0  }
  0x41   :  { %5551 = sst [smem:[#allocation26_spill]] %s4526_s27 }
  0x42   :  { %5552 = sst [smem:[#allocation27_spill]] %s4531_s4 }
  0x43   :  { %s4546_s27 = sld [smem:[%s5498_s0 + %s4325_s22]]  }
  0x44   :  { %5553 = sst [smem:[#allocation28_spill]] %s4536_s30 }
  0x45   :  { %s4551_s4 = sld [smem:[%s5498_s0 + %s4326_s28]]  }
  0x46   :  { %5554 = sst [smem:[#allocation29_spill]] %s4541_s6 }
  0x47   :  { %s4556_s30 = sld [smem:[%s5498_s0 + %s4327_s7]]  }
  0x4b   :  { %5555 = sst [smem:[#allocation30_spill]] %s4551_s4 }
  0x4c LB: > { %s5556_s3 = sld [smem:[#allocation3_spill]]  ;;  %s4171_s16 = sadd.s32 4294967295, %s4284_s15   ;;  %s4284_s15 = sphi %s4558_s15, %s127_s15  }
  0x4d   : > { %p4175_p0 = scmp.ge.s32.totalorder %s4284_s15, 1  ;;  %p1571_p1 = scmp.lt.s32.totalorder %s4284_s15, 3 }
  0x4f   : > { %p1572_p2 = pnand %p4175_p0, %p1571_p1 }
  0x51   : > { %1575 = sbr.rel (%p1572_p2) target bundleno = 3241 (0xca9), region = 252 }
  0x56   : > { %p1705_p3 = scmp.lt.s32.totalorder %s4171_s16, 1  ;;  %s5557_s5 = sld [smem:[#allocation2_spill]]  ;;  %v5524_v2 = vmov 0   ;;  %v1982_v3 = vld [vmem:[%s4546_s27] sm:$0xff]  ;;  %v2001_v5 = vld [vmem:[%s4376_s29 + $0x8] sm:$0xff]  ;;  %v2003_v7 = vld [vmem:[%s4376_s29 + $0x18] sm:$0xff]  ;;  %v1746_v13 = vlaneseq }
  0x57   : > { %s5521_s22 = smov 113   ;;  %s5506_s23 = smov 111   ;;  %1973 = vmatprep.mubr.bf16.mxu0 %v5524_v2  ;;  %4276 = vset.pattern.permute.xlu0 %v5524_v2  ;;  %v2000_v6 = vld [vmem:[%s4376_s29] sm:$0xff]  ;;  %v2002_v8 = vld [vmem:[%s4376_s29 + $0x10] sm:$0xff]  ;;  %v2005_v9 = vld [vmem:[%s4376_s29 + $0x28] sm:$0xff]  ;;  %vm1900_vm0 = vcmask 908288  }
  0x58   : > { %s5600_s16 = smov (!%p1705_p3, %s4171_s16), 1  ;;  %s5508_s26 = smov 112   ;;  %4277 = vset.pattern.permute.xlu1 %v5524_v2  ;;  %2223 = vmatprep.mubr.bf16.mxu1 %v5524_v2  ;;  %v2004_v10 = vld [vmem:[%s4376_s29 + $0x20] sm:$0xff]  ;;  %v2007_v11 = vld [vmem:[%s4376_s29 + $0x38] sm:$0xff]  ;;  %v2006_v12 = vld [vmem:[%s4376_s29 + $0x30] sm:$0xff]  ;;  %v1747_v14 = vshrl.u32 %v1746_v13, 7 }
  0x59   : > { %s5505_s0 = sshll.u32 %s5600_s16, 4  ;;  %s5519_s28 = smov 127   ;;  %v4186_v17 = vld [vmem:[%s4351_s9 + $0x10] ss:$8 sm:$0x3]  ;;  %vm1854_vm1 = vcmask 924672  }
  0x5a   : > { %s5516_s1 = smov 15   ;;  %s5558_s6 = sld [smem:[#allocation29_spill]]  ;;  %v4622_v15 = vsub.s32 0, %v1747_v14  ;;  %v4624_v16 = vsub.s32 1, %v1747_v14  ;;  %vm1877_vm2 = vcmask 916480   ;;  %vm1934_vm3 = vcmask 1043456  }
  0x5b   : > { %s5514_s2 = smov 1   ;;  %s5510_s7 = smov 17   ;;  %v4184_v20 = vld [vmem:[%s4351_s9 + $0x6] ss:$8 sm:$0x3]  ;;  %vm1831_vm4 = vcmask 1039360  }
  0x5c   : > { %s1709_s18 = scalar_lea.vmem %s5557_s5, %s5505_s0  ;;  %s5512_s10 = smov 16   ;;  %v4185_v21 = vld [vmem:[%s4351_s9 + $0x7] ss:$8 sm:$0x3]  ;;  %v4630_v22 = vrot.slane %v4186_v17, %v4624_v16  ;;  %v4633_v23 = vrot.slane %v4186_v17, %v4622_v15  ;;  %v4636_v24 = vrot.slane %v4184_v20, %v4622_v15  ;;  %v4639_v27 = vrot.slane %v4184_v20, %v4624_v16 }
  0x5d   : > { %v4572_v0 = vld [vmem:[%s1709_s18] sm:$0xff]  ;;  %v4578_v1 = vld [vmem:[%s1709_s18 + $0x8] sm:$0xff]  ;;  %v4643_v29 = vrot.slane %v4185_v21, %v4622_v15  ;;  %v4649_v33 = vrot.slane %v4185_v21, %v4624_v16  ;;  %vm1786_vm5 = vcmask 121856   ;;  %vm1809_vm6 = vcmask 7168   ;;  %s5559_s4 = sld [smem:[#allocation30_spill]] }
  0x5e   : > { %1850 = vrot.lane.b32.xlu1 %v4572_v0, %s5521_s22  ;;  %1896 = vrot.lane.b32.xlu0 %v4572_v0, %s5506_s23  ;;  %v4183_v31 = vld [vmem:[%s4351_s9 + $0x5] ss:$8 sm:$0x3]  ;;  %v4181_v58 = vld [vmem:[%s4351_s9 + $0x2] ss:$8 sm:$0x3] }
  0x5f   : > { %v4655_v41 = vrot.slane %v4183_v31, %v4622_v15  ;;  %v4661_v45 = vrot.slane %v4183_v31, %v4624_v16  ;;  %v4182_v59 = vld [vmem:[%s4351_s9 + $0x3] ss:$8 sm:$0x3]  ;;  %v1716_v17 = vld [vmem:[%s4351_s9] ss:$8 sm:$0x3] }
  0x60   : > { %v1990_v4 = vld [vmem:[%s5558_s6] sm:$0xff]  ;;  %vm1740_vm7 = vcmask 138240   ;;  %vm1763_vm8 = vcmask 130048   ;;  %vm1930_vm9 = vcmask 588800   ;;  %vm2181_vm10 = vcmask 64512   ;;  %s5560_s11 = sld [smem:[#allocation6_spill]] }
  0x61   : > { %s5561_s18 = sld [smem:[#allocation5_spill]]  ;;  %vm4058_vm11 = vcmask 1041408   ;;  %vm4072_vm12 = vcmask 1024  }
  0x62   : > { %1852 = vrot.lane.b32.xlu1 %v4578_v1, %s5521_s22  ;;  %1898 = vrot.lane.b32.xlu0 %v4578_v1, %s5506_s23  ;;  %s5563_s0 = sld [smem:[#allocation25_spill]] }
  0x63   : > { %s5589_s5 = sld [smem:[#allocation10_spill]] }
  0x64   : > { %s5590_s6 = sld [smem:[#allocation18_spill]] }
  0x66   : > { %1875 = vrot.lane.b32.xlu1 %v4578_v1, %s5508_s26  ;;  %1873 = vrot.lane.b32.xlu0 %v4572_v0, %s5508_s26 }
  0x6a   : > { %1829 = vrot.lane.b32.xlu1 %v4578_v1, %s5519_s28  ;;  %1827 = vrot.lane.b32.xlu0 %v4572_v0, %s5519_s28 }
  0x6e   : > { %1784 = vrot.lane.b32.xlu1 %v4572_v0, %s5516_s1  ;;  %1781 = vrot.lane.b32.xlu0 %v4578_v1, %s5516_s1 }
  0x72   : > { %1807 = vrot.lane.b32.xlu1 %v4572_v0, %s5514_s2  ;;  %1804 = vrot.lane.b32.xlu0 %v4578_v1, %s5514_s2 }
  0x76   : > { %1738 = vrot.lane.b32.xlu1 %v4572_v0, %s5510_s7  ;;  %1734 = vrot.lane.b32.xlu0 %v4578_v1, %s5510_s7 }
  0x7a   : > { %1761 = vrot.lane.b32.xlu1 %v4572_v0, %s5512_s10  ;;  %1758 = vrot.lane.b32.xlu0 %v4578_v1, %s5512_s10 }
  0x7e   : > { %1985 = vperm.xlu0 %4276, %v1982_v3   ;;  %1993 = vperm.xlu1 %4277, %v1990_v4   ;;  %v4677_v3 = vrot.slane %v4181_v58, %v4622_v15  ;;  %v4680_v4 = vrot.slane %v4181_v58, %v4624_v16  ;;  %v2008_v58 = vld [vmem:[%s4376_s29 + $0x40] sm:$0xff] }
  0x82   : > { %2042 = vperm.xlu0 %4276, %v2001_v5   ;;  %2024 = vperm.xlu1 %4277, %v2000_v6   ;;  %v4683_v5 = vrot.slane %v4182_v59, %v4622_v15  ;;  %v4686_v6 = vrot.slane %v4182_v59, %v4624_v16  ;;  %v2232_v59 = vld [vmem:[%s4361_s17] sm:$0xff] }
  0x86   : > { %2082 = vperm.xlu0 %4276, %v2003_v7   ;;  %2062 = vperm.xlu1 %4277, %v2002_v8  }
  0x8a   : > { %2111 = vperm.xlu0 %4276, %v2005_v9   ;;  %2091 = vperm.xlu1 %4277, %v2004_v10  }
  0x8e   : > { %2151 = vperm.xlu0 %4276, %v2007_v11   ;;  %2131 = vperm.xlu1 %4277, %v2006_v12  }
  0xd0   : > { %v1851_v18 = vpop.permute.xlu1 %1850  ;;  %v1897_v19 = vpop.permute.xlu0 %1896 }
  0xd4   : > { %v1853_v25 = vpop.permute.xlu1 %1852  ;;  %v1899_v26 = vpop.permute.xlu0 %1898 }
  0xd5   : > { %v1901_v28 = vsel %vm1900_vm0, %v1897_v19, %v1899_v26  ;;  %v1905_v30 = vsel %vm1900_vm0, %v1899_v26, %v1897_v19  ;;  %v1855_v32 = vsel %vm1854_vm1, %v1851_v18, %v1853_v25  ;;  %v1859_v36 = vsel %vm1854_vm1, %v1853_v25, %v1851_v18  ;;  %v4180_v18 = vld [vmem:[%s4351_s9 + $0x1] ss:$8 sm:$0x3] }
  0xd6   : > { %v1918_v34 = vmul.f32 %v4630_v22, %v1905_v30  ;;  %v1917_v35 = vmul.f32 %v4633_v23, %v1901_v28  ;;  %v1871_v42 = vmul.f32 %v4636_v24, %v1855_v32  ;;  %v1872_v46 = vmul.f32 %v4639_v27, %v1859_v36 }
  0xd7   : > { %v4699_v26 = vrot.slane %v1716_v17, %v4622_v15  ;;  %v4702_v28 = vrot.slane %v1716_v17, %v4624_v16  ;;  %v4705_v30 = vrot.slane %v4180_v18, %v4622_v15  ;;  %v4708_v31 = vrot.slane %v4180_v18, %v4624_v16 }
  0xd8   : > { %v1876_v37 = vpop.permute.xlu1 %1875  ;;  %v1874_v38 = vpop.permute.xlu0 %1873  ;;  %v1929_v39 = vpack.c.bf16 %v1918_v34, %v1918_v34  ;;  %v1928_v40 = vpack.c.bf16 %v1917_v35, %v1917_v35 }
  0xd9   : > { %v1878_v43 = vsel %vm1877_vm2, %v1874_v38, %v1876_v37  ;;  %v1882_v44 = vsel %vm1877_vm2, %v1876_v37, %v1874_v38 }
  0xda   : > { %v1894_v47 = vmul.f32 %v4643_v29, %v1878_v43  ;;  %v1895_v48 = vmul.f32 %v4649_v33, %v1882_v44  ;;  %4187 = vmatprep.subr.msk.bf16.mxu0 %vm1934_vm3, %v1929_v39  ;;  %v1936_v49 = vsel %vm1934_vm3, %v1928_v40, 0  ;;  %v1919_v44 = vld [vmem:[%s5559_s4] sm:$0xf]  ;;  %s5579_s4 = sld [smem:[#allocation16_spill]] }
  0xdb   : > { %1948 = vmatpush1.bf16.msra.mxu0 %v1936_v49 }
  0xdc   : > { %v1830_v50 = vpop.permute.xlu1 %1829  ;;  %v1828_v51 = vpop.permute.xlu0 %1827  ;;  %v1927_v52 = vpack.c.bf16 %v1895_v48, %v1872_v46  ;;  %v1926_v53 = vpack.c.bf16 %v1894_v47, %v1871_v42 }
  0xdd   : > { %v1832_v54 = vsel %vm1831_vm4, %v1828_v51, %v1830_v50  ;;  %v1836_v55 = vsel %vm1831_vm4, %v1830_v50, %v1828_v51 }
  0xde   : > { %v1848_v56 = vmul.f32 %v4655_v41, %v1832_v54  ;;  %v1849_v57 = vmul.f32 %v4661_v45, %v1836_v55  ;;  %1949 = vmatprep.subr.bf16.mxu0 %v1927_v52 }
  0xdf   : > { %1950 = vmatpush1.bf16.msra.mxu0 %v1926_v53 }
  0xe0   : > { %v1785_v60 = vpop.permute.xlu1 %1784  ;;  %v1782_v61 = vpop.permute.xlu0 %1781  ;;  %v1925_v62 = vpack.c.bf16 %v1849_v57, %v4578_v1  ;;  %v1924_v63 = vpack.c.bf16 %v1848_v56, %v4572_v0 }
  0xe1   : > { %v1787_v1 = vsel %vm1786_vm5, %v1785_v60, %v1782_v61  ;;  %v1790_v0 = vsel %vm1786_vm5, %v1782_v61, %v1785_v60  ;;  %v2240_v60 = vld [vmem:[%s4356_s13] sm:$0xff] }
  0xe2   : > { %1951 = vmatprep.subr.bf16.mxu0 %v1925_v62  ;;  %v1802_v11 = vmul.f32 %v4677_v3, %v1790_v0  ;;  %v1803_v12 = vmul.f32 %v4680_v4, %v1787_v1  ;;  %v2250_v61 = vld [vmem:[%s5556_s3] sm:$0xff]  ;;  %v2251_v62 = vld [vmem:[%s5556_s3 + $0x8] sm:$0xff]  ;;  %v2253_v1 = vld [vmem:[%s5556_s3 + $0x18] sm:$0xff] }
  0xe3   : > { %1952 = vmatpush1.bf16.msra.mxu0 %v1924_v63  ;;  %v2252_v63 = vld [vmem:[%s5556_s3 + $0x10] sm:$0xff]  ;;  %v2254_v0 = vld [vmem:[%s5556_s3 + $0x20] sm:$0xff] }
  0xe4   : > { %v1808_v7 = vpop.permute.xlu1 %1807  ;;  %v1805_v8 = vpop.permute.xlu0 %1804 }
  0xe5   : > { %v1810_v9 = vsel %vm1809_vm6, %v1808_v7, %v1805_v8  ;;  %v1813_v10 = vsel %vm1809_vm6, %v1805_v8, %v1808_v7  ;;  %v2255_v7 = vld [vmem:[%s5556_s3 + $0x28] sm:$0xff]  ;;  %v2256_v8 = vld [vmem:[%s5556_s3 + $0x30] sm:$0xff] }
  0xe6   : > { %v1825_v13 = vmul.f32 %v4683_v5, %v1813_v10  ;;  %v1826_v14 = vmul.f32 %v4686_v6, %v1810_v9  ;;  %v2257_v9 = vld [vmem:[%s5556_s3 + $0x38] sm:$0xff] }
  0xe8   : > { %v1739_v19 = vpop.permute.xlu1 %1738  ;;  %v1735_v20 = vpop.permute.xlu0 %1734  ;;  %v1923_v21 = vpack.c.bf16 %v1826_v14, %v1803_v12  ;;  %v1922_v25 = vpack.c.bf16 %v1825_v13, %v1802_v11 }
  0xe9   : > { %v1741_v32 = vsel %vm1740_vm7, %v1739_v19, %v1735_v20  ;;  %v1744_v34 = vsel %vm1740_vm7, %v1735_v20, %v1739_v19 }
  0xea   : > { %1953 = vmatprep.subr.bf16.mxu0 %v1923_v21  ;;  %v1756_v39 = vmul.f32 %v4699_v26, %v1744_v34  ;;  %v1757_v15 = vmul.f32 %v4702_v28, %v1741_v32 }
  0xeb   : > { %1954 = vmatpush1.bf16.msra.mxu0 %v1922_v25 }
  0xec   : > { %v1762_v35 = vpop.permute.xlu1 %1761  ;;  %v1759_v36 = vpop.permute.xlu0 %1758 }
  0xed   : > { %v1764_v37 = vsel %vm1763_vm8, %v1762_v35, %v1759_v36  ;;  %v1767_v38 = vsel %vm1763_vm8, %v1759_v36, %v1762_v35 }
  0xee   : > { %v1779_v40 = vmul.f32 %v4705_v30, %v1767_v38  ;;  %v1780_v16 = vmul.f32 %v4708_v31, %v1764_v37 }
  0xf0   : > { %v1921_v42 = vpack.c.bf16 %v1780_v16, %v1757_v15  ;;  %v1920_v43 = vpack.c.bf16 %v1779_v40, %v1756_v39 }
  0xf2   : > { %1955 = vmatprep.subr.bf16.mxu0 %v1921_v42 }
  0xf3   : > { %1956 = vmatpush1.bf16.msra.mxu0 %v1920_v43 }
  0xf6   : > { %4188 = vmatmul.mubr.msk.bf16.vlgmr.msra.gmra.mxu0 %vm1930_vm9, %v1919_v44 }
  0xf7   : > { %2970 = vmatprep.mubr.bf16.mxu0 %v5524_v2 }
  0xf9   : > { %v1986_v46 = vpop.permute.xlu0 %1985  ;;  %v1994_v49 = vpop.permute.xlu1 %1993 }
  0xfd   : > { %v2043_v10 = vpop.permute.xlu0 %2042  ;;  %v2025_v11 = vpop.permute.xlu1 %2024 }
 0x101   : > { %v2083_v12 = vpop.permute.xlu0 %2082  ;;  %v2063_v13 = vpop.permute.xlu1 %2062 }
 0x105   : > { %v4773_v14 = vpop.permute.xlu0 %2111  ;;  %v2092_v17 = vpop.permute.xlu1 %2091 }
 0x109   : > { %v4775_v18 = vpop.permute.xlu0 %2151  ;;  %v4777_v19 = vpop.permute.xlu1 %2131 }
 0x1b6   : > { %v1975_v47 = vpop.f32.mrf.mxu0 }
 0x1b7   : > { %v1988_v48 = vmul.f32 %v1986_v46, %v1975_v47 }
 0x1b8   : > { %v1977_v50 = vpop.f32.mrf.mxu0 }
 0x1b9   : > { %v4720_v51 = vadd.f32 %v1994_v49, %v1988_v48  ;;  %v1989_v55 = vmul.f32 %v1986_v46, %v1977_v50 }
 0x1ba   : > { %v1979_v52 = vpop.f32.mrf.mxu0 }
 0x1bb   : > { %v4723_v53 = vmax.f32 %v4720_v51, 0.0  ;;  %v4733_v56 = vadd.f32 %v1994_v49, %v1989_v55 }
 0x1bc   : > { %v1980_v54 = vpop.f32.mrf.mxu0 }
 0x1bd   : > { %2052 = vrot.lane.b32.xlu1 %v4723_v53, %s5516_s1  ;;  %2014 = vrot.lane.b32.xlu0 %v4723_v53, %s5510_s7  ;;  %v4740_v57 = vmax.f32 %v4733_v56, 0.0 }
 0x1c1   : > { %2098 = vrot.lane.b32.xlu1 %v4723_v53, %s5519_s28  ;;  %2032 = vrot.lane.b32.xlu0 %v4723_v53, %s5512_s10 }
 0x1c5   : > { %2138 = vrot.lane.b32.xlu1 %v4723_v53, %s5508_s26  ;;  %2072 = vrot.lane.b32.xlu0 %v4723_v53, %s5514_s2 }
 0x1c9   : > { %2010 = vrot.lane.b32.xlu1 %v4740_v57, %s5510_s7  ;;  %2118 = vrot.lane.b32.xlu0 %v4723_v53, %s5521_s22 }
 0x1cd   : > { %2029 = vrot.lane.b32.xlu1 %v4740_v57, %s5512_s10  ;;  %2049 = vrot.lane.b32.xlu0 %v4740_v57, %s5516_s1 }
 0x1d1   : > { %2069 = vrot.lane.b32.xlu1 %v4740_v57, %s5514_s2  ;;  %2100 = vrot.lane.b32.xlu0 %v4740_v57, %s5519_s28 }
 0x1d5   : > { %2171 = vperm.xlu1 %4277, %v2008_v58   ;;  %2140 = vrot.lane.b32.xlu0 %v4740_v57, %s5508_s26 }
 0x1d9   : > { %2120 = vrot.lane.b32.xlu1 %v4740_v57, %s5521_s22  ;;  %2158 = vrot.lane.b32.xlu0 %v4723_v53, %s5506_s23 }
 0x1dd   : > { %2160 = vrot.lane.b32.xlu1 %v4740_v57, %s5506_s23  ;;  %2235 = vperm.xlu0 %4276, %v2232_v59  }
 0x1e1   : > { %2243 = vperm.xlu1 %4277, %v2240_v60   ;;  %2274 = vperm.xlu0 %4276, %v2250_v61  }
 0x1e5   : > { %2292 = vperm.xlu1 %4277, %v2251_v62   ;;  %2312 = vperm.xlu0 %4276, %v2252_v63  }
 0x1e9   : > { %2332 = vperm.xlu1 %4277, %v2253_v1   ;;  %2341 = vperm.xlu0 %4276, %v2254_v0  }
 0x1ed   : > { %2361 = vperm.xlu1 %4277, %v2255_v7   ;;  %2381 = vperm.xlu0 %4276, %v2256_v8  }
 0x1f1   : > { %2401 = vperm.xlu1 %4277, %v2257_v9  }
 0x22f   : > { %v2053_v20 = vpop.permute.xlu1 %2052  ;;  %v2015_v21 = vpop.permute.xlu0 %2014 }
 0x233   : > { %v2099_v25 = vpop.permute.xlu1 %2098  ;;  %v2033_v32 = vpop.permute.xlu0 %2032 }
 0x237   : > { %v2139_v34 = vpop.permute.xlu1 %2138  ;;  %v2073_v35 = vpop.permute.xlu0 %2072 }
 0x23b   : > { %v2011_v36 = vpop.permute.xlu1 %2010  ;;  %v2119_v37 = vpop.permute.xlu0 %2118 }
 0x23c   : > { %v2016_v38 = vsel %vm1740_vm7, %v2015_v21, %v2011_v36  ;;  %v2019_v39 = vsel %vm1740_vm7, %v2011_v36, %v2015_v21 }
 0x23d   : > { %v2020_v46 = vmul.f32 %v2019_v39, %v4699_v26  ;;  %v2021_v47 = vmul.f32 %v2016_v38, %v4702_v28 }
 0x23f   : > { %v2030_v15 = vpop.permute.xlu1 %2029  ;;  %v2050_v42 = vpop.permute.xlu0 %2049  ;;  %v2027_v59 = vmul.f32 %v2025_v11, %v2020_v46  ;;  %v2028_v60 = vmul.f32 %v2025_v11, %v2021_v47 }
 0x240   : > { %v2034_v40 = vsel %vm1763_vm8, %v2033_v32, %v2030_v15  ;;  %v2037_v16 = vsel %vm1763_vm8, %v2030_v15, %v2033_v32  ;;  %v2054_v48 = vsel %vm1786_vm5, %v2053_v20, %v2050_v42  ;;  %v2057_v49 = vsel %vm1786_vm5, %v2050_v42, %v2053_v20 }
 0x241   : > { %v2038_v43 = vmul.f32 %v2037_v16, %v4705_v30  ;;  %v2039_v44 = vmul.f32 %v2034_v40, %v4708_v31  ;;  %v2058_v61 = vmul.f32 %v2057_v49, %v4677_v3  ;;  %v2059_v62 = vmul.f32 %v2054_v48, %v4680_v4 }
 0x242   : > { %v2094_v16 = vmul.f32 %v2092_v17, %v4723_v53  ;;  %v2095_v42 = vmul.f32 %v2092_v17, %v4740_v57 }
 0x243   : > { %v2070_v50 = vpop.permute.xlu1 %2069  ;;  %v2045_v52 = vmul.f32 %v2043_v10, %v2038_v43  ;;  %v2046_v54 = vmul.f32 %v2043_v10, %v2039_v44  ;;  %v2101_v8 = vpop.permute.xlu0 %2100  ;;  %v2065_v9 = vmul.f32 %v2063_v13, %v2058_v61  ;;  %v2066_v20 = vmul.f32 %v2063_v13, %v2059_v62 }
 0x244   : > { %v2074_v55 = vsel %vm1809_vm6, %v2073_v35, %v2070_v50  ;;  %v2077_v58 = vsel %vm1809_vm6, %v2070_v50, %v2073_v35  ;;  %v2102_v35 = vsel %vm1831_vm4, %v2099_v25, %v2101_v8  ;;  %v2106_v11 = vsel %vm1831_vm4, %v2101_v8, %v2099_v25 }
 0x245   : > { %v2047_v63 = vadd.f32 %v2045_v52, %v2027_v59  ;;  %v2048_v1 = vadd.f32 %v2046_v54, %v2028_v60  ;;  %v2078_v0 = vmul.f32 %v2077_v58, %v4683_v5  ;;  %v2079_v7 = vmul.f32 %v2074_v55, %v4686_v6 }
 0x246   : > { %v2107_v43 = vmul.f32 %v2102_v35, %v4655_v41  ;;  %v2108_v13 = vmul.f32 %v2106_v11, %v4661_v45 }
 0x247   : > { %v2067_v10 = vadd.f32 %v2065_v9, %v2047_v63  ;;  %v2068_v21 = vadd.f32 %v2066_v20, %v2048_v1  ;;  %v2085_v32 = vmul.f32 %v2083_v12, %v2078_v0  ;;  %v2086_v36 = vmul.f32 %v2083_v12, %v2079_v7  ;;  %v2141_v38 = vpop.permute.xlu0 %2140 }
 0x248   : > { %v2142_v44 = vsel %vm1877_vm2, %v2139_v34, %v2141_v38  ;;  %v2146_v12 = vsel %vm1877_vm2, %v2141_v38, %v2139_v34  ;;  %v2114_v57 = vmul.f32 %v4773_v14, %v2107_v43  ;;  %v2115_v17 = vmul.f32 %v4773_v14, %v2108_v13 }
 0x249   : > { %v2087_v39 = vadd.f32 %v2085_v32, %v2067_v10  ;;  %v2088_v15 = vadd.f32 %v2086_v36, %v2068_v21  ;;  %v2147_v25 = vmul.f32 %v2142_v44, %v4643_v29  ;;  %v2148_v49 = vmul.f32 %v2146_v12, %v4649_v33 }
 0x24b   : > { %v2096_v46 = vadd.f32 %v2094_v16, %v2087_v39  ;;  %v2097_v48 = vadd.f32 %v2095_v42, %v2088_v15  ;;  %v2159_v55 = vpop.permute.xlu0 %2158  ;;  %v2154_v62 = vmul.f32 %v4775_v18, %v2147_v25  ;;  %v2155_v14 = vmul.f32 %v4775_v18, %v2148_v49  ;;  %v2178_v18 = vld [vmem:[%s4386_s8] sm:$0xf] }
 0x24c   : > { %v2481_v25 = vld [vmem:[%s4371_s25] sm:$0xff] }
 0x24d   : > { %v2116_v34 = vadd.f32 %v2114_v57, %v2096_v46  ;;  %v2117_v61 = vadd.f32 %v2115_v17, %v2097_v48  ;;  %v2258_v48 = vld [vmem:[%s5556_s3 + $0x40] sm:$0xff]  ;;  %v2501_v57 = vld [vmem:[%s4416_s12 + $0x10] sm:$0xff]  ;;  %v2502_v17 = vld [vmem:[%s4416_s12 + $0x18] sm:$0xff]  ;;  %s5578_s3 = sld [smem:[#allocation17_spill]] }
 0x24e   : > { %v2489_v49 = vld [vmem:[%s4366_s21] sm:$0xff] }
 0x250   : > { %v2172_v40 = vpop.permute.xlu1 %2171 }
 0x254   : > { %v2121_v47 = vpop.permute.xlu1 %2120 }
 0x255   : > { %v2122_v50 = vsel %vm1854_vm1, %v2119_v37, %v2121_v47  ;;  %v2126_v53 = vsel %vm1854_vm1, %v2121_v47, %v2119_v37 }
 0x256   : > { %v2127_v52 = vmul.f32 %v2122_v50, %v4636_v24  ;;  %v2128_v54 = vmul.f32 %v2126_v53, %v4639_v27  ;;  %v2499_v50 = vld [vmem:[%s4416_s12] sm:$0xff]  ;;  %v2500_v53 = vld [vmem:[%s4416_s12 + $0x8] sm:$0xff] }
 0x258   : > { %v2134_v58 = vmul.f32 %v4777_v19, %v2127_v52  ;;  %v2135_v59 = vmul.f32 %v4777_v19, %v2128_v54  ;;  %v2161_v60 = vpop.permute.xlu1 %2160  ;;  %v2236_v38 = vpop.permute.xlu0 %2235  ;;  %v2503_v52 = vld [vmem:[%s4416_s12 + $0x20] sm:$0xff]  ;;  %v2504_v54 = vld [vmem:[%s4416_s12 + $0x28] sm:$0xff] }
 0x259   : > { %v2162_v37 = vsel %vm1900_vm0, %v2159_v55, %v2161_v60  ;;  %v2166_v63 = vsel %vm1900_vm0, %v2161_v60, %v2159_v55  ;;  %v2506_v55 = vld [vmem:[%s4416_s12 + $0x38] sm:$0xff] }
 0x25a   : > { %v2167_v1 = vmul.f32 %v2162_v37, %v4633_v23  ;;  %v2168_v0 = vmul.f32 %v2166_v63, %v4630_v22  ;;  %v2137_v7 = vadd.f32 %v2135_v59, %v2117_v61  ;;  %v2136_v8 = vadd.f32 %v2134_v58, %v2116_v34  ;;  %v2505_v34 = vld [vmem:[%s4416_s12 + $0x30] sm:$0xff] }
 0x25c   : > { %v2157_v9 = vadd.f32 %v2155_v14, %v2137_v7  ;;  %v2175_v20 = vmul.f32 %v2172_v40, %v2168_v0  ;;  %v2156_v19 = vadd.f32 %v2154_v62, %v2136_v8  ;;  %v2174_v10 = vmul.f32 %v2172_v40, %v2167_v1  ;;  %v2244_v16 = vpop.permute.xlu1 %2243  ;;  %v2275_v58 = vpop.permute.xlu0 %2274 }
 0x25e   : > { %v2177_v21 = vadd.f32 %v2175_v20, %v2157_v9  ;;  %v2176_v32 = vadd.f32 %v2174_v10, %v2156_v19 }
 0x260   : > { %v2180_v36 = vpack.c.bf16 %v2177_v21, %v2177_v21  ;;  %v2179_v35 = vpack.c.bf16 %v2176_v32, %v2176_v32  ;;  %v2293_v59 = vpop.permute.xlu1 %2292  ;;  %v2313_v60 = vpop.permute.xlu0 %2312 }
 0x262   : > { %4189 = vmatprep.subr.msk.bf16.mxu1 %vm1934_vm3, %v2180_v36  ;;  %v2186_v11 = vsel %vm1934_vm3, %v2179_v35, 0 }
 0x263   : > { %2206 = vmatpush1.bf16.msra.mxu1 %v2186_v11 }
 0x264   : > { %v2333_v61 = vpop.permute.xlu1 %2332  ;;  %v2342_v62 = vpop.permute.xlu0 %2341 }
 0x266   : > { %4190 = vmatmul.mubr.msk.bf16.vlgmr.msra.gmra.mxu1 %vm2181_vm10, %v2178_v18 }
 0x267   : > { %2472 = vmatprep.mubr.bf16.mxu1 %v5524_v2 }
 0x268   : > { %v4871_v37 = vpop.permute.xlu1 %2361  ;;  %v4873_v63 = vpop.permute.xlu0 %2381 }
 0x26c   : > { %v4875_v14 = vpop.permute.xlu1 %2401 }
 0x326   : > { %v2225_v39 = vpop.f32.mrf.mxu1 }
 0x327   : > { %v2238_v15 = vmul.f32 %v2236_v38, %v2225_v39 }
 0x328   : > { %v2227_v40 = vpop.f32.mrf.mxu1 }
 0x329   : > { %v2246_v42 = vadd.f32 %v2244_v16, %v2238_v15  ;;  %v2239_v12 = vmul.f32 %v2236_v38, %v2227_v40 }
 0x32a   : > { %v2229_v43 = vpop.f32.mrf.mxu1 }
 0x32b   : > { %v4824_v13 = vmax.f32 %v2246_v42, 0.0  ;;  %v2247_v46 = vadd.f32 %v2244_v16, %v2239_v12 }
 0x32c   : > { %v2230_v44 = vpop.f32.mrf.mxu1 }
 0x32d   : > { %2302 = vrot.lane.b32.xlu0 %v4824_v13, %s5516_s1  ;;  %2264 = vrot.lane.b32.xlu1 %v4824_v13, %s5510_s7  ;;  %v4838_v47 = vmax.f32 %v2247_v46, 0.0 }
 0x331   : > { %2348 = vrot.lane.b32.xlu0 %v4824_v13, %s5519_s28  ;;  %2282 = vrot.lane.b32.xlu1 %v4824_v13, %s5512_s10 }
 0x335   : > { %2388 = vrot.lane.b32.xlu0 %v4824_v13, %s5508_s26  ;;  %2322 = vrot.lane.b32.xlu1 %v4824_v13, %s5514_s2 }
 0x339   : > { %2260 = vrot.lane.b32.xlu0 %v4838_v47, %s5510_s7  ;;  %2368 = vrot.lane.b32.xlu1 %v4824_v13, %s5521_s22 }
 0x33d   : > { %2279 = vrot.lane.b32.xlu0 %v4838_v47, %s5512_s10  ;;  %2299 = vrot.lane.b32.xlu1 %v4838_v47, %s5516_s1 }
 0x341   : > { %2319 = vrot.lane.b32.xlu0 %v4838_v47, %s5514_s2  ;;  %2350 = vrot.lane.b32.xlu1 %v4838_v47, %s5519_s28 }
 0x345   : > { %2421 = vperm.xlu0 %4276, %v2258_v48   ;;  %2390 = vrot.lane.b32.xlu1 %v4838_v47, %s5508_s26 }
 0x349   : > { %2370 = vrot.lane.b32.xlu0 %v4838_v47, %s5521_s22  ;;  %2408 = vrot.lane.b32.xlu1 %v4824_v13, %s5506_s23 }
 0x34d   : > { %2410 = vrot.lane.b32.xlu0 %v4838_v47, %s5506_s23  ;;  %2484 = vperm.xlu1 %4277, %v2481_v25  }
 0x351   : > { %2492 = vperm.xlu0 %4276, %v2489_v49   ;;  %2523 = vperm.xlu1 %4277, %v2499_v50  }
 0x355   : > { %2541 = vperm.xlu0 %4276, %v2500_v53   ;;  %2561 = vperm.xlu1 %4277, %v2501_v57  }
 0x359   : > { %2581 = vperm.xlu0 %4276, %v2502_v17   ;;  %2590 = vperm.xlu1 %4277, %v2503_v52  }
 0x35d   : > { %2610 = vperm.xlu0 %4276, %v2504_v54   ;;  %2630 = vperm.xlu1 %4277, %v2505_v34  }
 0x361   : > { %2650 = vperm.xlu0 %4276, %v2506_v55  }
 0x39f   : > { %v2265_v1 = vpop.permute.xlu1 %2264  ;;  %v2303_v0 = vpop.permute.xlu0 %2302 }
 0x3a3   : > { %v2283_v7 = vpop.permute.xlu1 %2282  ;;  %v2349_v8 = vpop.permute.xlu0 %2348 }
 0x3a7   : > { %v2323_v9 = vpop.permute.xlu1 %2322  ;;  %v2389_v20 = vpop.permute.xlu0 %2388 }
 0x3ab   : > { %v2369_v19 = vpop.permute.xlu1 %2368  ;;  %v2261_v10 = vpop.permute.xlu0 %2260 }
 0x3ac   : > { %v2266_v21 = vsel %vm1740_vm7, %v2265_v1, %v2261_v10  ;;  %v2269_v32 = vsel %vm1740_vm7, %v2261_v10, %v2265_v1 }
 0x3ad   : > { %v2270_v15 = vmul.f32 %v2269_v32, %v4699_v26  ;;  %v2271_v16 = vmul.f32 %v2266_v21, %v4702_v28 }
 0x3af   : > { %v2280_v36 = vpop.permute.xlu0 %2279  ;;  %v2300_v35 = vpop.permute.xlu1 %2299  ;;  %v2277_v25 = vmul.f32 %v2275_v58, %v2270_v15  ;;  %v2278_v49 = vmul.f32 %v2275_v58, %v2271_v16 }
 0x3b0   : > { %v2284_v11 = vsel %vm1763_vm8, %v2283_v7, %v2280_v36  ;;  %v2287_v18 = vsel %vm1763_vm8, %v2280_v36, %v2283_v7  ;;  %v2304_v40 = vsel %vm1786_vm5, %v2303_v0, %v2300_v35  ;;  %v2307_v42 = vsel %vm1786_vm5, %v2300_v35, %v2303_v0 }
 0x3b1   : > { %v2288_v38 = vmul.f32 %v2287_v18, %v4705_v30  ;;  %v2289_v39 = vmul.f32 %v2284_v11, %v4708_v31  ;;  %v2308_v50 = vmul.f32 %v2307_v42, %v4677_v3  ;;  %v2309_v53 = vmul.f32 %v2304_v40, %v4680_v4 }
 0x3b2   : > { %v2344_v11 = vmul.f32 %v2342_v62, %v4824_v13  ;;  %v2345_v18 = vmul.f32 %v2342_v62, %v4838_v47 }
 0x3b3   : > { %v2320_v43 = vpop.permute.xlu0 %2319  ;;  %v2295_v44 = vmul.f32 %v2293_v59, %v2288_v38  ;;  %v2296_v12 = vmul.f32 %v2293_v59, %v2289_v39  ;;  %v2351_v34 = vpop.permute.xlu1 %2350  ;;  %v2315_v55 = vmul.f32 %v2313_v60, %v2308_v50  ;;  %v2316_v1 = vmul.f32 %v2313_v60, %v2309_v53 }
 0x3b4   : > { %v2324_v46 = vsel %vm1809_vm6, %v2323_v9, %v2320_v43  ;;  %v2327_v48 = vsel %vm1809_vm6, %v2320_v43, %v2323_v9  ;;  %v2352_v9 = vsel %vm1831_vm4, %v2349_v8, %v2351_v34  ;;  %v2356_v58 = vsel %vm1831_vm4, %v2351_v34, %v2349_v8 }
 0x3b5   : > { %v2297_v57 = vadd.f32 %v2295_v44, %v2277_v25  ;;  %v2298_v17 = vadd.f32 %v2296_v12, %v2278_v49  ;;  %v2328_v52 = vmul.f32 %v2327_v48, %v4683_v5  ;;  %v2329_v54 = vmul.f32 %v2324_v46, %v4686_v6 }
 0x3b6   : > { %v2357_v38 = vmul.f32 %v2352_v9, %v4655_v41  ;;  %v2358_v60 = vmul.f32 %v2356_v58, %v4661_v45  ;;  %v2428_v58 = vld [vmem:[%s4391_s14] sm:$0xf] }
 0x3b7   : > { %v2317_v59 = vadd.f32 %v2315_v55, %v2297_v57  ;;  %v2318_v0 = vadd.f32 %v2316_v1, %v2298_v17  ;;  %v2335_v7 = vmul.f32 %v2333_v61, %v2328_v52  ;;  %v2336_v10 = vmul.f32 %v2333_v61, %v2329_v54  ;;  %v2391_v21 = vpop.permute.xlu1 %2390 }
 0x3b8   : > { %v2392_v39 = vsel %vm1877_vm2, %v2389_v20, %v2391_v21  ;;  %v2396_v61 = vsel %vm1877_vm2, %v2391_v21, %v2389_v20  ;;  %v2364_v47 = vmul.f32 %v4871_v37, %v2357_v38  ;;  %v2365_v62 = vmul.f32 %v4871_v37, %v2358_v60 }
 0x3b9   : > { %v2337_v32 = vadd.f32 %v2335_v7, %v2317_v59  ;;  %v2338_v36 = vadd.f32 %v2336_v10, %v2318_v0  ;;  %v2397_v8 = vmul.f32 %v2392_v39, %v4643_v29  ;;  %v2398_v42 = vmul.f32 %v2396_v61, %v4649_v33 }
 0x3bb   : > { %v2346_v15 = vadd.f32 %v2344_v11, %v2337_v32  ;;  %v2347_v16 = vadd.f32 %v2345_v18, %v2338_v36  ;;  %v2409_v20 = vpop.permute.xlu1 %2408  ;;  %v2404_v53 = vmul.f32 %v4875_v14, %v2397_v8  ;;  %v2730_v8 = vld [vmem:[%s4401_s24] sm:$0xff] }
 0x3bd   : > { %v2366_v46 = vadd.f32 %v2364_v47, %v2346_v15  ;;  %v2367_v48 = vadd.f32 %v2365_v62, %v2347_v16  ;;  %v2750_v47 = vld [vmem:[%s4421_s20 + $0x10] sm:$0xff]  ;;  %v2751_v62 = vld [vmem:[%s4421_s20 + $0x18] sm:$0xff] }
 0x3c0   : > { %v2422_v35 = vpop.permute.xlu0 %2421 }
 0x3c4   : > { %v2371_v40 = vpop.permute.xlu0 %2370 }
 0x3c5   : > { %v2372_v43 = vsel %vm1854_vm1, %v2369_v19, %v2371_v40  ;;  %v2376_v13 = vsel %vm1854_vm1, %v2371_v40, %v2369_v19  ;;  %v2405_v19 = vmul.f32 %v4875_v14, %v2398_v42  ;;  %v2507_v40 = vld [vmem:[%s4416_s12 + $0x40] sm:$0xff] }
 0x3c6   : > { %v2377_v44 = vmul.f32 %v2372_v43, %v4636_v24  ;;  %v2378_v12 = vmul.f32 %v2376_v13, %v4639_v27  ;;  %v2738_v42 = vld [vmem:[%s4396_s19] sm:$0xff]  ;;  %v2749_v13 = vld [vmem:[%s4421_s20 + $0x8] sm:$0xff] }
 0x3c7   : > { %v2748_v43 = vld [vmem:[%s4421_s20] sm:$0xff] }
 0x3c8   : > { %v2384_v25 = vmul.f32 %v4873_v63, %v2377_v44  ;;  %v2385_v49 = vmul.f32 %v4873_v63, %v2378_v12  ;;  %v2411_v50 = vpop.permute.xlu0 %2410  ;;  %v2485_v21 = vpop.permute.xlu1 %2484  ;;  %v2752_v44 = vld [vmem:[%s4421_s20 + $0x20] sm:$0xff]  ;;  %v2753_v12 = vld [vmem:[%s4421_s20 + $0x28] sm:$0xff] }
 0x3c9   : > { %v2412_v57 = vsel %vm1900_vm0, %v2409_v20, %v2411_v50  ;;  %v2416_v37 = vsel %vm1900_vm0, %v2411_v50, %v2409_v20  ;;  %v2754_v20 = vld [vmem:[%s4421_s20 + $0x30] sm:$0xff] }
 0x3ca   : > { %v2386_v17 = vadd.f32 %v2384_v25, %v2366_v46  ;;  %v2387_v52 = vadd.f32 %v2385_v49, %v2367_v48  ;;  %v2417_v54 = vmul.f32 %v2412_v57, %v4633_v23  ;;  %v2418_v34 = vmul.f32 %v2416_v37, %v4630_v22  ;;  %v2755_v46 = vld [vmem:[%s4421_s20 + $0x38] sm:$0xff] }
 0x3cc   : > { %v2424_v55 = vmul.f32 %v2422_v35, %v2417_v54  ;;  %v2425_v1 = vmul.f32 %v2422_v35, %v2418_v34  ;;  %v2407_v59 = vadd.f32 %v2405_v19, %v2387_v52  ;;  %v2406_v63 = vadd.f32 %v2404_v53, %v2386_v17  ;;  %v2493_v35 = vpop.permute.xlu0 %2492  ;;  %v2524_v48 = vpop.permute.xlu1 %2523 }
 0x3ce   : > { %v2427_v0 = vadd.f32 %v2425_v1, %v2407_v59  ;;  %v2426_v7 = vadd.f32 %v2424_v55, %v2406_v63 }
 0x3d0   : > { %v2430_v10 = vpack.c.bf16 %v2427_v0, %v2427_v0  ;;  %v2429_v9 = vpack.c.bf16 %v2426_v7, %v2426_v7  ;;  %v2542_v25 = vpop.permute.xlu0 %2541  ;;  %v2562_v49 = vpop.permute.xlu1 %2561 }
 0x3d2   : > { %4191 = vmatprep.subr.msk.bf16.mxu1 %vm1934_vm3, %v2430_v10  ;;  %v2435_v14 = vsel %vm1934_vm3, %v2429_v9, 0 }
 0x3d3   : > { %2455 = vmatpush1.bf16.msra.mxu1 %v2435_v14 }
 0x3d4   : > { %v2582_v50 = vpop.permute.xlu0 %2581  ;;  %v2591_v53 = vpop.permute.xlu1 %2590 }
 0x3d6   : > { %4192 = vmatmul.mubr.msk.bf16.vlgmr.msra.gmra.mxu1 %vm2181_vm10, %v2428_v58 }
 0x3d7   : > { %2721 = vmatprep.mubr.bf16.mxu1 %v5524_v2 }
 0x3d8   : > { %v4975_v19 = vpop.permute.xlu0 %2610  ;;  %v4977_v57 = vpop.permute.xlu1 %2630 }
 0x3dc   : > { %v4979_v37 = vpop.permute.xlu0 %2650 }
 0x496   : > { %v2474_v32 = vpop.f32.mrf.mxu1 }
 0x497   : > { %v2487_v36 = vmul.f32 %v2485_v21, %v2474_v32 }
 0x498   : > { %v2476_v11 = vpop.f32.mrf.mxu1 }
 0x499   : > { %v4922_v18 = vadd.f32 %v2493_v35, %v2487_v36  ;;  %v2488_v61 = vmul.f32 %v2485_v21, %v2476_v11 }
 0x49a   : > { %v2478_v38 = vpop.f32.mrf.mxu1 }
 0x49b   : > { %v4925_v60 = vmax.f32 %v4922_v18, 0.0  ;;  %v4935_v15 = vadd.f32 %v2493_v35, %v2488_v61 }
 0x49c   : > { %v2479_v39 = vpop.f32.mrf.mxu1 }
 0x49d   : > { %2551 = vrot.lane.b32.xlu1 %v4925_v60, %s5516_s1  ;;  %2513 = vrot.lane.b32.xlu0 %v4925_v60, %s5510_s7  ;;  %v4942_v16 = vmax.f32 %v4935_v15, 0.0 }
 0x4a1   : > { %2597 = vrot.lane.b32.xlu1 %v4925_v60, %s5519_s28  ;;  %2531 = vrot.lane.b32.xlu0 %v4925_v60, %s5512_s10 }
 0x4a5   : > { %2637 = vrot.lane.b32.xlu1 %v4925_v60, %s5508_s26  ;;  %2571 = vrot.lane.b32.xlu0 %v4925_v60, %s5514_s2 }
 0x4a9   : > { %2509 = vrot.lane.b32.xlu1 %v4942_v16, %s5510_s7  ;;  %2617 = vrot.lane.b32.xlu0 %v4925_v60, %s5521_s22 }
 0x4ad   : > { %2528 = vrot.lane.b32.xlu1 %v4942_v16, %s5512_s10  ;;  %2548 = vrot.lane.b32.xlu0 %v4942_v16, %s5516_s1 }
 0x4b1   : > { %2568 = vrot.lane.b32.xlu1 %v4942_v16, %s5514_s2  ;;  %2599 = vrot.lane.b32.xlu0 %v4942_v16, %s5519_s28 }
 0x4b5   : > { %2670 = vperm.xlu1 %4277, %v2507_v40   ;;  %2639 = vrot.lane.b32.xlu0 %v4942_v16, %s5508_s26 }
 0x4b9   : > { %2619 = vrot.lane.b32.xlu1 %v4942_v16, %s5521_s22  ;;  %2657 = vrot.lane.b32.xlu0 %v4925_v60, %s5506_s23 }
 0x4bd   : > { %2659 = vrot.lane.b32.xlu1 %v4942_v16, %s5506_s23  ;;  %2733 = vperm.xlu0 %4276, %v2730_v8   ;;  %s5564_s23 = sld [smem:[#allocation24_spill]] }
 0x4c1   : > { %2741 = vperm.xlu1 %4277, %v2738_v42   ;;  %2772 = vperm.xlu0 %4276, %v2748_v43  }
 0x4c5   : > { %2790 = vperm.xlu1 %4277, %v2749_v13   ;;  %2810 = vperm.xlu0 %4276, %v2750_v47  }
 0x4c9   : > { %2830 = vperm.xlu1 %4277, %v2751_v62   ;;  %2839 = vperm.xlu0 %4276, %v2752_v44  }
 0x4cd   : > { %2859 = vperm.xlu1 %4277, %v2753_v12   ;;  %2879 = vperm.xlu0 %4276, %v2754_v20  }
 0x4d1   : > { %2899 = vperm.xlu1 %4277, %v2755_v46  }
 0x50f   : > { %v2552_v17 = vpop.permute.xlu1 %2551  ;;  %v2514_v52 = vpop.permute.xlu0 %2513 }
 0x513   : > { %v2598_v54 = vpop.permute.xlu1 %2597  ;;  %v2532_v34 = vpop.permute.xlu0 %2531 }
 0x517   : > { %v2638_v55 = vpop.permute.xlu1 %2637  ;;  %v2572_v1 = vpop.permute.xlu0 %2571 }
 0x51b   : > { %v2510_v59 = vpop.permute.xlu1 %2509  ;;  %v2618_v63 = vpop.permute.xlu0 %2617 }
 0x51c   : > { %v2515_v0 = vsel %vm1740_vm7, %v2514_v52, %v2510_v59  ;;  %v2518_v7 = vsel %vm1740_vm7, %v2510_v59, %v2514_v52 }
 0x51d   : > { %v2519_v36 = vmul.f32 %v2518_v7, %v4699_v26  ;;  %v2520_v35 = vmul.f32 %v2515_v0, %v4702_v28 }
 0x51f   : > { %v2529_v10 = vpop.permute.xlu1 %2528  ;;  %v2549_v58 = vpop.permute.xlu0 %2548  ;;  %v2526_v43 = vmul.f32 %v2524_v48, %v2519_v36  ;;  %v2527_v13 = vmul.f32 %v2524_v48, %v2520_v35 }
 0x520   : > { %v2533_v9 = vsel %vm1763_vm8, %v2532_v34, %v2529_v10  ;;  %v2536_v14 = vsel %vm1763_vm8, %v2529_v10, %v2532_v34  ;;  %v2553_v11 = vsel %vm1786_vm5, %v2552_v17, %v2549_v58  ;;  %v2556_v38 = vsel %vm1786_vm5, %v2549_v58, %v2552_v17 }
 0x521   : > { %v2537_v21 = vmul.f32 %v2536_v14, %v4705_v30  ;;  %v2538_v32 = vmul.f32 %v2533_v9, %v4708_v31  ;;  %v2557_v47 = vmul.f32 %v2556_v38, %v4677_v3  ;;  %v2558_v62 = vmul.f32 %v2553_v11, %v4680_v4 }
 0x523   : > { %v2569_v39 = vpop.permute.xlu1 %2568  ;;  %v2544_v61 = vmul.f32 %v2542_v25, %v2537_v21  ;;  %v2545_v40 = vmul.f32 %v2542_v25, %v2538_v32  ;;  %v2600_v17 = vpop.permute.xlu0 %2599  ;;  %v2564_v52 = vmul.f32 %v2562_v49, %v2557_v47  ;;  %v2565_v34 = vmul.f32 %v2562_v49, %v2558_v62 }
 0x524   : > { %v2573_v8 = vsel %vm1809_vm6, %v2572_v1, %v2569_v39  ;;  %v2576_v42 = vsel %vm1809_vm6, %v2569_v39, %v2572_v1  ;;  %v2601_v1 = vsel %vm1831_vm4, %v2598_v54, %v2600_v17  ;;  %v2605_v48 = vsel %vm1831_vm4, %v2600_v17, %v2598_v54 }
 0x525   : > { %v2546_v44 = vadd.f32 %v2544_v61, %v2526_v43  ;;  %v2547_v12 = vadd.f32 %v2545_v40, %v2527_v13  ;;  %v2577_v20 = vmul.f32 %v2576_v42, %v4683_v5  ;;  %v2578_v46 = vmul.f32 %v2573_v8, %v4686_v6 }
 0x526   : > { %v2593_v21 = vmul.f32 %v2591_v53, %v4925_v60  ;;  %v2594_v32 = vmul.f32 %v2591_v53, %v4942_v16  ;;  %v2606_v36 = vmul.f32 %v2601_v1, %v4655_v41  ;;  %v2607_v49 = vmul.f32 %v2605_v48, %v4661_v45 }
 0x527   : > { %v2566_v25 = vadd.f32 %v2564_v52, %v2546_v44  ;;  %v2567_v59 = vadd.f32 %v2565_v34, %v2547_v12  ;;  %v2584_v0 = vmul.f32 %v2582_v50, %v2577_v20  ;;  %v2585_v7 = vmul.f32 %v2582_v50, %v2578_v46  ;;  %v2640_v10 = vpop.permute.xlu0 %2639 }
 0x528   : > { %v2641_v35 = vsel %vm1877_vm2, %v2638_v55, %v2640_v10  ;;  %v2645_v50 = vsel %vm1877_vm2, %v2640_v10, %v2638_v55  ;;  %v2613_v53 = vmul.f32 %v4975_v19, %v2606_v36  ;;  %v2614_v42 = vmul.f32 %v4975_v19, %v2607_v49 }
 0x529   : > { %v2586_v9 = vadd.f32 %v2584_v0, %v2566_v25  ;;  %v2587_v14 = vadd.f32 %v2585_v7, %v2567_v59  ;;  %v2646_v54 = vmul.f32 %v2641_v35, %v4643_v29  ;;  %v2647_v61 = vmul.f32 %v2645_v50, %v4649_v33 }
 0x52b   : > { %v2595_v11 = vadd.f32 %v2593_v21, %v2586_v9  ;;  %v2596_v38 = vadd.f32 %v2594_v32, %v2587_v14  ;;  %v2658_v62 = vpop.permute.xlu0 %2657  ;;  %v2653_v46 = vmul.f32 %v4979_v37, %v2646_v54  ;;  %v2677_v21 = vld [vmem:[%s5560_s11] sm:$0xf]  ;;  %s5562_s11 = sld [smem:[#allocation4_spill]] }
 0x52d   : > { %v2615_v55 = vadd.f32 %v2613_v53, %v2595_v11  ;;  %v2616_v47 = vadd.f32 %v2614_v42, %v2596_v38  ;;  %v2979_v53 = vld [vmem:[%s5561_s18] sm:$0xff]  ;;  %s5572_s18 = smov 17  }
 0x530   : > { %v2671_v58 = vpop.permute.xlu1 %2670 }
 0x531   : > { %v2987_v42 = vld [vmem:[%s5562_s11] sm:$0xff]  ;;  %s5573_s11 = smov 16  }
 0x534   : > { %v2620_v39 = vpop.permute.xlu1 %2619 }
 0x535   : > { %v2621_v40 = vsel %vm1854_vm1, %v2618_v63, %v2620_v39  ;;  %v2625_v8 = vsel %vm1854_vm1, %v2620_v39, %v2618_v63  ;;  %v2654_v63 = vmul.f32 %v4979_v37, %v2647_v61 }
 0x536   : > { %v2626_v43 = vmul.f32 %v2621_v40, %v4636_v24  ;;  %v2627_v13 = vmul.f32 %v2625_v8, %v4639_v27  ;;  %v2756_v8 = vld [vmem:[%s4421_s20 + $0x40] sm:$0xff] }
 0x538   : > { %v2633_v44 = vmul.f32 %v4977_v57, %v2626_v43  ;;  %v2634_v12 = vmul.f32 %v4977_v57, %v2627_v13  ;;  %v2660_v20 = vpop.permute.xlu1 %2659  ;;  %v2734_v32 = vpop.permute.xlu0 %2733  ;;  %v3048_v43 = vld [vmem:[%s5563_s0] sm:$0xff]  ;;  %s5569_s0 = sld [smem:[#allocation7_spill]] }
 0x539   : > { %v2661_v17 = vsel %vm1900_vm0, %v2658_v62, %v2660_v20  ;;  %v2665_v19 = vsel %vm1900_vm0, %v2660_v20, %v2658_v62  ;;  %v3056_v13 = vld [vmem:[%s5564_s23] sm:$0xff]  ;;  %s5570_s23 = sld [smem:[#allocation26_spill]] }
 0x53a   : > { %v2635_v52 = vadd.f32 %v2633_v44, %v2615_v55  ;;  %v2636_v34 = vadd.f32 %v2634_v12, %v2616_v47  ;;  %v2666_v25 = vmul.f32 %v2661_v17, %v4633_v23  ;;  %v2667_v59 = vmul.f32 %v2665_v19, %v4630_v22 }
 0x53c   : > { %v2673_v0 = vmul.f32 %v2671_v58, %v2666_v25  ;;  %v2674_v7 = vmul.f32 %v2671_v58, %v2667_v59  ;;  %v2656_v1 = vadd.f32 %v2654_v63, %v2636_v34  ;;  %v2655_v57 = vadd.f32 %v2653_v46, %v2635_v52  ;;  %v2742_v58 = vpop.permute.xlu1 %2741  ;;  %v2773_v25 = vpop.permute.xlu0 %2772 }
 0x53e   : > { %v2676_v48 = vadd.f32 %v2674_v7, %v2656_v1  ;;  %v2675_v10 = vadd.f32 %v2673_v0, %v2655_v57 }
 0x540   : > { %v2679_v9 = vpack.c.bf16 %v2676_v48, %v2676_v48  ;;  %v2678_v14 = vpack.c.bf16 %v2675_v10, %v2675_v10  ;;  %v2791_v59 = vpop.permute.xlu1 %2790  ;;  %v2811_v0 = vpop.permute.xlu0 %2810 }
 0x542   : > { %4193 = vmatprep.subr.msk.bf16.mxu1 %vm1934_vm3, %v2679_v9  ;;  %v2684_v37 = vsel %vm1934_vm3, %v2678_v14, 0 }
 0x543   : > { %2704 = vmatpush1.bf16.msra.mxu1 %v2684_v37 }
 0x544   : > { %v2831_v7 = vpop.permute.xlu1 %2830  ;;  %v2840_v1 = vpop.permute.xlu0 %2839 }
 0x546   : > { %4194 = vmatmul.mubr.msk.bf16.vlgmr.msra.gmra.mxu1 %vm2181_vm10, %v2677_v21 }
 0x547   : > { %3039 = vmatprep.mubr.bf16.mxu1 %v5524_v2 }
 0x548   : > { %v5079_v57 = vpop.permute.xlu1 %2859  ;;  %v5081_v48 = vpop.permute.xlu0 %2879 }
 0x54c   : > { %v5083_v10 = vpop.permute.xlu1 %2899 }
 0x606   : > { %v2723_v36 = vpop.f32.mrf.mxu1 }
 0x607   : > { %v2736_v49 = vmul.f32 %v2734_v32, %v2723_v36 }
 0x608   : > { %v2725_v35 = vpop.f32.mrf.mxu1 }
 0x609   : > { %v2744_v50 = vadd.f32 %v2742_v58, %v2736_v49  ;;  %v2737_v54 = vmul.f32 %v2734_v32, %v2725_v35 }
 0x60a   : > { %v2727_v11 = vpop.f32.mrf.mxu1 }
 0x60b   : > { %v5026_v38 = vmax.f32 %v2744_v50, 0.0  ;;  %v2745_v61 = vadd.f32 %v2742_v58, %v2737_v54 }
 0x60c   : > { %v2728_v39 = vpop.f32.mrf.mxu1 }
 0x60d   : > { %2800 = vrot.lane.b32.xlu0 %v5026_v38, %s5516_s1  ;;  %2762 = vrot.lane.b32.xlu1 %v5026_v38, %s5510_s7  ;;  %v5040_v40 = vmax.f32 %v2745_v61, 0.0 }
 0x611   : > { %2846 = vrot.lane.b32.xlu0 %v5026_v38, %s5519_s28  ;;  %2780 = vrot.lane.b32.xlu1 %v5026_v38, %s5512_s10 }
 0x615   : > { %2886 = vrot.lane.b32.xlu0 %v5026_v38, %s5508_s26  ;;  %2820 = vrot.lane.b32.xlu1 %v5026_v38, %s5514_s2  ;;  %s5565_s26 = sld [smem:[#allocation12_spill]] }
 0x619   : > { %2758 = vrot.lane.b32.xlu0 %v5040_v40, %s5510_s7  ;;  %2866 = vrot.lane.b32.xlu1 %v5026_v38, %s5521_s22  ;;  %s5566_s7 = smov 112  }
 0x61b   : > { %v3066_v55 = vld [vmem:[%s5565_s26] sm:$0xff]  ;;  %v3067_v47 = vld [vmem:[%s5565_s26 + $0x8] sm:$0xff]  ;;  %v3068_v62 = vld [vmem:[%s5565_s26 + $0x10] sm:$0xff] }
 0x61c   : > { %v3069_v44 = vld [vmem:[%s5565_s26 + $0x18] sm:$0xff]  ;;  %v3070_v12 = vld [vmem:[%s5565_s26 + $0x20] sm:$0xff]  ;;  %v3071_v20 = vld [vmem:[%s5565_s26 + $0x28] sm:$0xff] }
 0x61d   : > { %2777 = vrot.lane.b32.xlu0 %v5040_v40, %s5512_s10  ;;  %2797 = vrot.lane.b32.xlu1 %v5040_v40, %s5516_s1  ;;  %s5567_s10 = smov 111   ;;  %v3072_v17 = vld [vmem:[%s5565_s26 + $0x30] sm:$0xff]  ;;  %v3073_v52 = vld [vmem:[%s5565_s26 + $0x38] sm:$0xff] }
 0x621   : > { %2817 = vrot.lane.b32.xlu0 %v5040_v40, %s5514_s2  ;;  %2848 = vrot.lane.b32.xlu1 %v5040_v40, %s5519_s28  ;;  %s5568_s2 = sld [smem:[#allocation20_spill]] }
 0x625   : > { %2919 = vperm.xlu0 %4276, %v2756_v8   ;;  %2888 = vrot.lane.b32.xlu1 %v5040_v40, %s5566_s7 }
 0x627   : > { %v3564_v46 = vld [vmem:[%s5568_s2] sm:$0xff]  ;;  %v3565_v63 = vld [vmem:[%s5568_s2 + $0x8] sm:$0xff]  ;;  %v3566_v19 = vld [vmem:[%s5568_s2 + $0x10] sm:$0xff] }
 0x628   : > { %v3567_v34 = vld [vmem:[%s5568_s2 + $0x18] sm:$0xff] }
 0x629   : > { %2868 = vrot.lane.b32.xlu0 %v5040_v40, %s5521_s22  ;;  %2906 = vrot.lane.b32.xlu1 %v5026_v38, %s5567_s10 }
 0x62d   : > { %2908 = vrot.lane.b32.xlu0 %v5040_v40, %s5567_s10  ;;  %2982 = vperm.xlu1 %4277, %v2979_v53  }
 0x631   : > { %2990 = vperm.xlu0 %4276, %v2987_v42   ;;  %3051 = vperm.xlu1 %4277, %v3048_v43  }
 0x635   : > { %3059 = vperm.xlu0 %4276, %v3056_v13   ;;  %3090 = vperm.xlu1 %4277, %v3066_v55  }
 0x639   : > { %3108 = vperm.xlu0 %4276, %v3067_v47   ;;  %3128 = vperm.xlu1 %4277, %v3068_v62  }
 0x63d   : > { %3148 = vperm.xlu0 %4276, %v3069_v44   ;;  %3157 = vperm.xlu1 %4277, %v3070_v12  }
 0x641   : > { %3177 = vperm.xlu0 %4276, %v3071_v20   ;;  %3575 = vperm.xlu1 %4277, %v3564_v46  }
 0x645   : > { %3582 = vperm.xlu0 %4276, %v3565_v63   ;;  %3197 = vperm.xlu1 %4277, %v3072_v17  }
 0x649   : > { %3591 = vperm.xlu0 %4276, %v3566_v19   ;;  %3217 = vperm.xlu1 %4277, %v3073_v52  }
 0x64d   : > { %3600 = vperm.xlu0 %4276, %v3567_v34  }
 0x67f   : > { %v2763_v9 = vpop.permute.xlu1 %2762  ;;  %v2801_v14 = vpop.permute.xlu0 %2800 }
 0x683   : > { %v2781_v37 = vpop.permute.xlu1 %2780  ;;  %v2847_v21 = vpop.permute.xlu0 %2846 }
 0x687   : > { %v2821_v32 = vpop.permute.xlu1 %2820  ;;  %v2887_v36 = vpop.permute.xlu0 %2886 }
 0x68b   : > { %v2867_v49 = vpop.permute.xlu1 %2866  ;;  %v2759_v58 = vpop.permute.xlu0 %2758 }
 0x68c   : > { %v2764_v35 = vsel %vm1740_vm7, %v2763_v9, %v2759_v58  ;;  %v2767_v50 = vsel %vm1740_vm7, %v2759_v58, %v2763_v9 }
 0x68d   : > { %v2768_v42 = vmul.f32 %v2767_v50, %v4699_v26  ;;  %v2769_v43 = vmul.f32 %v2764_v35, %v4702_v28 }
 0x68f   : > { %v2778_v11 = vpop.permute.xlu0 %2777  ;;  %v2798_v39 = vpop.permute.xlu1 %2797  ;;  %v2775_v46 = vmul.f32 %v2773_v25, %v2768_v42  ;;  %v2776_v63 = vmul.f32 %v2773_v25, %v2769_v43  ;;  %v2842_v42 = vmul.f32 %v2840_v1, %v5026_v38  ;;  %v2843_v43 = vmul.f32 %v2840_v1, %v5040_v40 }
 0x690   : > { %v2782_v54 = vsel %vm1763_vm8, %v2781_v37, %v2778_v11  ;;  %v2785_v61 = vsel %vm1763_vm8, %v2778_v11, %v2781_v37  ;;  %v2802_v13 = vsel %vm1786_vm5, %v2801_v14, %v2798_v39  ;;  %v2805_v55 = vsel %vm1786_vm5, %v2798_v39, %v2801_v14 }
 0x691   : > { %v2786_v8 = vmul.f32 %v2785_v61, %v4705_v30  ;;  %v2787_v53 = vmul.f32 %v2782_v54, %v4708_v31  ;;  %v2806_v17 = vmul.f32 %v2805_v55, %v4677_v3  ;;  %v2807_v19 = vmul.f32 %v2802_v13, %v4680_v4 }
 0x693   : > { %v2818_v47 = vpop.permute.xlu0 %2817  ;;  %v2793_v62 = vmul.f32 %v2791_v59, %v2786_v8  ;;  %v2794_v44 = vmul.f32 %v2791_v59, %v2787_v53  ;;  %v2849_v14 = vpop.permute.xlu1 %2848  ;;  %v2813_v58 = vmul.f32 %v2811_v0, %v2806_v17  ;;  %v2814_v35 = vmul.f32 %v2811_v0, %v2807_v19 }
 0x694   : > { %v2822_v12 = vsel %vm1809_vm6, %v2821_v32, %v2818_v47  ;;  %v2825_v20 = vsel %vm1809_vm6, %v2818_v47, %v2821_v32  ;;  %v2850_v32 = vsel %vm1831_vm4, %v2847_v21, %v2849_v14  ;;  %v2854_v25 = vsel %vm1831_vm4, %v2849_v14, %v2847_v21 }
 0x695   : > { %v2795_v52 = vadd.f32 %v2793_v62, %v2775_v46  ;;  %v2796_v34 = vadd.f32 %v2794_v44, %v2776_v63  ;;  %v2826_v9 = vmul.f32 %v2825_v20, %v4683_v5  ;;  %v2827_v37 = vmul.f32 %v2822_v12, %v4686_v6 }
 0x696   : > { %v2855_v13 = vmul.f32 %v2850_v32, %v4655_v41  ;;  %v2856_v0 = vmul.f32 %v2854_v25, %v4661_v45 }
 0x697   : > { %v2815_v59 = vadd.f32 %v2813_v58, %v2795_v52  ;;  %v2816_v50 = vadd.f32 %v2814_v35, %v2796_v34  ;;  %v2833_v11 = vmul.f32 %v2831_v7, %v2826_v9  ;;  %v2834_v39 = vmul.f32 %v2831_v7, %v2827_v37  ;;  %v2889_v54 = vpop.permute.xlu1 %2888 }
 0x698   : > { %v2890_v55 = vsel %vm1877_vm2, %v2887_v36, %v2889_v54  ;;  %v2894_v7 = vsel %vm1877_vm2, %v2889_v54, %v2887_v36  ;;  %v2862_v40 = vmul.f32 %v5079_v57, %v2855_v13  ;;  %v2863_v1 = vmul.f32 %v5079_v57, %v2856_v0 }
 0x699   : > { %v2835_v61 = vadd.f32 %v2833_v11, %v2815_v59  ;;  %v2836_v8 = vadd.f32 %v2834_v39, %v2816_v50  ;;  %v2895_v21 = vmul.f32 %v2890_v55, %v4643_v29  ;;  %v2896_v12 = vmul.f32 %v2894_v7, %v4649_v33 }
 0x69b   : > { %v2844_v47 = vadd.f32 %v2842_v42, %v2835_v61  ;;  %v2845_v62 = vadd.f32 %v2843_v43, %v2836_v8  ;;  %v2907_v36 = vpop.permute.xlu1 %2906  ;;  %v2902_v37 = vmul.f32 %v5083_v10, %v2895_v21  ;;  %v2926_v42 = vld [vmem:[%s5569_s0] sm:$0xf]  ;;  %s5575_s0 = smov 1  }
 0x69d   : > { %v2864_v17 = vadd.f32 %v2862_v40, %v2844_v47  ;;  %v2865_v19 = vadd.f32 %v2863_v1, %v2845_v62 }
 0x6a0   : > { %v2920_v53 = vpop.permute.xlu0 %2919 }
 0x6a4   : > { %v2869_v44 = vpop.permute.xlu0 %2868 }
 0x6a5   : > { %v2870_v20 = vsel %vm1854_vm1, %v2867_v49, %v2869_v44  ;;  %v2874_v38 = vsel %vm1854_vm1, %v2869_v44, %v2867_v49  ;;  %v2903_v49 = vmul.f32 %v5083_v10, %v2896_v12 }
 0x6a6   : > { %v2875_v46 = vmul.f32 %v2870_v20, %v4636_v24  ;;  %v2876_v63 = vmul.f32 %v2874_v38, %v4639_v27 }
 0x6a8   : > { %v2882_v52 = vmul.f32 %v5081_v48, %v2875_v46  ;;  %v2883_v34 = vmul.f32 %v5081_v48, %v2876_v63  ;;  %v2909_v9 = vpop.permute.xlu0 %2908  ;;  %v2983_v43 = vpop.permute.xlu1 %2982 }
 0x6a9   : > { %v2910_v14 = vsel %vm1900_vm0, %v2907_v36, %v2909_v9  ;;  %v2914_v57 = vsel %vm1900_vm0, %v2909_v9, %v2907_v36 }
 0x6aa   : > { %v2884_v58 = vadd.f32 %v2882_v52, %v2864_v17  ;;  %v2885_v35 = vadd.f32 %v2883_v34, %v2865_v19  ;;  %v2915_v59 = vmul.f32 %v2910_v14, %v4633_v23  ;;  %v2916_v50 = vmul.f32 %v2914_v57, %v4630_v22  ;;  %v3001_v17 = vld [vmem:[%s5570_s23] sm:$0xf]  ;;  %s5576_s23 = sld [smem:[#allocation9_spill]] }
 0x6ab   : > { %v3568_v14 = vld [vmem:[%s5568_s2 + $0x20] sm:$0xff] }
 0x6ac   : > { %v2922_v11 = vmul.f32 %v2920_v53, %v2915_v59  ;;  %v2923_v39 = vmul.f32 %v2920_v53, %v2916_v50  ;;  %v2905_v32 = vadd.f32 %v2903_v49, %v2885_v35  ;;  %v2904_v48 = vadd.f32 %v2902_v37, %v2884_v58  ;;  %v2991_v53 = vpop.permute.xlu0 %2990  ;;  %v3074_v57 = vld [vmem:[%s5565_s26 + $0x40] sm:$0xff]  ;;  %v3569_v58 = vld [vmem:[%s5568_s2 + $0x28] sm:$0xff]  ;;  %v3570_v35 = vld [vmem:[%s5568_s2 + $0x30] sm:$0xff] }
 0x6ad   : > { %v3571_v59 = vld [vmem:[%s5568_s2 + $0x38] sm:$0xff]  ;;  %v3572_v50 = vld [vmem:[%s5568_s2 + $0x40] sm:$0xff]  ;;  %s5588_s2 = sld [smem:[#allocation19_spill]] }
 0x6ae   : > { %v2925_v25 = vadd.f32 %v2923_v39, %v2905_v32  ;;  %v2924_v54 = vadd.f32 %v2922_v11, %v2904_v48  ;;  %v3705_v32 = vld [vmem:[%s5578_s3] sm:$0xff]  ;;  %s5582_s3 = sld [smem:[#allocation14_spill]] }
 0x6af   : > { %v3713_v48 = vld [vmem:[%s5579_s4] sm:$0xff]  ;;  %s5583_s4 = sld [smem:[#allocation22_spill]] }
 0x6b0   : > { %v2928_v61 = vpack.c.bf16 %v2925_v25, %v2925_v25  ;;  %v2927_v8 = vpack.c.bf16 %v2924_v54, %v2924_v54  ;;  %v3060_v52 = vpop.permute.xlu0 %3059  ;;  %v3297_v11 = vld [vmem:[%s5576_s23] sm:$0xff]  ;;  %s5585_s23 = smov 127  }
 0x6b2   : > { %4195 = vmatprep.subr.msk.bf16.mxu0 %vm1934_vm3, %v2928_v61  ;;  %v2933_v10 = vsel %vm1934_vm3, %v2927_v8, 0 }
 0x6b3   : > { %2953 = vmatpush1.bf16.msra.mxu0 %v2933_v10 }
 0x6b6   : > { %4196 = vmatmul.mubr.msk.bf16.vlgmr.msra.gmra.mxu0 %vm2181_vm10, %v2926_v42 }
 0x6b7   : > { %3288 = vmatprep.mubr.bf16.mxu0 %v5524_v2 }
 0x776   : > { %v2972_v13 = vpop.f32.mrf.mxu0 }
 0x777   : > { %v2985_v0 = vmul.f32 %v2983_v43, %v2972_v13 }
 0x778   : > { %v2974_v55 = vpop.f32.mrf.mxu0 }
 0x779   : > { %v2993_v7 = vadd.f32 %v2991_v53, %v2985_v0  ;;  %v2986_v47 = vmul.f32 %v2983_v43, %v2974_v55 }
 0x77a   : > { %v2976_v62 = vpop.f32.mrf.mxu0 }
 0x77b   : > { %v2995_v44 = vadd.f32 %v2993_v7, %v4922_v18  ;;  %v2994_v21 = vadd.f32 %v2991_v53, %v2986_v47  ;;  %v3052_v18 = vpop.permute.xlu1 %3051 }
 0x77c   : > { %v2977_v12 = vpop.f32.mrf.mxu0 }
 0x77d   : > { %v2997_v20 = vadd.f32 %v2995_v44, %v4720_v51  ;;  %v2996_v38 = vadd.f32 %v2994_v21, %v4935_v15 }
 0x77f   : > { %v2998_v40 = vadd.f32 %v2996_v38, %v4733_v56  ;;  %v2999_v1 = vmax.f32 %v2997_v20, 0.0  ;;  %v3091_v12 = vpop.permute.xlu1 %3090  ;;  %v3109_v20 = vpop.permute.xlu0 %3108 }
 0x781   : > { %v3000_v46 = vmax.f32 %v2998_v40, 0.0  ;;  %v3002_v36 = vpack.c.bf16 %v2999_v1, %v4925_v60 }
 0x783   : > { %v3003_v63 = vpack.c.bf16 %v3000_v46, %v4942_v16  ;;  %v3129_v40 = vpop.permute.xlu1 %3128  ;;  %v3149_v1 = vpop.permute.xlu0 %3148 }
 0x785   : > { %3021 = vmatprep.subr.bf16.mxu1 %v3003_v63 }
 0x786   : > { %3022 = vmatpush1.bf16.msra.mxu1 %v3002_v36 }
 0x787   : > { %v5208_v46 = vpop.permute.xlu1 %3157  ;;  %v5210_v63 = vpop.permute.xlu0 %3177 }
 0x789   : > { %4197 = vmatmul.mubr.msk.bf16.vlgmr.msra.gmra.mxu1 %vm1763_vm8, %v3001_v17 }
 0x78a   : > { %3537 = vmatprep.mubr.bf16.mxu1 %v5524_v2 }
 0x78b   : > { %v3576_v36 = vpop.permute.xlu1 %3575  ;;  %v3583_v17 = vpop.permute.xlu0 %3582 }
 0x849   : > { %v3041_v19 = vpop.f32.mrf.mxu1 }
 0x84a   : > { %v3054_v51 = vmul.f32 %v3052_v18, %v3041_v19  ;;  %v3592_v19 = vpop.permute.xlu0 %3591 }
 0x84b   : > { %v3043_v15 = vpop.f32.mrf.mxu1 }
 0x84c   : > { %v5139_v56 = vadd.f32 %v3060_v52, %v3054_v51  ;;  %v3055_v9 = vmul.f32 %v3052_v18, %v3043_v15  ;;  %v5212_v18 = vpop.permute.xlu1 %3197 }
 0x84d   : > { %v3045_v34 = vpop.f32.mrf.mxu1 }
 0x84e   : > { %5571 = vst [vmem:[#allocation31_spill] sm:$0xff] %v5139_v56  ;;  %v5142_v16 = vmax.f32 %v5139_v56, 0.0  ;;  %v5152_v37 = vadd.f32 %v3060_v52, %v3055_v9  ;;  %v5216_v52 = vpop.permute.xlu0 %3600 }
 0x84f   : > { %v3046_v60 = vpop.f32.mrf.mxu1 }
 0x850   : > { %3118 = vrot.lane.b32.xlu1 %v5142_v16, %s5516_s1  ;;  %3080 = vrot.lane.b32.xlu0 %v5142_v16, %s5572_s18  ;;  %5574 = vst [vmem:[#allocation32_spill] sm:$0xff] %v5152_v37  ;;  %v5159_v49 = vmax.f32 %v5152_v37, 0.0  ;;  %v5214_v51 = vpop.permute.xlu1 %3217 }
 0x854   : > { %3164 = vrot.lane.b32.xlu1 %v5142_v16, %s5519_s28  ;;  %3098 = vrot.lane.b32.xlu0 %v5142_v16, %s5573_s11 }
 0x858   : > { %3184 = vrot.lane.b32.xlu1 %v5142_v16, %s5521_s22  ;;  %3138 = vrot.lane.b32.xlu0 %v5142_v16, %s5575_s0 }
 0x85c   : > { %3204 = vrot.lane.b32.xlu1 %v5142_v16, %s5566_s7  ;;  %3115 = vrot.lane.b32.xlu0 %v5159_v49, %s5516_s1  ;;  %s5577_s1 = sld [smem:[#allocation8_spill]] }
 0x860   : > { %3076 = vrot.lane.b32.xlu1 %v5159_v49, %s5572_s18  ;;  %3609 = vperm.xlu0 %4276, %v3568_v14  }
 0x862   : > { %v3305_v39 = vld [vmem:[%s5577_s1] sm:$0xff]  ;;  %s5584_s1 = smov 15  }
 0x864   : > { %3095 = vrot.lane.b32.xlu1 %v5159_v49, %s5573_s11  ;;  %3166 = vrot.lane.b32.xlu0 %v5159_v49, %s5519_s28  ;;  %s5580_s28 = sld [smem:[#allocation13_spill]] }
 0x868   : > { %3135 = vrot.lane.b32.xlu1 %v5159_v49, %s5575_s0  ;;  %3186 = vrot.lane.b32.xlu0 %v5159_v49, %s5521_s22  ;;  %s5581_s22 = sld [smem:[#allocation21_spill]] }
 0x86a   : > { %v3315_v25 = vld [vmem:[%s5580_s28] sm:$0xff]  ;;  %v3316_v54 = vld [vmem:[%s5580_s28 + $0x8] sm:$0xff]  ;;  %v3317_v61 = vld [vmem:[%s5580_s28 + $0x10] sm:$0xff] }
 0x86b   : > { %v3318_v8 = vld [vmem:[%s5580_s28 + $0x18] sm:$0xff]  ;;  %v3319_v10 = vld [vmem:[%s5580_s28 + $0x20] sm:$0xff]  ;;  %v3320_v42 = vld [vmem:[%s5580_s28 + $0x28] sm:$0xff] }
 0x86c   : > { %3237 = vperm.xlu1 %4277, %v3074_v57   ;;  %3206 = vrot.lane.b32.xlu0 %v5159_v49, %s5566_s7  ;;  %v3321_v0 = vld [vmem:[%s5580_s28 + $0x30] sm:$0xff]  ;;  %v3322_v55 = vld [vmem:[%s5580_s28 + $0x38] sm:$0xff]  ;;  %v3323_v47 = vld [vmem:[%s5580_s28 + $0x40] sm:$0xff] }
 0x86e   : > { %v3723_v43 = vld [vmem:[%s5581_s22] sm:$0xff]  ;;  %v3724_v13 = vld [vmem:[%s5581_s22 + $0x8] sm:$0xff]  ;;  %v3725_v53 = vld [vmem:[%s5581_s22 + $0x10] sm:$0xff] }
 0x86f   : > { %v3726_v7 = vld [vmem:[%s5581_s22 + $0x18] sm:$0xff]  ;;  %v3727_v62 = vld [vmem:[%s5581_s22 + $0x20] sm:$0xff]  ;;  %v3728_v44 = vld [vmem:[%s5581_s22 + $0x28] sm:$0xff] }
 0x870   : > { %3224 = vrot.lane.b32.xlu1 %v5142_v16, %s5567_s10  ;;  %3226 = vrot.lane.b32.xlu0 %v5159_v49, %s5567_s10  ;;  %v3729_v21 = vld [vmem:[%s5581_s22 + $0x30] sm:$0xff]  ;;  %v3730_v38 = vld [vmem:[%s5581_s22 + $0x38] sm:$0xff] }
 0x874   : > { %3618 = vperm.xlu1 %4277, %v3569_v58   ;;  %3627 = vperm.xlu0 %4276, %v3570_v35  }
 0x878   : > { %3636 = vperm.xlu1 %4277, %v3571_v59   ;;  %3645 = vperm.xlu0 %4276, %v3572_v50  }
 0x87c   : > { %3300 = vperm.xlu1 %4277, %v3297_v11   ;;  %3308 = vperm.xlu0 %4276, %v3305_v39  }
 0x880   : > { %3708 = vperm.xlu1 %4277, %v3705_v32   ;;  %3716 = vperm.xlu0 %4276, %v3713_v48  }
 0x884   : > { %3339 = vperm.xlu1 %4277, %v3315_v25   ;;  %3357 = vperm.xlu0 %4276, %v3316_v54  }
 0x888   : > { %3377 = vperm.xlu1 %4277, %v3317_v61   ;;  %3397 = vperm.xlu0 %4276, %v3318_v8  }
 0x88c   : > { %3406 = vperm.xlu1 %4277, %v3319_v10   ;;  %3426 = vperm.xlu0 %4276, %v3320_v42  }
 0x890   : > { %3747 = vperm.xlu1 %4277, %v3723_v43   ;;  %3765 = vperm.xlu0 %4276, %v3724_v13  }
 0x894   : > { %3446 = vperm.xlu1 %4277, %v3321_v0   ;;  %3785 = vperm.xlu0 %4276, %v3725_v53  }
 0x898   : > { %3466 = vperm.xlu1 %4277, %v3322_v55   ;;  %3805 = vperm.xlu0 %4276, %v3726_v7  }
 0x89c   : > { %3486 = vperm.xlu1 %4277, %v3323_v47   ;;  %3814 = vperm.xlu0 %4276, %v3727_v62  }
 0x8a0   : > { %3834 = vperm.xlu1 %4277, %v3728_v44   ;;  %3854 = vperm.xlu0 %4276, %v3729_v21  }
 0x8a4   : > { %3874 = vperm.xlu1 %4277, %v3730_v38  }
 0x8c2   : > { %v3119_v15 = vpop.permute.xlu1 %3118  ;;  %v3081_v34 = vpop.permute.xlu0 %3080 }
 0x8c6   : > { %v3165_v60 = vpop.permute.xlu1 %3164  ;;  %v3099_v9 = vpop.permute.xlu0 %3098 }
 0x8ca   : > { %v3185_v14 = vpop.permute.xlu1 %3184  ;;  %v3139_v57 = vpop.permute.xlu0 %3138 }
 0x8ce   : > { %v5218_v58 = vpop.permute.xlu1 %3204  ;;  %v3116_v59 = vpop.permute.xlu0 %3115 }
 0x8cf   : > { %v3120_v39 = vsel %vm1786_vm5, %v3119_v15, %v3116_v59  ;;  %v3123_v32 = vsel %vm1786_vm5, %v3116_v59, %v3119_v15 }
 0x8d0   : > { %v3124_v43 = vmul.f32 %v3123_v32, %v4677_v3  ;;  %v3125_v13 = vmul.f32 %v3120_v39, %v4680_v4 }
 0x8d2   : > { %v3077_v35 = vpop.permute.xlu1 %3076 }
 0x8d3   : > { %v3082_v50 = vsel %vm1740_vm7, %v3081_v34, %v3077_v35  ;;  %v3085_v11 = vsel %vm1740_vm7, %v3077_v35, %v3081_v34  ;;  %v3131_v34 = vmul.f32 %v3129_v40, %v3124_v43 }
 0x8d4   : > { %v3086_v48 = vmul.f32 %v3085_v11, %v4699_v26  ;;  %v3087_v25 = vmul.f32 %v3082_v50, %v4702_v28 }
 0x8d6   : > { %v3096_v54 = vpop.permute.xlu1 %3095  ;;  %v3093_v0 = vmul.f32 %v3091_v12, %v3086_v48  ;;  %v3094_v53 = vmul.f32 %v3091_v12, %v3087_v25 }
 0x8d7   : > { %v3100_v61 = vsel %vm1763_vm8, %v3099_v9, %v3096_v54  ;;  %v3103_v8 = vsel %vm1763_vm8, %v3096_v54, %v3099_v9  ;;  %v3132_v9 = vmul.f32 %v3129_v40, %v3125_v13 }
 0x8d8   : > { %v3104_v10 = vmul.f32 %v3103_v8, %v4705_v30  ;;  %v3105_v42 = vmul.f32 %v3100_v61, %v4708_v31  ;;  %v3578_v61 = vmul.f32 %v3576_v36, %v3086_v48  ;;  %v3579_v8 = vmul.f32 %v3576_v36, %v3087_v25 }
 0x8d9   : > { %v3160_v36 = vmul.f32 %v5208_v46, %v5142_v16 }
 0x8da   : > { %v3111_v55 = vmul.f32 %v3109_v20, %v3104_v10  ;;  %v3112_v7 = vmul.f32 %v3109_v20, %v3105_v42  ;;  %v3136_v47 = vpop.permute.xlu1 %3135  ;;  %v3585_v50 = vmul.f32 %v3583_v17, %v3104_v10  ;;  %v3586_v11 = vmul.f32 %v3583_v17, %v3105_v42 }
 0x8db   : > { %v3140_v62 = vsel %vm1809_vm6, %v3139_v57, %v3136_v47  ;;  %v3143_v44 = vsel %vm1809_vm6, %v3136_v47, %v3139_v57  ;;  %v5234_v21 = vpop.permute.xlu0 %3609  ;;  %v3594_v42 = vmul.f32 %v3592_v19, %v3124_v43 }
 0x8dc   : > { %v3113_v38 = vadd.f32 %v3111_v55, %v3093_v0  ;;  %v3114_v15 = vadd.f32 %v3112_v7, %v3094_v53  ;;  %v3144_v35 = vmul.f32 %v3143_v44, %v4683_v5  ;;  %v3145_v59 = vmul.f32 %v3140_v62, %v4686_v6 }
 0x8dd   : > { %v3587_v53 = vadd.f32 %v3585_v50, %v3578_v61  ;;  %v3588_v55 = vadd.f32 %v3586_v11, %v3579_v8  ;;  %v3595_v62 = vmul.f32 %v3592_v19, %v3125_v13 }
 0x8de   : > { %v3133_v12 = vadd.f32 %v3131_v34, %v3113_v38  ;;  %v3134_v39 = vadd.f32 %v3132_v9, %v3114_v15  ;;  %v3151_v20 = vmul.f32 %v3149_v1, %v3144_v35  ;;  %v3152_v32 = vmul.f32 %v3149_v1, %v3145_v59 }
 0x8df   : > { %v3167_v54 = vpop.permute.xlu0 %3166  ;;  %v3596_v38 = vadd.f32 %v3594_v42, %v3587_v53  ;;  %v3597_v15 = vadd.f32 %v3595_v62, %v3588_v55  ;;  %v3603_v50 = vmul.f32 %v5216_v52, %v3144_v35  ;;  %v3604_v11 = vmul.f32 %v5216_v52, %v3145_v59 }
 0x8e0   : > { %v3168_v57 = vsel %vm1831_vm4, %v3165_v60, %v3167_v54  ;;  %v3172_v0 = vsel %vm1831_vm4, %v3167_v54, %v3165_v60  ;;  %v3153_v40 = vadd.f32 %v3151_v20, %v3133_v12  ;;  %v3154_v7 = vadd.f32 %v3152_v32, %v3134_v39 }
 0x8e1   : > { %v3173_v47 = vmul.f32 %v3168_v57, %v4655_v41  ;;  %v3174_v10 = vmul.f32 %v3172_v0, %v4661_v45  ;;  %v3161_v60 = vmul.f32 %v5208_v46, %v5159_v49  ;;  %v3605_v57 = vadd.f32 %v3603_v50, %v3596_v38 }
 0x8e2   : > { %v3162_v34 = vadd.f32 %v3160_v36, %v3153_v40  ;;  %v3606_v0 = vadd.f32 %v3604_v11, %v3597_v15 }
 0x8e3   : > { %v3187_v17 = vpop.permute.xlu0 %3186  ;;  %v3163_v9 = vadd.f32 %v3161_v60, %v3154_v7  ;;  %v3180_v19 = vmul.f32 %v5210_v63, %v3173_v47  ;;  %v3181_v43 = vmul.f32 %v5210_v63, %v3174_v10 }
 0x8e4   : > { %v3188_v1 = vsel %vm1854_vm1, %v3185_v14, %v3187_v17  ;;  %v3192_v48 = vsel %vm1854_vm1, %v3187_v17, %v3185_v14  ;;  %v3612_v17 = vmul.f32 %v5234_v21, %v5142_v16 }
 0x8e5   : > { %v3193_v25 = vmul.f32 %v3188_v1, %v4636_v24  ;;  %v3194_v44 = vmul.f32 %v3192_v48, %v4639_v27  ;;  %v3182_v54 = vadd.f32 %v3180_v19, %v3162_v34  ;;  %v3183_v61 = vadd.f32 %v3181_v43, %v3163_v9 }
 0x8e6   : > { %v3614_v38 = vadd.f32 %v3612_v17, %v3605_v57 }
 0x8e7   : > { %v3238_v13 = vpop.permute.xlu1 %3237  ;;  %v3207_v14 = vpop.permute.xlu0 %3206  ;;  %v3200_v39 = vmul.f32 %v5212_v18, %v3193_v25  ;;  %v3201_v20 = vmul.f32 %v5212_v18, %v3194_v44 }
 0x8e8   : > { %v3208_v46 = vsel %vm1877_vm2, %v5218_v58, %v3207_v14  ;;  %v3212_v12 = vsel %vm1877_vm2, %v3207_v14, %v5218_v58 }
 0x8e9   : > { %v3213_v32 = vmul.f32 %v3208_v46, %v4643_v29  ;;  %v3214_v63 = vmul.f32 %v3212_v12, %v4649_v33  ;;  %v3202_v55 = vadd.f32 %v3200_v39, %v3182_v54  ;;  %v3203_v18 = vadd.f32 %v3201_v20, %v3183_v61 }
 0x8eb   : > { %v3220_v35 = vmul.f32 %v5214_v51, %v3213_v32  ;;  %v3221_v52 = vmul.f32 %v5214_v51, %v3214_v63  ;;  %v3225_v59 = vpop.permute.xlu1 %3224  ;;  %v3227_v8 = vpop.permute.xlu0 %3226  ;;  %v3613_v51 = vmul.f32 %v5234_v21, %v5159_v49 }
 0x8ec   : > { %v3228_v58 = vsel %vm1900_vm0, %v3225_v59, %v3227_v8  ;;  %v3232_v53 = vsel %vm1900_vm0, %v3227_v8, %v3225_v59 }
 0x8ed   : > { %v3233_v40 = vmul.f32 %v3228_v58, %v4633_v23  ;;  %v3234_v7 = vmul.f32 %v3232_v53, %v4630_v22  ;;  %v3222_v42 = vadd.f32 %v3220_v35, %v3202_v55  ;;  %v3223_v62 = vadd.f32 %v3221_v52, %v3203_v18 }
 0x8ee   : > { %v3615_v15 = vadd.f32 %v3613_v51, %v3606_v0 }
 0x8ef   : > { %v3240_v1 = vmul.f32 %v3238_v13, %v3233_v40  ;;  %v3241_v48 = vmul.f32 %v3238_v13, %v3234_v7  ;;  %v3619_v36 = vpop.permute.xlu1 %3618  ;;  %v3628_v60 = vpop.permute.xlu0 %3627 }
 0x8f0   : > { %v3621_v34 = vmul.f32 %v3619_v36, %v3173_v47  ;;  %v3622_v9 = vmul.f32 %v3619_v36, %v3174_v10  ;;  %v3630_v11 = vmul.f32 %v3628_v60, %v3193_v25  ;;  %v3631_v46 = vmul.f32 %v3628_v60, %v3194_v44  ;;  %v3244_v25 = vld [vmem:[%s5582_s3] sm:$0xf]  ;;  %s5586_s3 = smov 113  }
 0x8f1   : > { %v3243_v19 = vadd.f32 %v3241_v48, %v3223_v62  ;;  %v3242_v43 = vadd.f32 %v3240_v1, %v3222_v42 }
 0x8f2   : > { %v3623_v14 = vadd.f32 %v3621_v34, %v3614_v38  ;;  %v3624_v50 = vadd.f32 %v3622_v9, %v3615_v15 }
 0x8f3   : > { %v3246_v16 = vpack.c.bf16 %v3243_v19, %v3243_v19  ;;  %v3637_v12 = vpop.permute.xlu1 %3636  ;;  %v3646_v49 = vpop.permute.xlu0 %3645  ;;  %v3245_v21 = vpack.c.bf16 %v3242_v43, %v3242_v43 }
 0x8f4   : > { %v3632_v39 = vadd.f32 %v3630_v11, %v3623_v14  ;;  %v3633_v20 = vadd.f32 %v3631_v46, %v3624_v50  ;;  %v3639_v13 = vmul.f32 %v3637_v12, %v3213_v32  ;;  %v3640_v54 = vmul.f32 %v3637_v12, %v3214_v63  ;;  %v3652_v63 = vld [vmem:[%s5583_s4] sm:$0xf]  ;;  %s5587_s4 = sld [smem:[#allocation11_spill]] }
 0x8f5   : > { %4198 = vmatprep.subr.msk.bf16.mxu0 %vm1934_vm3, %v3246_v16  ;;  %v3251_v47 = vsel %vm1934_vm3, %v3245_v21, 0  ;;  %v3648_v35 = vmul.f32 %v3646_v49, %v3233_v40  ;;  %v3649_v52 = vmul.f32 %v3646_v49, %v3234_v7 }
 0x8f6   : > { %v3641_v10 = vadd.f32 %v3639_v13, %v3632_v39  ;;  %v3642_v61 = vadd.f32 %v3640_v54, %v3633_v20  ;;  %3271 = vmatpush1.bf16.msra.mxu0 %v3251_v47  ;;  %v3731_v47 = vld [vmem:[%s5581_s22 + $0x40] sm:$0xff] }
 0x8f7   : > { %v3309_v0 = vpop.permute.xlu0 %3308  ;;  %v3301_v7 = vpop.permute.xlu1 %3300 }
 0x8f8   : > { %v3650_v44 = vadd.f32 %v3648_v35, %v3641_v10  ;;  %v3651_v59 = vadd.f32 %v3649_v52, %v3642_v61  ;;  %v3954_v35 = vld [vmem:[%s5588_s2] sm:$0xff]  ;;  %s5594_s2 = sld [smem:[#allocation28_spill]] }
 0x8f9   : > { %4199 = vmatmul.mubr.msk.bf16.vlgmr.msra.gmra.mxu0 %vm2181_vm10, %v3244_v25  ;;  %v3554_v52 = vld [vmem:[%s5589_s5] sm:$0xff]  ;;  %s5591_s5 = sld [smem:[#allocation15_spill]] }
 0x8fa   : > { %v3653_v8 = vpack.c.bf16 %v3650_v44, %v3650_v44  ;;  %v3654_v57 = vpack.c.bf16 %v3651_v59, %v3651_v59  ;;  %3696 = vmatprep.mubr.bf16.mxu0 %v5524_v2  ;;  %v3546_v10 = vld [vmem:[%s5587_s4] sm:$0xff] }
 0x8fb   : > { %v3717_v58 = vpop.permute.xlu0 %3716  ;;  %v3709_v38 = vpop.permute.xlu1 %3708  ;;  %v3962_v44 = vld [vmem:[%s5590_s6] sm:$0xff]  ;;  %s5593_s6 = sld [smem:[#allocation23_spill]] }
 0x8fc   : > { %4202 = vmatprep.subr.msk.bf16.mxu0 %vm1934_vm3, %v3654_v57  ;;  %v3659_v32 = vsel %vm1934_vm3, %v3653_v8, 0 }
 0x8fd   : > { %3679 = vmatpush1.bf16.msra.mxu0 %v3659_v32 }
 0x8ff   : > { %v5281_v53 = vpop.permute.xlu0 %3357  ;;  %v3340_v61 = vpop.permute.xlu1 %3339 }
 0x901   : > { %4203 = vmatmul.mubr.msk.bf16.vlgmr.msra.gmra.mxu0 %vm2181_vm10, %v3652_v63 }
 0x903   : > { %v5283_v55 = vpop.permute.xlu0 %3397  ;;  %v3378_v25 = vpop.permute.xlu1 %3377 }
 0x907   : > { %v5285_v18 = vpop.permute.xlu0 %3426  ;;  %v5354_v59 = vpop.permute.xlu1 %3406 }
 0x90b   : > { %v5287_v40 = vpop.permute.xlu0 %3765  ;;  %v5356_v8 = vpop.permute.xlu1 %3747 }
 0x90f   : > { %v5289_v42 = vpop.permute.xlu0 %3785  ;;  %v5358_v57 = vpop.permute.xlu1 %3446 }
 0x913   : > { %v5297_v15 = vpop.permute.xlu0 %3805  ;;  %v5360_v32 = vpop.permute.xlu1 %3466 }
 0x917   : > { %v3815_v49 = vpop.permute.xlu0 %3814  ;;  %v5362_v63 = vpop.permute.xlu1 %3486 }
 0x9b9   : > { %v3290_v17 = vpop.f32.mrf.mxu0 }
 0x9ba   : > { %v3303_v51 = vmul.f32 %v3301_v7, %v3290_v17 }
 0x9bb   : > { %v3292_v62 = vpop.f32.mrf.mxu0 }
 0x9bc   : > { %v3311_v1 = vadd.f32 %v3309_v0, %v3303_v51  ;;  %v3304_v9 = vmul.f32 %v3301_v7, %v3292_v62 }
 0x9bd   : > { %v3294_v48 = vpop.f32.mrf.mxu0 }
 0x9be   : > { %v5291_v36 = vmax.f32 %v3311_v1, 0.0  ;;  %v3312_v46 = vadd.f32 %v3309_v0, %v3304_v9  ;;  %v5364_v0 = vpop.permute.xlu1 %3834 }
 0x9bf   : > { %v3295_v60 = vpop.f32.mrf.mxu0 }
 0x9c0   : > { %3367 = vrot.lane.b32.xlu1 %v5291_v36, %s5584_s1  ;;  %3329 = vrot.lane.b32.xlu0 %v5291_v36, %s5572_s18  ;;  %v5309_v13 = vmax.f32 %v3312_v46, 0.0 }
 0x9c1   : > { %v3698_v34 = vpop.f32.mrf.mxu0 }
 0x9c2   : > { %v3711_v19 = vmul.f32 %v3709_v38, %v3698_v34  ;;  %v5368_v7 = vpop.permute.xlu1 %3874 }
 0x9c3   : > { %v3700_v43 = vpop.f32.mrf.mxu0 }
 0x9c4   : > { %v3719_v14 = vadd.f32 %v3717_v58, %v3711_v19  ;;  %v3712_v50 = vmul.f32 %v3709_v38, %v3700_v43  ;;  %3413 = vrot.lane.b32.xlu1 %v5291_v36, %s5585_s23  ;;  %3347 = vrot.lane.b32.xlu0 %v5291_v36, %s5573_s11 }
 0x9c5   : > { %v3702_v11 = vpop.f32.mrf.mxu0 }
 0x9c6   : > { %v3721_v16 = vmax.f32 %v3719_v14, 0.0  ;;  %v3720_v12 = vadd.f32 %v3717_v58, %v3712_v50  ;;  %v5366_v58 = vpop.permute.xlu0 %3854 }
 0x9c7   : > { %v3703_v21 = vpop.f32.mrf.mxu0 }
 0x9c8   : > { %v3722_v39 = vmax.f32 %v3720_v12, 0.0  ;;  %3433 = vrot.lane.b32.xlu1 %v5291_v36, %s5586_s3  ;;  %3387 = vrot.lane.b32.xlu0 %v5291_v36, %s5575_s0  ;;  %v5307_v20 = vmul.f32 %v3815_v49, %v3721_v16 }
 0x9ca   : > { %v5311_v54 = vmul.f32 %v3815_v49, %v3722_v39 }
 0x9cc   : > { %3453 = vrot.lane.b32.xlu1 %v5291_v36, %s5566_s7  ;;  %3364 = vrot.lane.b32.xlu0 %v5309_v13, %s5584_s1 }
 0x9d0   : > { %3473 = vrot.lane.b32.xlu1 %v5291_v36, %s5567_s10  ;;  %3415 = vrot.lane.b32.xlu0 %v5309_v13, %s5585_s23 }
 0x9d4   : > { %3325 = vrot.lane.b32.xlu1 %v5309_v13, %s5572_s18  ;;  %3435 = vrot.lane.b32.xlu0 %v5309_v13, %s5586_s3 }
 0x9d8   : > { %3344 = vrot.lane.b32.xlu1 %v5309_v13, %s5573_s11  ;;  %3455 = vrot.lane.b32.xlu0 %v5309_v13, %s5566_s7 }
 0x9dc   : > { %3384 = vrot.lane.b32.xlu1 %v5309_v13, %s5575_s0  ;;  %3475 = vrot.lane.b32.xlu0 %v5309_v13, %s5567_s10 }
 0x9e0   : > { %3821 = vrot.lane.b32.xlu0 %v3721_v16, %s5585_s23  ;;  %3737 = vrot.lane.b32.xlu1 %v3721_v16, %s5572_s18 }
 0x9e4   : > { %3861 = vrot.lane.b32.xlu0 %v3721_v16, %s5566_s7  ;;  %3755 = vrot.lane.b32.xlu1 %v3721_v16, %s5573_s11 }
 0x9e8   : > { %3733 = vrot.lane.b32.xlu0 %v3722_v39, %s5572_s18  ;;  %3775 = vrot.lane.b32.xlu1 %v3721_v16, %s5584_s1 }
 0x9ec   : > { %3752 = vrot.lane.b32.xlu0 %v3722_v39, %s5573_s11  ;;  %3795 = vrot.lane.b32.xlu1 %v3721_v16, %s5575_s0 }
 0x9f0   : > { %3772 = vrot.lane.b32.xlu0 %v3722_v39, %s5584_s1  ;;  %3841 = vrot.lane.b32.xlu1 %v3721_v16, %s5586_s3 }
 0x9f4   : > { %3792 = vrot.lane.b32.xlu0 %v3722_v39, %s5575_s0  ;;  %3823 = vrot.lane.b32.xlu1 %v3722_v39, %s5585_s23 }
 0x9f8   : > { %3894 = vperm.xlu0 %4276, %v3731_v47   ;;  %3863 = vrot.lane.b32.xlu1 %v3722_v39, %s5566_s7  ;;  %s5597_s7 = sld [smem:[#allocation27_spill]] }
 0x9fc   : > { %3843 = vrot.lane.b32.xlu0 %v3722_v39, %s5586_s3  ;;  %3881 = vrot.lane.b32.xlu1 %v3721_v16, %s5567_s10 }
 0xa00   : > { %3883 = vrot.lane.b32.xlu0 %v3722_v39, %s5567_s10  ;;  %3549 = vperm.xlu1 %4277, %v3546_v10   ;;  %s5598_s10 = sshll.u32 %s5600_s16, 4 }
 0xa01   : > { %s1714_s18 = scalar_lea.vmem %s4556_s30, %s5598_s10 }
 0xa04   : > { %3957 = vperm.xlu0 %4276, %v3954_v35   ;;  %3557 = vperm.xlu1 %4277, %v3554_v52  }
 0xa08   : > { %3965 = vperm.xlu0 %4276, %v3962_v44  }
 0xa32   : > { %v3368_v17 = vpop.permute.xlu1 %3367  ;;  %v3330_v51 = vpop.permute.xlu0 %3329 }
 0xa36   : > { %v3414_v62 = vpop.permute.xlu1 %3413  ;;  %v3348_v1 = vpop.permute.xlu0 %3347 }
 0xa3a   : > { %v3434_v48 = vpop.permute.xlu1 %3433  ;;  %v3388_v60 = vpop.permute.xlu0 %3387 }
 0xa3e   : > { %v3454_v38 = vpop.permute.xlu1 %3453  ;;  %v3365_v34 = vpop.permute.xlu0 %3364 }
 0xa3f   : > { %v3369_v43 = vsel %vm1786_vm5, %v3368_v17, %v3365_v34  ;;  %v3372_v14 = vsel %vm1786_vm5, %v3365_v34, %v3368_v17 }
 0xa40   : > { %v3373_v12 = vmul.f32 %v3372_v14, %v4677_v3  ;;  %v3374_v49 = vmul.f32 %v3369_v43, %v4680_v4 }
 0xa42   : > { %v3474_v9 = vpop.permute.xlu1 %3473  ;;  %v3416_v19 = vpop.permute.xlu0 %3415  ;;  %v3380_v34 = vmul.f32 %v3378_v25, %v3373_v12 }
 0xa43   : > { %v3417_v14 = vsel %vm1831_vm4, %v3414_v62, %v3416_v19  ;;  %v3421_v43 = vsel %vm1831_vm4, %v3416_v19, %v3414_v62 }
 0xa44   : > { %v3422_v19 = vmul.f32 %v3417_v14, %v4655_v41  ;;  %v3410_v14 = vmul.f32 %v5354_v59, %v5309_v13 }
 0xa46   : > { %v3326_v50 = vpop.permute.xlu1 %3325  ;;  %v3436_v11 = vpop.permute.xlu0 %3435 }
 0xa47   : > { %v3331_v46 = vsel %vm1740_vm7, %v3330_v51, %v3326_v50  ;;  %v3334_v16 = vsel %vm1740_vm7, %v3326_v50, %v3330_v51  ;;  %v3381_v51 = vmul.f32 %v3378_v25, %v3374_v49 }
 0xa48   : > { %v3335_v21 = vmul.f32 %v3334_v16, %v4699_v26  ;;  %v3336_v39 = vmul.f32 %v3331_v46, %v4702_v28 }
 0xa4a   : > { %v3345_v47 = vpop.permute.xlu1 %3344  ;;  %v3456_v10 = vpop.permute.xlu0 %3455  ;;  %v3342_v50 = vmul.f32 %v3340_v61, %v3335_v21  ;;  %v3343_v16 = vmul.f32 %v3340_v61, %v3336_v39 }
 0xa4b   : > { %v3349_v35 = vsel %vm1763_vm8, %v3348_v1, %v3345_v47  ;;  %v3352_v52 = vsel %vm1763_vm8, %v3345_v47, %v3348_v1  ;;  %v3437_v1 = vsel %vm1854_vm1, %v3434_v48, %v3436_v11  ;;  %v3441_v47 = vsel %vm1854_vm1, %v3436_v11, %v3434_v48 }
 0xa4c   : > { %v3353_v44 = vmul.f32 %v3352_v52, %v4705_v30  ;;  %v3354_v17 = vmul.f32 %v3349_v35, %v4708_v31 }
 0xa4e   : > { %v3360_v46 = vmul.f32 %v5281_v53, %v3353_v44  ;;  %v3361_v2 = vmul.f32 %v5281_v53, %v3354_v17  ;;  %v3385_v56 = vpop.permute.xlu1 %3384  ;;  %v3476_v37 = vpop.permute.xlu0 %3475  ;;  %v3423_v53 = vmul.f32 %v3421_v43, %v4661_v45  ;;  %v3461_v17 = vsel %vm1877_vm2, %v3456_v10, %v3454_v38 }
 0xa4f   : > { %v3389_v35 = vsel %vm1809_vm6, %v3388_v60, %v3385_v56  ;;  %v3392_v25 = vsel %vm1809_vm6, %v3385_v56, %v3388_v60  ;;  %v3442_v56 = vmul.f32 %v3437_v1, %v4636_v24  ;;  %v3457_v60 = vsel %vm1877_vm2, %v3454_v38, %v3456_v10 }
 0xa50   : > { %v3362_v12 = vadd.f32 %v3360_v46, %v3342_v50  ;;  %v3363_v49 = vadd.f32 %v3361_v2, %v3343_v16  ;;  %v3393_v62 = vmul.f32 %v3392_v25, %v4683_v5  ;;  %v3394_v61 = vmul.f32 %v3389_v35, %v4686_v6 }
 0xa51   : > { %v3443_v2 = vmul.f32 %v3441_v47, %v4639_v27  ;;  %v3409_v43 = vmul.f32 %v5354_v59, %v5291_v36  ;;  %v3430_v50 = vmul.f32 %v5285_v18, %v3423_v53  ;;  %v3477_v16 = vsel %vm1900_vm0, %v3474_v9, %v3476_v37 }
 0xa52   : > { %v3382_v21 = vadd.f32 %v3380_v34, %v3362_v12  ;;  %v3383_v39 = vadd.f32 %v3381_v51, %v3363_v49  ;;  %v3400_v52 = vmul.f32 %v5283_v55, %v3393_v62  ;;  %v3401_v48 = vmul.f32 %v5283_v55, %v3394_v61  ;;  %v3738_v11 = vpop.permute.xlu1 %3737  ;;  %v5396_v44 = vpop.permute.xlu0 %3821 }
 0xa53   : > { %v3429_v55 = vmul.f32 %v5285_v18, %v3422_v19  ;;  %v3481_v46 = vsel %vm1900_vm0, %v3476_v37, %v3474_v9  ;;  %v3462_v1 = vmul.f32 %v3457_v60, %v4643_v29  ;;  %v3463_v38 = vmul.f32 %v3461_v17, %v4649_v33 }
 0xa54   : > { %v3402_v34 = vadd.f32 %v3400_v52, %v3382_v21  ;;  %v3403_v51 = vadd.f32 %v3401_v48, %v3383_v39  ;;  %v3449_v25 = vmul.f32 %v5358_v57, %v3442_v56  ;;  %v3450_v36 = vmul.f32 %v5358_v57, %v3443_v2 }
 0xa55   : > { %v3482_v18 = vmul.f32 %v3477_v16, %v4633_v23  ;;  %v3483_v49 = vmul.f32 %v3481_v46, %v4630_v22  ;;  %v3469_v37 = vmul.f32 %v5360_v32, %v3462_v1  ;;  %v3470_v9 = vmul.f32 %v5360_v32, %v3463_v38 }
 0xa56   : > { %v3411_v10 = vadd.f32 %v3409_v43, %v3402_v34  ;;  %v3412_v47 = vadd.f32 %v3410_v14, %v3403_v51  ;;  %v3756_v13 = vpop.permute.xlu1 %3755  ;;  %v5412_v35 = vpop.permute.xlu0 %3861  ;;  %v3493_v51 = vld [vmem:[%s5591_s5] sm:$0xf] }
 0xa57   : > { %v3489_v39 = vmul.f32 %v5362_v63, %v3482_v18  ;;  %v3490_v57 = vmul.f32 %v5362_v63, %v3483_v49 }
 0xa58   : > { %v3431_v59 = vadd.f32 %v3429_v55, %v3411_v10  ;;  %v3432_v12 = vadd.f32 %v3430_v50, %v3412_v47 }
 0xa5a   : > { %v3452_v62 = vadd.f32 %v3450_v36, %v3432_v12  ;;  %v3776_v61 = vpop.permute.xlu1 %3775  ;;  %v3734_v19 = vpop.permute.xlu0 %3733  ;;  %v3451_v53 = vadd.f32 %v3449_v25, %v3431_v59  ;;  %v5592_v25 = vmov 0  }
 0xa5b   : > { %v3739_v63 = vsel %vm1740_vm7, %v3738_v11, %v3734_v19  ;;  %v3742_v50 = vsel %vm1740_vm7, %v3734_v19, %v3738_v11 }
 0xa5c   : > { %v3472_v21 = vadd.f32 %v3470_v9, %v3452_v62  ;;  %v3471_v52 = vadd.f32 %v3469_v37, %v3451_v53  ;;  %v3743_v11 = vmul.f32 %v3742_v50, %v4699_v26  ;;  %v3744_v59 = vmul.f32 %v3739_v63, %v4702_v28 }
 0xa5e   : > { %v3492_v48 = vadd.f32 %v3490_v57, %v3472_v21  ;;  %v3753_v56 = vpop.permute.xlu0 %3752  ;;  %v3491_v2 = vadd.f32 %v3489_v39, %v3471_v52  ;;  %v3796_v17 = vpop.permute.xlu1 %3795  ;;  %v3750_v62 = vmul.f32 %v5356_v8, %v3743_v11 }
 0xa5f   : > { %v3757_v43 = vsel %vm1763_vm8, %v3756_v13, %v3753_v56  ;;  %v3760_v55 = vsel %vm1763_vm8, %v3753_v56, %v3756_v13 }
 0xa60   : > { %v3495_v60 = vpack.c.bf16 %v3492_v48, %v3492_v48  ;;  %v3494_v14 = vpack.c.bf16 %v3491_v2, %v3491_v2  ;;  %v3761_v10 = vmul.f32 %v3760_v55, %v4705_v30  ;;  %v3762_v47 = vmul.f32 %v3757_v43, %v4708_v31 }
 0xa62   : > { %4200 = vmatprep.subr.msk.bf16.mxu1 %vm1934_vm3, %v3495_v60  ;;  %v3773_v32 = vpop.permute.xlu0 %3772  ;;  %v3500_v34 = vsel %vm1934_vm3, %v3494_v14, 0  ;;  %v3842_v16 = vpop.permute.xlu1 %3841  ;;  %v3768_v49 = vmul.f32 %v5287_v40, %v3761_v10  ;;  %v3769_v30 = vmul.f32 %v5287_v40, %v3762_v47 }
 0xa63   : > { %3520 = vmatpush1.bf16.msra.mxu1 %v3500_v34  ;;  %v3777_v46 = vsel %vm1786_vm5, %v3776_v61, %v3773_v32  ;;  %v3780_v1 = vsel %vm1786_vm5, %v3773_v32, %v3776_v61  ;;  %v3751_v61 = vmul.f32 %v5356_v8, %v3744_v59  ;;  %v3901_v59 = vld [vmem:[%s5593_s6] sm:$0xf] }
 0xa64   : > { %v3781_v12 = vmul.f32 %v3780_v1, %v4677_v3  ;;  %v3782_v18 = vmul.f32 %v3777_v46, %v4680_v4  ;;  %v3770_v3 = vadd.f32 %v3768_v49, %v3750_v62 }
 0xa65   : > { %v3771_v19 = vadd.f32 %v3769_v30, %v3751_v61 }
 0xa66   : > { %4201 = vmatmul.mubr.msk.bf16.vlgmr.msra.gmra.mxu1 %vm2181_vm10, %v3493_v51  ;;  %v3793_v38 = vpop.permute.xlu0 %3792  ;;  %v3824_v9 = vpop.permute.xlu1 %3823  ;;  %v3788_v26 = vmul.f32 %v5289_v42, %v3781_v12  ;;  %v3789_v28 = vmul.f32 %v5289_v42, %v3782_v18  ;;  %v4337_v12 = vmov 0.0  }
 0xa67   : > { %3945 = vmatprep.mubr.bf16.mxu1 %v5592_v25  ;;  %v3797_v13 = vsel %vm1809_vm6, %v3796_v17, %v3793_v38  ;;  %v3800_v36 = vsel %vm1809_vm6, %v3793_v38, %v3796_v17  ;;  %4042 = vmatprep.mubr.f32.mxu0 %v4337_v12 }
 0xa68   : > { %v3801_v31 = vmul.f32 %v3800_v36, %v4683_v5  ;;  %v3802_v37 = vmul.f32 %v3797_v13, %v4686_v6  ;;  %v3790_v40 = vadd.f32 %v3788_v26, %v3770_v3  ;;  %v3791_v21 = vadd.f32 %v3789_v28, %v3771_v19 }
 0xa69   : > { %v3825_v5 = vsel %vm1831_vm4, %v5396_v44, %v3824_v9  ;;  %v3829_v6 = vsel %vm1831_vm4, %v3824_v9, %v5396_v44 }
 0xa6a   : > { %v3808_v4 = vmul.f32 %v5297_v15, %v3801_v31  ;;  %v3809_v53 = vmul.f32 %v5297_v15, %v3802_v37  ;;  %v3864_v39 = vpop.permute.xlu1 %3863  ;;  %v3830_v42 = vmul.f32 %v3825_v5, %v4655_v41  ;;  %v3831_v48 = vmul.f32 %v3829_v6, %v4661_v45 }
 0xa6b   : > { %v3865_v56 = vsel %vm1877_vm2, %v5412_v35, %v3864_v39  ;;  %v3869_v15 = vsel %vm1877_vm2, %v3864_v39, %v5412_v35  ;;  %v5595_v39 = vld [vmem:[#allocation32_spill] sm:$0xff] }
 0xa6c   : > { %v3810_v8 = vadd.f32 %v3808_v4, %v3790_v40  ;;  %v3811_v57 = vadd.f32 %v3809_v53, %v3791_v21  ;;  %v3870_v44 = vmul.f32 %v3865_v56, %v4643_v29  ;;  %v3871_v14 = vmul.f32 %v3869_v15, %v4649_v33 }
 0xa6d   : > { %v3837_v45 = vmul.f32 %v5364_v0, %v3830_v42  ;;  %v3838_v34 = vmul.f32 %v5364_v0, %v3831_v48  ;;  %v3971_v42 = vld [vmem:[%s5594_s2 + $0x8] sm:$0x3]  ;;  %v3970_v48 = vld [vmem:[%s5594_s2] sm:$0xff] }
 0xa6e   : > { %v3819_v2 = vadd.f32 %v5307_v20, %v3810_v8  ;;  %v3820_v60 = vadd.f32 %v5311_v54, %v3811_v57  ;;  %v3882_v20 = vpop.permute.xlu1 %3881  ;;  %v3877_v63 = vmul.f32 %v5368_v7, %v3870_v44  ;;  %v3878_v50 = vmul.f32 %v5368_v7, %v3871_v14  ;;  %v5596_v57 = vld [vmem:[#allocation31_spill] sm:$0xff] }
 0xa70   : > { %v3839_v43 = vadd.f32 %v3837_v45, %v3819_v2  ;;  %v3840_v54 = vadd.f32 %v3838_v34, %v3820_v60  ;;  %v4068_v34 = vld [vmem:[%s5597_s7 + $0x8] sm:$0x3] }
 0xa73   : > { %v3895_v52 = vpop.permute.xlu0 %3894 }
 0xa77   : > { %v3844_v17 = vpop.permute.xlu0 %3843 }
 0xa78   : > { %v3845_v32 = vsel %vm1854_vm1, %v3842_v16, %v3844_v17  ;;  %v3849_v41 = vsel %vm1854_vm1, %v3844_v17, %v3842_v16 }
 0xa79   : > { %v3850_v51 = vmul.f32 %v3845_v32, %v4636_v24  ;;  %v3851_v35 = vmul.f32 %v3849_v41, %v4639_v27  ;;  %v4067_v41 = vld [vmem:[%s5597_s7] sm:$0xff] }
 0xa7b   : > { %v3857_v55 = vmul.f32 %v5366_v58, %v3850_v51  ;;  %v3858_v29 = vmul.f32 %v5366_v58, %v3851_v35  ;;  %v3884_v33 = vpop.permute.xlu0 %3883  ;;  %v3550_v30 = vpop.permute.xlu1 %3549 }
 0xa7c   : > { %v3885_v16 = vsel %vm1900_vm0, %v3882_v20, %v3884_v33  ;;  %v3889_v0 = vsel %vm1900_vm0, %v3884_v33, %v3882_v20 }
 0xa7d   : > { %v3859_v24 = vadd.f32 %v3857_v55, %v3839_v43  ;;  %v3860_v46 = vadd.f32 %v3858_v29, %v3840_v54  ;;  %v3890_v27 = vmul.f32 %v3885_v16, %v4633_v23  ;;  %v3891_v1 = vmul.f32 %v3889_v0, %v4630_v22 }
 0xa7f   : > { %v3880_v38 = vadd.f32 %v3878_v50, %v3860_v46  ;;  %v3897_v10 = vmul.f32 %v3895_v52, %v3890_v27  ;;  %v3898_v47 = vmul.f32 %v3895_v52, %v3891_v1  ;;  %v3879_v58 = vadd.f32 %v3877_v63, %v3859_v24  ;;  %v3958_v31 = vpop.permute.xlu0 %3957  ;;  %v3558_v61 = vpop.permute.xlu1 %3557 }
 0xa81   : > { %v3900_v25 = vadd.f32 %v3898_v47, %v3880_v38  ;;  %v3899_v13 = vadd.f32 %v3897_v10, %v3879_v58 }
 0xa83   : > { %v3903_v36 = vpack.c.bf16 %v3900_v25, %v3900_v25  ;;  %v3902_v11 = vpack.c.bf16 %v3899_v13, %v3899_v13  ;;  %v3966_v4 = vpop.permute.xlu0 %3965 }
 0xa85   : > { %4204 = vmatprep.subr.msk.bf16.mxu1 %vm1934_vm3, %v3903_v36  ;;  %v3908_v7 = vsel %vm1934_vm3, %v3902_v11, 0 }
 0xa86   : > { %3928 = vmatpush1.bf16.msra.mxu1 %v3908_v7 }
 0xa89   : > { %4205 = vmatmul.mubr.msk.bf16.vlgmr.msra.gmra.mxu1 %vm2181_vm10, %v3901_v59 }
 0xa8a   : > { %4048 = vmatprep.mubr.f32.mxu1 %v4337_v12 }
 0xb26   : > { %v3539_v22 = vpop.f32.mrf.mxu1 }
 0xb27   : > { %v3552_v9 = vmul.f32 %v3550_v30, %v3539_v22 }
 0xb28   : > { %v3541_v23 = vpop.f32.mrf.mxu1 }
 0xb29   : > { %v3553_v37 = vmul.f32 %v3550_v30, %v3541_v23  ;;  %v3560_v53 = vadd.f32 %v3558_v61, %v3552_v9 }
 0xb2a   : > { %v3543_v18 = vpop.f32.mrf.mxu1 }
 0xb2b   : > { %v3561_v3 = vadd.f32 %v3558_v61, %v3553_v37  ;;  %v3562_v52 = vadd.f32 %v3560_v53, %v5596_v57 }
 0xb2c   : > { %v3544_v49 = vpop.f32.mrf.mxu1 }
 0xb2d   : > { %v3563_v8 = vadd.f32 %v3561_v3, %v5595_v39 }
 0xb49   : > { %v3947_v62 = vpop.f32.mrf.mxu1 }
 0xb4a   : > { %v3960_v26 = vmul.f32 %v3958_v31, %v3947_v62 }
 0xb4b   : > { %v3949_v28 = vpop.f32.mrf.mxu1 }
 0xb4c   : > { %v3961_v19 = vmul.f32 %v3958_v31, %v3949_v28  ;;  %v3968_v5 = vadd.f32 %v3966_v4, %v3960_v26 }
 0xb4d   : > { %v3951_v40 = vpop.f32.mrf.mxu1 }
 0xb4e   : > { %v3969_v21 = vadd.f32 %v3966_v4, %v3961_v19 }
 0xb4f   : > { %v3952_v6 = vpop.f32.mrf.mxu1 }
 0xb50   : > { %4006 = vmatprep.subr.mxu0 %v3969_v21  ;;  %4212 = vmatprep.subr.mxu1 %v3969_v21 }
 0xb51   : > { %4007 = vmatpush1.msra.mxu0 %v3968_v5  ;;  %4214 = vmatpush1.msra.mxu1 %v3968_v5 }
 0xb52   : > { %4008 = vmatprep.subr.mxu0 %v3563_v8  ;;  %4213 = vmatprep.subr.mxu1 %v3563_v8 }
 0xb53   : > { %4009 = vmatpush1.msra.mxu0 %v3562_v52  ;;  %4215 = vmatpush1.msra.mxu1 %v3562_v52 }
 0xb54   : > { %4207 = vmatmul.mubr.msk.f32.vlgmr.msra.gmra.mxu1 %vm1763_vm8, %v3971_v42  ;;  %4206 = vmatmul.mubr.msk.f32.vlgmr.msra.gmra.mxu0 %vm1763_vm8, %v3970_v48 }
 0xc14   : > { %v4050_v56 = vpop.f32.mrf.mxu1  ;;  %v4044_v15 = vpop.f32.mrf.mxu0 }
 0xc15   : > { %v4059_v17 = vsel %vm4058_vm11, %v4050_v56, 0.0 }
 0xc16   : > { %v4052_v2 = vpop.f32.mrf.mxu1  ;;  %v4046_v60 = vpop.f32.mrf.mxu0 }
 0xc17   : > { %v4060_v44 = vsel %vm4058_vm11, %v4052_v2, 0.0  ;;  %v4055_v14 = vadd.f32 %v4046_v60, %v4044_v15 }
 0xc18   : > { %v4061_v32 = vadd.f32 %v4060_v44, %v4059_v17 }
 0xc19   : > { %4056 = vadd.xlane.f32.xlu1 %v4055_v14 }
 0xc1a   : > { %4062 = vadd.xlane.f32.xlu0 %v4061_v32 }
 0xca2   : > { %v4057_v45 = vpop.xlane.xlu1 %4056 }
 0xca3   : > { %v4063_v51 = vpop.xlane.xlu0 %4062  ;;  %v4065_v35 = vmul.f32 0.00390625, %v4057_v45 }
 0xca4   : > { %v4066_v20 = vmul.f32 0.00390625, %v4063_v51 }
 0xca5   : > { %v4069_v43 = vadd.f32 %v4067_v41, %v4065_v35 }
 0xca6   : > { %v4070_v54 = vadd.f32 %v4068_v34, %v4066_v20 }
 0xca7   : > { %4071 = vst.msk [vmem:[%s1714_s18] sm:$0xff] %vm1809_vm6, %v4069_v43 }
 0xca8   : > { %4073 = vst.msk [vmem:[%s1714_s18 + $0x8] sm:$0x3] %vm4072_vm12, %v4070_v54 }
 0xca9 PF: > { %s127_s15 = sadd.s32 1, %s4284_s15  }
 0xcaa   : > { %p124_p4 = scmp.ge.s32.totalorder %s127_s15, 4  }
 0xcac   :  { %126 = sbr.rel (!%p124_p4) target bundleno = 76 (0x4c), region = 347 }

</bundles_post_ra>
